<compile_context>
chip_gen: v7x
topology: tpu7x:2x2x1
jax: 0.10.0
libtpu: 0.0.40
codegen_flags: <defaults>
</compile_context>

<pallas_src>
import math

import jax
import jax.numpy as jnp
from jax.experimental import pallas as pl
from jax.experimental.pallas import tpu as pltpu

VOCAB = 8192          # must cover monoT5 "true"/"false" ids 6136 / 1176
D_MODEL = 128
N_HEADS = 2
D_HEAD = 64
INNER = N_HEADS * D_HEAD          # 128
D_FF = 256
N_LAYERS = 2
SEQ = 8
REL_BUCKETS = 32
REL_MAX_DIST = 128
TRUE_ID, FALSE_ID = 6136, 1176
DECODER_START_ID = 0


# ----------------------- in-kernel helpers (traced) -----------------------

def _rmsnorm(x, w):
    """T5 LayerNorm: RMS only, no mean subtraction, no bias.  f32 VPU math."""
    var = jnp.mean(x * x, axis=-1, keepdims=True)
    return x * jax.lax.rsqrt(var + 1e-6) * w


def _dot(a, b):
    """MXU matmul: bf16 operands, f32 accumulation."""
    return jnp.dot(a.astype(jnp.bfloat16), b.astype(jnp.bfloat16),
                   preferred_element_type=jnp.float32)


def _dot_t(a, b):
    """a @ b.T without materializing a transpose (contract last dims)."""
    return jax.lax.dot_general(
        a.astype(jnp.bfloat16), b.astype(jnp.bfloat16),
        (((1,), (1,)), ((), ())), preferred_element_type=jnp.float32)


def _softmax_rows(s):
    """Row softmax with EUP exp + approximate EUP reciprocal (attention only)."""
    m = jnp.max(s, axis=-1, keepdims=True)
    p = jnp.exp(s - m)
    return p * pl.reciprocal(jnp.sum(p, axis=-1, keepdims=True), approx=True)


def _mha(q, k, v, bias, wo):
    """Multi-head attention on lane-dense (S, H*Dh) activations.

    q: (Sq, H*Dh), k/v: (Sk, H*Dh), bias: None or tuple of per-head (Sq, Sk),
    wo: (H*Dh, D).  Heads are static 64-lane slices; each head's context is
    folded directly through the matching rows of wo (no concat / transpose).
    T5 attention: no 1/sqrt(d) scaling, additive relative-position bias.
    """
    out = None
    for h in range(N_HEADS):
        sl = slice(h * D_HEAD, (h + 1) * D_HEAD)
        s = _dot_t(q[:, sl], k[:, sl])                       # (Sq, Sk) f32
        if bias is not None:
            s = s + bias[h]
        p = _softmax_rows(s)
        ctx = _dot(p, v[:, sl])                              # (Sq, Dh)
        contrib = _dot(ctx, wo[sl, :])                       # (Sq, D)
        out = contrib if out is None else out + contrib
    return out


# ------------------------------ fused kernel ------------------------------

def _relevance_model_kernel(
    x_enc_ref, x_dec_ref, enc_bias_ref,
    e_ln1_ref, e_wqkv_ref, e_wo_ref, e_ln2_ref, e_wi_ref, e_woff_ref,
    enc_fln_ref,
    d_ln1_ref, d_swv_ref, d_swo_ref, d_ln2_ref,
    d_cwq_ref, d_cwkv_ref, d_cwo_ref, d_ln3_ref, d_wi_ref, d_woff_ref,
    dec_fln_ref,
    lm_w2_ref,
    out_ref,
):
    x = x_enc_ref[...]                                         # (SEQ, D) f32
    enc_bias = tuple(enc_bias_ref[h] for h in range(N_HEADS))  # per-head (SEQ, SEQ)

    # ------------------------------ encoder ------------------------------
    for l in range(N_LAYERS):
        h = _rmsnorm(x, e_ln1_ref[l])
        qkv = _dot(h, e_wqkv_ref[l])                         # (SEQ, 3*INNER)
        q = qkv[:, :INNER]
        k = qkv[:, INNER:2 * INNER]
        v = qkv[:, 2 * INNER:]
        x = x + _mha(q, k, v, enc_bias, e_wo_ref[l])
        h = _rmsnorm(x, e_ln2_ref[l])
        ff = jnp.maximum(_dot(h, e_wi_ref[l]), 0.0)          # fused ReLU
        x = x + _dot(ff, e_woff_ref[l])
    enc_out = _rmsnorm(x, enc_fln_ref[...])                  # (SEQ, D)

    # -------------------- decoder (single greedy step) --------------------
    y = x_dec_ref[...]                                       # (1, D)
    for l in range(N_LAYERS):
        # Self-attention over a single decoded position (no cache): softmax of
        # a single logit is exactly 1 for every head, so the attended context
        # equals v exactly (position bias and q/k projections cancel out).
        h = _rmsnorm(y, d_ln1_ref[l])
        v = _dot(h, d_swv_ref[l])                            # (1, INNER)
        y = y + _dot(v, d_swo_ref[l])
        # Cross-attention against the encoder output (zero position bias in T5).
        h = _rmsnorm(y, d_ln2_ref[l])
        q = _dot(h, d_cwq_ref[l])                            # (1, INNER)
        kv = _dot(enc_out, d_cwkv_ref[l])                    # (SEQ, 2*INNER)
        y = y + _mha(q, kv[:, :INNER], kv[:, INNER:], None, d_cwo_ref[l])
        # Feed-forward.
        h = _rmsnorm(y, d_ln3_ref[l])
        ff = jnp.maximum(_dot(h, d_wi_ref[l]), 0.0)
        y = y + _dot(ff, d_woff_ref[l])
    y = _rmsnorm(y, dec_fln_ref[...])

    # lm_head restricted to the two logits the caller keeps ([TRUE_ID, FALSE_ID]).
    # Tied-embedding 1/sqrt(d) scaling is applied to the 2 logits (2 muls)
    # instead of the 128-wide hidden state.  Final 2-way softmax uses an exact
    # divide so the returned probabilities match the PyTorch semantics.
    logits2 = _dot_t(y, lm_w2_ref[...]) * (D_MODEL ** -0.5)  # (1, 2) f32
    m = jnp.max(logits2, axis=-1, keepdims=True)
    p = jnp.exp(logits2 - m)
    out_ref[...] = p / jnp.sum(p, axis=-1, keepdims=True)


# ------------------------------ JAX glue ------------------------------

def _relative_position_bucket(rel_pos, bidirectional,
                              num_buckets=REL_BUCKETS, max_distance=REL_MAX_DIST):
    ret = jnp.zeros_like(rel_pos)
    if bidirectional:
        num_buckets //= 2
        ret = ret + (rel_pos > 0).astype(jnp.int32) * num_buckets
        rel_pos = jnp.abs(rel_pos)
    else:
        rel_pos = -jnp.minimum(rel_pos, 0)
    max_exact = num_buckets // 2
    is_small = rel_pos < max_exact
    # Clamp before the log / int cast so rel_pos == 0 never hits an
    # implementation-defined huge-negative-float -> int32 conversion.
    safe = jnp.maximum(rel_pos, 1).astype(jnp.float32)
    rel_big = max_exact + (
        jnp.log(safe / max_exact) / math.log(max_distance / max_exact)
        * (num_buckets - max_exact)
    ).astype(jnp.int32)
    rel_big = jnp.minimum(rel_big, num_buckets - 1)
    return ret + jnp.where(is_small, rel_pos, rel_big)


def relative_position_bias(q_len, k_len, table, bidirectional):
    ctx = jnp.arange(q_len)[:, None]
    mem = jnp.arange(k_len)[None, :]
    buckets = _relative_position_bucket(mem - ctx, bidirectional)
    bias = table[buckets]                                    # (q_len, k_len, H)
    return jnp.transpose(bias, (2, 0, 1)).astype(jnp.float32)


@jax.jit
def relevance_forward(params, input_ids):
    """softmax(decoder_logits[:, [TRUE_ID, FALSE_ID]], dim=1).squeeze(0) -> (2,)."""
    shared = params["shared"]
    x_enc = shared[input_ids[0]]                             # (SEQ, D) embedding gather
    x_dec = shared[jnp.array([DECODER_START_ID])]            # (1, D)
    # Only the two lm_head rows the caller keeps: avoids the 8192-wide matmul
    # and the 4 MiB transposed-embedding read of the full-vocab path.
    lm_w2 = shared[jnp.array([TRUE_ID, FALSE_ID])].astype(jnp.bfloat16)   # (2, D)
    enc_bias = relative_position_bias(SEQ, SEQ, params["enc_rel_bias"],
                                      bidirectional=True)    # (H, SEQ, SEQ)

    e, d = params["encoder"], params["decoder"]
    inputs = (
        x_enc, x_dec, enc_bias,
        e["ln1"], e["wqkv"], e["wo"], e["ln2"], e["wi"], e["wo_ff"],
        params["enc_final_ln"],
        d["ln1"], d["self_wv"], d["self_wo"], d["ln2"],
        d["cross_wq"], d["cross_wkv"], d["cross_wo"], d["ln3"], d["wi"], d["wo_ff"],
        params["dec_final_ln"],
        lm_w2,
    )
    vmem = pl.BlockSpec(memory_space=pltpu.MemorySpace.VMEM)
    probs = pl.pallas_call(
        _relevance_model_kernel,
        out_shape=jax.ShapeDtypeStruct((1, 2), jnp.float32),
        in_specs=[vmem] * len(inputs),
        out_specs=vmem,
        compiler_params=pltpu.CompilerParams(vmem_limit_bytes=16 << 20),
    )(*inputs)
    return probs[0]                                          # (2,), sums to 1


# ------------------------------ parameters ------------------------------

def init_params(key):
    keys = iter(jax.random.split(key, 256))
    bf16 = jnp.bfloat16

    def nrm(shape, scale):
        return jax.random.normal(next(keys), shape, jnp.float32) * scale

    def stack(make_one, dtype=bf16):
        return jnp.stack([make_one() for _ in range(N_LAYERS)]).astype(dtype)

    def ones_ln():
        return jnp.ones((N_LAYERS, 1, D_MODEL), jnp.float32)

    encoder = {
        "ln1": ones_ln(),
        # Fused QKV weight: (D, 3*INNER) per layer.
        "wqkv": stack(lambda: jnp.concatenate(
            [nrm((D_MODEL, INNER), (D_MODEL * D_HEAD) ** -0.5),
             nrm((D_MODEL, INNER), D_MODEL ** -0.5),
             nrm((D_MODEL, INNER), D_MODEL ** -0.5)], axis=1)),
        "wo": stack(lambda: nrm((INNER, D_MODEL), INNER ** -0.5)),
        "ln2": ones_ln(),
        "wi": stack(lambda: nrm((D_MODEL, D_FF), D_MODEL ** -0.5)),
        "wo_ff": stack(lambda: nrm((D_FF, D_MODEL), D_FF ** -0.5)),
    }
    decoder = {
        "ln1": ones_ln(),
        # Decoder self-attention on a single decoded token reduces exactly to
        # v @ wo, so only wv / wo are materialized (wq / wk / dec_rel_bias are
        # mathematically inert for length-1 greedy decode without a KV cache).
        "self_wv": stack(lambda: nrm((D_MODEL, INNER), D_MODEL ** -0.5)),
        "self_wo": stack(lambda: nrm((INNER, D_MODEL), INNER ** -0.5)),
        "ln2": ones_ln(),
        "cross_wq": stack(lambda: nrm((D_MODEL, INNER), (D_MODEL * D_HEAD) ** -0.5)),
        "cross_wkv": stack(lambda: jnp.concatenate(
            [nrm((D_MODEL, INNER), D_MODEL ** -0.5),
             nrm((D_MODEL, INNER), D_MODEL ** -0.5)], axis=1)),
        "cross_wo": stack(lambda: nrm((INNER, D_MODEL), INNER ** -0.5)),
        "ln3": ones_ln(),
        "wi": stack(lambda: nrm((D_MODEL, D_FF), D_MODEL ** -0.5)),
        "wo_ff": stack(lambda: nrm((D_FF, D_MODEL), D_FF ** -0.5)),
    }
    return {
        "shared": nrm((VOCAB, D_MODEL), 1.0),                # f32 embedding table
        "enc_rel_bias": nrm((REL_BUCKETS, N_HEADS), 1.0),
        "encoder": encoder,
        "decoder": decoder,
        "enc_final_ln": jnp.ones((1, D_MODEL), jnp.float32),
        "dec_final_ln": jnp.ones((1, D_MODEL), jnp.float32),
    }


if __name__ == "__main__":
    # TODO(synk): real T5Tokenizer / pretrained monoT5 checkpoint are not loadable
    # here; tokenization of 'Query: ... Document: ... Relevant: ' is simulated with
    # deterministic random token ids and synthetic weights.
    query = "what is the capital of france"
    document = "paris is the capital and largest city of france"

    key = jax.random.PRNGKey(0)
    pkey, tkey = jax.random.split(key)
    params = init_params(pkey)
    input_ids = jax.random.randint(tkey, (1, SEQ), 0, VOCAB, dtype=jnp.int32)

    probs = jax.block_until_ready(relevance_forward(params, input_ids))
    assert probs.shape == (2,)
    assert abs(float(jnp.sum(probs)) - 1.0) < 1e-5
    print("KERNEL_OK")
</pallas_src>

<mosaic_0001>
module attributes {stable_mosaic.version = 11 : i64} {
  func.func @_relevance_model_kernel(%arg0: memref<8x128xf32, #tpu.memory_space<vmem>>, %arg1: memref<1x128xf32, #tpu.memory_space<vmem>>, %arg2: memref<2x8x8xf32, #tpu.memory_space<vmem>>, %arg3: memref<2x1x128xf32, #tpu.memory_space<vmem>>, %arg4: memref<2x128x384xbf16, #tpu.memory_space<vmem>>, %arg5: memref<2x128x128xbf16, #tpu.memory_space<vmem>>, %arg6: memref<2x1x128xf32, #tpu.memory_space<vmem>>, %arg7: memref<2x128x256xbf16, #tpu.memory_space<vmem>>, %arg8: memref<2x256x128xbf16, #tpu.memory_space<vmem>>, %arg9: memref<1x128xf32, #tpu.memory_space<vmem>>, %arg10: memref<2x1x128xf32, #tpu.memory_space<vmem>>, %arg11: memref<2x128x128xbf16, #tpu.memory_space<vmem>>, %arg12: memref<2x128x128xbf16, #tpu.memory_space<vmem>>, %arg13: memref<2x1x128xf32, #tpu.memory_space<vmem>>, %arg14: memref<2x128x128xbf16, #tpu.memory_space<vmem>>, %arg15: memref<2x128x256xbf16, #tpu.memory_space<vmem>>, %arg16: memref<2x128x128xbf16, #tpu.memory_space<vmem>>, %arg17: memref<2x1x128xf32, #tpu.memory_space<vmem>>, %arg18: memref<2x128x256xbf16, #tpu.memory_space<vmem>>, %arg19: memref<2x256x128xbf16, #tpu.memory_space<vmem>>, %arg20: memref<1x128xf32, #tpu.memory_space<vmem>>, %arg21: memref<2x128xbf16, #tpu.memory_space<vmem>>, %arg22: memref<1x2xf32, #tpu.memory_space<vmem>>) attributes {dimension_semantics = [], scalar_prefetch = 0 : i64, scratch_operands = 0 : i64, tpu.core_type = #tpu.core_type<tc>} {
    %c0 = arith.constant 0 : index
    %c0_0 = arith.constant 0 : index
    %0 = vector.load %arg0[%c0, %c0_0] : memref<8x128xf32, #tpu.memory_space<vmem>>, vector<8x128xf32>
    %c0_1 = arith.constant 0 : index
    %c0_2 = arith.constant 0 : index
    %c0_3 = arith.constant 0 : index
    %1 = vector.load %arg2[%c0_1, %c0_2, %c0_3] : memref<2x8x8xf32, #tpu.memory_space<vmem>>, vector<1x8x8xf32>
    %2 = vector.shape_cast %1 : vector<1x8x8xf32> to vector<8x8xf32>
    %c1 = arith.constant 1 : index
    %c0_4 = arith.constant 0 : index
    %c0_5 = arith.constant 0 : index
    %3 = vector.load %arg2[%c1, %c0_4, %c0_5] : memref<2x8x8xf32, #tpu.memory_space<vmem>>, vector<1x8x8xf32>
    %4 = vector.shape_cast %3 : vector<1x8x8xf32> to vector<8x8xf32>
    %c0_6 = arith.constant 0 : index
    %c0_7 = arith.constant 0 : index
    %c0_8 = arith.constant 0 : index
    %5 = vector.load %arg3[%c0_6, %c0_7, %c0_8] : memref<2x1x128xf32, #tpu.memory_space<vmem>>, vector<1x1x128xf32>
    %6 = vector.shape_cast %5 : vector<1x1x128xf32> to vector<1x128xf32>
    %7 = arith.mulf %0, %0 : vector<8x128xf32>
    %cst = arith.constant dense<0.000000e+00> : vector<8xf32>
    %8 = vector.multi_reduction <add>, %7, %cst [1] : vector<8x128xf32> to vector<8xf32>
    %9 = vector.shape_cast %8 : vector<8xf32> to vector<8x1xf32>
    %cst_9 = arith.constant 1.280000e+02 : f32
    %10 = vector.broadcast %cst_9 : f32 to vector<8x1xf32>
    %11 = arith.divf %9, %10 : vector<8x1xf32>
    %cst_10 = arith.constant 9.99999997E-7 : f32
    %12 = vector.broadcast %cst_10 : f32 to vector<8x1xf32>
    %13 = arith.addf %11, %12 : vector<8x1xf32>
    %14 = math.rsqrt %13 : vector<8x1xf32>
    %15 = vector.broadcast %14 : vector<8x1xf32> to vector<8x128xf32>
    %16 = arith.mulf %0, %15 : vector<8x128xf32>
    %17 = vector.broadcast %6 : vector<1x128xf32> to vector<8x128xf32>
    %18 = arith.mulf %16, %17 : vector<8x128xf32>
    %c0_11 = arith.constant 0 : index
    %c0_12 = arith.constant 0 : index
    %c0_13 = arith.constant 0 : index
    %19 = vector.load %arg4[%c0_11, %c0_12, %c0_13] : memref<2x128x384xbf16, #tpu.memory_space<vmem>>, vector<1x128x384xbf16>
    %20 = vector.shape_cast %19 : vector<1x128x384xbf16> to vector<128x384xbf16>
    %21 = arith.truncf %18 : vector<8x128xf32> to vector<8x128xbf16>
    %cst_14 = arith.constant dense<0.000000e+00> : vector<8x384xf32>
    %22 = tpu.matmul %21, %20, %cst_14 {dimension_numbers = #tpu.dot_dimension_numbers<[1], [0], [0], [1], [0, 0, 1, 1], [], []>} : vector<8x128xbf16>, vector<128x384xbf16>, vector<8x384xf32> -> vector<8x384xf32>
    %23 = vector.extract_strided_slice %22 {offsets = [0, 0], sizes = [8, 128], strides = [1, 1]} : vector<8x384xf32> to vector<8x128xf32>
    %24 = vector.extract_strided_slice %22 {offsets = [0, 128], sizes = [8, 128], strides = [1, 1]} : vector<8x384xf32> to vector<8x128xf32>
    %25 = vector.extract_strided_slice %22 {offsets = [0, 256], sizes = [8, 128], strides = [1, 1]} : vector<8x384xf32> to vector<8x128xf32>
    %c0_15 = arith.constant 0 : index
    %c0_16 = arith.constant 0 : index
    %c0_17 = arith.constant 0 : index
    %26 = vector.load %arg5[%c0_15, %c0_16, %c0_17] : memref<2x128x128xbf16, #tpu.memory_space<vmem>>, vector<1x128x128xbf16>
    %27 = vector.shape_cast %26 : vector<1x128x128xbf16> to vector<128x128xbf16>
    %28 = vector.extract_strided_slice %23 {offsets = [0, 0], sizes = [8, 64], strides = [1, 1]} : vector<8x128xf32> to vector<8x64xf32>
    %29 = vector.extract_strided_slice %24 {offsets = [0, 0], sizes = [8, 64], strides = [1, 1]} : vector<8x128xf32> to vector<8x64xf32>
    %30 = arith.truncf %28 : vector<8x64xf32> to vector<8x64xbf16>
    %31 = arith.truncf %29 : vector<8x64xf32> to vector<8x64xbf16>
    %cst_18 = arith.constant dense<0.000000e+00> : vector<8x8xf32>
    %32 = tpu.matmul %30, %31, %cst_18 {dimension_numbers = #tpu.dot_dimension_numbers<[1], [1], [0], [0], [0, 0, 1, 0], [], []>} : vector<8x64xbf16>, vector<8x64xbf16>, vector<8x8xf32> -> vector<8x8xf32>
    %33 = arith.addf %32, %2 : vector<8x8xf32>
    %cst_19 = arith.constant dense<0xFF800000> : vector<8xf32>
    %34 = vector.multi_reduction <maximumf>, %33, %cst_19 [1] : vector<8x8xf32> to vector<8xf32>
    %35 = vector.shape_cast %34 : vector<8xf32> to vector<8x1xf32>
    %36 = vector.broadcast %35 : vector<8x1xf32> to vector<8x8xf32>
    %37 = arith.subf %33, %36 : vector<8x8xf32>
    %38 = math.exp %37 : vector<8x8xf32>
    %cst_20 = arith.constant dense<0.000000e+00> : vector<8xf32>
    %39 = vector.multi_reduction <add>, %38, %cst_20 [1] : vector<8x8xf32> to vector<8xf32>
    %40 = vector.shape_cast %39 : vector<8xf32> to vector<8x1xf32>
    %41 = tpu.reciprocal %40 {approx = true} : vector<8x1xf32> -> vector<8x1xf32>
    %42 = vector.broadcast %41 : vector<8x1xf32> to vector<8x8xf32>
    %43 = arith.mulf %38, %42 : vector<8x8xf32>
    %44 = vector.extract_strided_slice %25 {offsets = [0, 0], sizes = [8, 64], strides = [1, 1]} : vector<8x128xf32> to vector<8x64xf32>
    %45 = arith.truncf %43 : vector<8x8xf32> to vector<8x8xbf16>
    %46 = arith.truncf %44 : vector<8x64xf32> to vector<8x64xbf16>
    %cst_21 = arith.constant dense<0.000000e+00> : vector<8x64xf32>
    %47 = tpu.matmul %45, %46, %cst_21 {dimension_numbers = #tpu.dot_dimension_numbers<[1], [0], [0], [1], [0, 0, 1, 1], [], []>} : vector<8x8xbf16>, vector<8x64xbf16>, vector<8x64xf32> -> vector<8x64xf32>
    %48 = vector.extract_strided_slice %27 {offsets = [0, 0], sizes = [64, 128], strides = [1, 1]} : vector<128x128xbf16> to vector<64x128xbf16>
    %49 = arith.truncf %47 : vector<8x64xf32> to vector<8x64xbf16>
    %cst_22 = arith.constant dense<0.000000e+00> : vector<8x128xf32>
    %50 = tpu.matmul %49, %48, %cst_22 {dimension_numbers = #tpu.dot_dimension_numbers<[1], [0], [0], [1], [0, 0, 1, 1], [], []>} : vector<8x64xbf16>, vector<64x128xbf16>, vector<8x128xf32> -> vector<8x128xf32>
    %51 = vector.extract_strided_slice %23 {offsets = [0, 64], sizes = [8, 64], strides = [1, 1]} : vector<8x128xf32> to vector<8x64xf32>
    %52 = vector.extract_strided_slice %24 {offsets = [0, 64], sizes = [8, 64], strides = [1, 1]} : vector<8x128xf32> to vector<8x64xf32>
    %53 = arith.truncf %51 : vector<8x64xf32> to vector<8x64xbf16>
    %54 = arith.truncf %52 : vector<8x64xf32> to vector<8x64xbf16>
    %cst_23 = arith.constant dense<0.000000e+00> : vector<8x8xf32>
    %55 = tpu.matmul %53, %54, %cst_23 {dimension_numbers = #tpu.dot_dimension_numbers<[1], [1], [0], [0], [0, 0, 1, 0], [], []>} : vector<8x64xbf16>, vector<8x64xbf16>, vector<8x8xf32> -> vector<8x8xf32>
    %56 = arith.addf %55, %4 : vector<8x8xf32>
    %cst_24 = arith.constant dense<0xFF800000> : vector<8xf32>
    %57 = vector.multi_reduction <maximumf>, %56, %cst_24 [1] : vector<8x8xf32> to vector<8xf32>
    %58 = vector.shape_cast %57 : vector<8xf32> to vector<8x1xf32>
    %59 = vector.broadcast %58 : vector<8x1xf32> to vector<8x8xf32>
    %60 = arith.subf %56, %59 : vector<8x8xf32>
    %61 = math.exp %60 : vector<8x8xf32>
    %cst_25 = arith.constant dense<0.000000e+00> : vector<8xf32>
    %62 = vector.multi_reduction <add>, %61, %cst_25 [1] : vector<8x8xf32> to vector<8xf32>
    %63 = vector.shape_cast %62 : vector<8xf32> to vector<8x1xf32>
    %64 = tpu.reciprocal %63 {approx = true} : vector<8x1xf32> -> vector<8x1xf32>
    %65 = vector.broadcast %64 : vector<8x1xf32> to vector<8x8xf32>
    %66 = arith.mulf %61, %65 : vector<8x8xf32>
    %67 = vector.extract_strided_slice %25 {offsets = [0, 64], sizes = [8, 64], strides = [1, 1]} : vector<8x128xf32> to vector<8x64xf32>
    %68 = arith.truncf %66 : vector<8x8xf32> to vector<8x8xbf16>
    %69 = arith.truncf %67 : vector<8x64xf32> to vector<8x64xbf16>
    %cst_26 = arith.constant dense<0.000000e+00> : vector<8x64xf32>
    %70 = tpu.matmul %68, %69, %cst_26 {dimension_numbers = #tpu.dot_dimension_numbers<[1], [0], [0], [1], [0, 0, 1, 1], [], []>} : vector<8x8xbf16>, vector<8x64xbf16>, vector<8x64xf32> -> vector<8x64xf32>
    %71 = vector.extract_strided_slice %27 {offsets = [64, 0], sizes = [64, 128], strides = [1, 1]} : vector<128x128xbf16> to vector<64x128xbf16>
    %72 = arith.truncf %70 : vector<8x64xf32> to vector<8x64xbf16>
    %cst_27 = arith.constant dense<0.000000e+00> : vector<8x128xf32>
    %73 = tpu.matmul %72, %71, %cst_27 {dimension_numbers = #tpu.dot_dimension_numbers<[1], [0], [0], [1], [0, 0, 1, 1], [], []>} : vector<8x64xbf16>, vector<64x128xbf16>, vector<8x128xf32> -> vector<8x128xf32>
    %74 = arith.addf %50, %73 : vector<8x128xf32>
    %75 = arith.addf %0, %74 : vector<8x128xf32>
    %c0_28 = arith.constant 0 : index
    %c0_29 = arith.constant 0 : index
    %c0_30 = arith.constant 0 : index
    %76 = vector.load %arg6[%c0_28, %c0_29, %c0_30] : memref<2x1x128xf32, #tpu.memory_space<vmem>>, vector<1x1x128xf32>
    %77 = vector.shape_cast %76 : vector<1x1x128xf32> to vector<1x128xf32>
    %78 = arith.mulf %75, %75 : vector<8x128xf32>
    %cst_31 = arith.constant dense<0.000000e+00> : vector<8xf32>
    %79 = vector.multi_reduction <add>, %78, %cst_31 [1] : vector<8x128xf32> to vector<8xf32>
    %80 = vector.shape_cast %79 : vector<8xf32> to vector<8x1xf32>
    %cst_32 = arith.constant 1.280000e+02 : f32
    %81 = vector.broadcast %cst_32 : f32 to vector<8x1xf32>
    %82 = arith.divf %80, %81 : vector<8x1xf32>
    %cst_33 = arith.constant 9.99999997E-7 : f32
    %83 = vector.broadcast %cst_33 : f32 to vector<8x1xf32>
    %84 = arith.addf %82, %83 : vector<8x1xf32>
    %85 = math.rsqrt %84 : vector<8x1xf32>
    %86 = vector.broadcast %85 : vector<8x1xf32> to vector<8x128xf32>
    %87 = arith.mulf %75, %86 : vector<8x128xf32>
    %88 = vector.broadcast %77 : vector<1x128xf32> to vector<8x128xf32>
    %89 = arith.mulf %87, %88 : vector<8x128xf32>
    %c0_34 = arith.constant 0 : index
    %c0_35 = arith.constant 0 : index
    %c0_36 = arith.constant 0 : index
    %90 = vector.load %arg7[%c0_34, %c0_35, %c0_36] : memref<2x128x256xbf16, #tpu.memory_space<vmem>>, vector<1x128x256xbf16>
    %91 = vector.shape_cast %90 : vector<1x128x256xbf16> to vector<128x256xbf16>
    %92 = arith.truncf %89 : vector<8x128xf32> to vector<8x128xbf16>
    %cst_37 = arith.constant dense<0.000000e+00> : vector<8x256xf32>
    %93 = tpu.matmul %92, %91, %cst_37 {dimension_numbers = #tpu.dot_dimension_numbers<[1], [0], [0], [1], [0, 0, 1, 1], [], []>} : vector<8x128xbf16>, vector<128x256xbf16>, vector<8x256xf32> -> vector<8x256xf32>
    %cst_38 = arith.constant 0.000000e+00 : f32
    %94 = vector.broadcast %cst_38 : f32 to vector<8x256xf32>
    %95 = arith.maximumf %93, %94 : vector<8x256xf32>
    %c0_39 = arith.constant 0 : index
    %c0_40 = arith.constant 0 : index
    %c0_41 = arith.constant 0 : index
    %96 = vector.load %arg8[%c0_39, %c0_40, %c0_41] : memref<2x256x128xbf16, #tpu.memory_space<vmem>>, vector<1x256x128xbf16>
    %97 = vector.shape_cast %96 : vector<1x256x128xbf16> to vector<256x128xbf16>
    %98 = arith.truncf %95 : vector<8x256xf32> to vector<8x256xbf16>
    %cst_42 = arith.constant dense<0.000000e+00> : vector<8x128xf32>
    %99 = tpu.matmul %98, %97, %cst_42 {dimension_numbers = #tpu.dot_dimension_numbers<[1], [0], [0], [1], [0, 0, 1, 1], [], []>} : vector<8x256xbf16>, vector<256x128xbf16>, vector<8x128xf32> -> vector<8x128xf32>
    %100 = arith.addf %75, %99 : vector<8x128xf32>
    %c1_43 = arith.constant 1 : index
    %c0_44 = arith.constant 0 : index
    %c0_45 = arith.constant 0 : index
    %101 = vector.load %arg3[%c1_43, %c0_44, %c0_45] : memref<2x1x128xf32, #tpu.memory_space<vmem>>, vector<1x1x128xf32>
    %102 = vector.shape_cast %101 : vector<1x1x128xf32> to vector<1x128xf32>
    %103 = arith.mulf %100, %100 : vector<8x128xf32>
    %cst_46 = arith.constant dense<0.000000e+00> : vector<8xf32>
    %104 = vector.multi_reduction <add>, %103, %cst_46 [1] : vector<8x128xf32> to vector<8xf32>
    %105 = vector.shape_cast %104 : vector<8xf32> to vector<8x1xf32>
    %cst_47 = arith.constant 1.280000e+02 : f32
    %106 = vector.broadcast %cst_47 : f32 to vector<8x1xf32>
    %107 = arith.divf %105, %106 : vector<8x1xf32>
    %cst_48 = arith.constant 9.99999997E-7 : f32
    %108 = vector.broadcast %cst_48 : f32 to vector<8x1xf32>
    %109 = arith.addf %107, %108 : vector<8x1xf32>
    %110 = math.rsqrt %109 : vector<8x1xf32>
    %111 = vector.broadcast %110 : vector<8x1xf32> to vector<8x128xf32>
    %112 = arith.mulf %100, %111 : vector<8x128xf32>
    %113 = vector.broadcast %102 : vector<1x128xf32> to vector<8x128xf32>
    %114 = arith.mulf %112, %113 : vector<8x128xf32>
    %c1_49 = arith.constant 1 : index
    %c0_50 = arith.constant 0 : index
    %c0_51 = arith.constant 0 : index
    %115 = vector.load %arg4[%c1_49, %c0_50, %c0_51] : memref<2x128x384xbf16, #tpu.memory_space<vmem>>, vector<1x128x384xbf16>
    %116 = vector.shape_cast %115 : vector<1x128x384xbf16> to vector<128x384xbf16>
    %117 = arith.truncf %114 : vector<8x128xf32> to vector<8x128xbf16>
    %cst_52 = arith.constant dense<0.000000e+00> : vector<8x384xf32>
    %118 = tpu.matmul %117, %116, %cst_52 {dimension_numbers = #tpu.dot_dimension_numbers<[1], [0], [0], [1], [0, 0, 1, 1], [], []>} : vector<8x128xbf16>, vector<128x384xbf16>, vector<8x384xf32> -> vector<8x384xf32>
    %119 = vector.extract_strided_slice %118 {offsets = [0, 0], sizes = [8, 128], strides = [1, 1]} : vector<8x384xf32> to vector<8x128xf32>
    %120 = vector.extract_strided_slice %118 {offsets = [0, 128], sizes = [8, 128], strides = [1, 1]} : vector<8x384xf32> to vector<8x128xf32>
    %121 = vector.extract_strided_slice %118 {offsets = [0, 256], sizes = [8, 128], strides = [1, 1]} : vector<8x384xf32> to vector<8x128xf32>
    %c1_53 = arith.constant 1 : index
    %c0_54 = arith.constant 0 : index
    %c0_55 = arith.constant 0 : index
    %122 = vector.load %arg5[%c1_53, %c0_54, %c0_55] : memref<2x128x128xbf16, #tpu.memory_space<vmem>>, vector<1x128x128xbf16>
    %123 = vector.shape_cast %122 : vector<1x128x128xbf16> to vector<128x128xbf16>
    %124 = vector.extract_strided_slice %119 {offsets = [0, 0], sizes = [8, 64], strides = [1, 1]} : vector<8x128xf32> to vector<8x64xf32>
    %125 = vector.extract_strided_slice %120 {offsets = [0, 0], sizes = [8, 64], strides = [1, 1]} : vector<8x128xf32> to vector<8x64xf32>
    %126 = arith.truncf %124 : vector<8x64xf32> to vector<8x64xbf16>
    %127 = arith.truncf %125 : vector<8x64xf32> to vector<8x64xbf16>
    %cst_56 = arith.constant dense<0.000000e+00> : vector<8x8xf32>
    %128 = tpu.matmul %126, %127, %cst_56 {dimension_numbers = #tpu.dot_dimension_numbers<[1], [1], [0], [0], [0, 0, 1, 0], [], []>} : vector<8x64xbf16>, vector<8x64xbf16>, vector<8x8xf32> -> vector<8x8xf32>
    %129 = arith.addf %128, %2 : vector<8x8xf32>
    %cst_57 = arith.constant dense<0xFF800000> : vector<8xf32>
    %130 = vector.multi_reduction <maximumf>, %129, %cst_57 [1] : vector<8x8xf32> to vector<8xf32>
    %131 = vector.shape_cast %130 : vector<8xf32> to vector<8x1xf32>
    %132 = vector.broadcast %131 : vector<8x1xf32> to vector<8x8xf32>
    %133 = arith.subf %129, %132 : vector<8x8xf32>
    %134 = math.exp %133 : vector<8x8xf32>
    %cst_58 = arith.constant dense<0.000000e+00> : vector<8xf32>
    %135 = vector.multi_reduction <add>, %134, %cst_58 [1] : vector<8x8xf32> to vector<8xf32>
    %136 = vector.shape_cast %135 : vector<8xf32> to vector<8x1xf32>
    %137 = tpu.reciprocal %136 {approx = true} : vector<8x1xf32> -> vector<8x1xf32>
    %138 = vector.broadcast %137 : vector<8x1xf32> to vector<8x8xf32>
    %139 = arith.mulf %134, %138 : vector<8x8xf32>
    %140 = vector.extract_strided_slice %121 {offsets = [0, 0], sizes = [8, 64], strides = [1, 1]} : vector<8x128xf32> to vector<8x64xf32>
    %141 = arith.truncf %139 : vector<8x8xf32> to vector<8x8xbf16>
    %142 = arith.truncf %140 : vector<8x64xf32> to vector<8x64xbf16>
    %cst_59 = arith.constant dense<0.000000e+00> : vector<8x64xf32>
    %143 = tpu.matmul %141, %142, %cst_59 {dimension_numbers = #tpu.dot_dimension_numbers<[1], [0], [0], [1], [0, 0, 1, 1], [], []>} : vector<8x8xbf16>, vector<8x64xbf16>, vector<8x64xf32> -> vector<8x64xf32>
    %144 = vector.extract_strided_slice %123 {offsets = [0, 0], sizes = [64, 128], strides = [1, 1]} : vector<128x128xbf16> to vector<64x128xbf16>
    %145 = arith.truncf %143 : vector<8x64xf32> to vector<8x64xbf16>
    %cst_60 = arith.constant dense<0.000000e+00> : vector<8x128xf32>
    %146 = tpu.matmul %145, %144, %cst_60 {dimension_numbers = #tpu.dot_dimension_numbers<[1], [0], [0], [1], [0, 0, 1, 1], [], []>} : vector<8x64xbf16>, vector<64x128xbf16>, vector<8x128xf32> -> vector<8x128xf32>
    %147 = vector.extract_strided_slice %119 {offsets = [0, 64], sizes = [8, 64], strides = [1, 1]} : vector<8x128xf32> to vector<8x64xf32>
    %148 = vector.extract_strided_slice %120 {offsets = [0, 64], sizes = [8, 64], strides = [1, 1]} : vector<8x128xf32> to vector<8x64xf32>
    %149 = arith.truncf %147 : vector<8x64xf32> to vector<8x64xbf16>
    %150 = arith.truncf %148 : vector<8x64xf32> to vector<8x64xbf16>
    %cst_61 = arith.constant dense<0.000000e+00> : vector<8x8xf32>
    %151 = tpu.matmul %149, %150, %cst_61 {dimension_numbers = #tpu.dot_dimension_numbers<[1], [1], [0], [0], [0, 0, 1, 0], [], []>} : vector<8x64xbf16>, vector<8x64xbf16>, vector<8x8xf32> -> vector<8x8xf32>
    %152 = arith.addf %151, %4 : vector<8x8xf32>
    %cst_62 = arith.constant dense<0xFF800000> : vector<8xf32>
    %153 = vector.multi_reduction <maximumf>, %152, %cst_62 [1] : vector<8x8xf32> to vector<8xf32>
    %154 = vector.shape_cast %153 : vector<8xf32> to vector<8x1xf32>
    %155 = vector.broadcast %154 : vector<8x1xf32> to vector<8x8xf32>
    %156 = arith.subf %152, %155 : vector<8x8xf32>
    %157 = math.exp %156 : vector<8x8xf32>
    %cst_63 = arith.constant dense<0.000000e+00> : vector<8xf32>
    %158 = vector.multi_reduction <add>, %157, %cst_63 [1] : vector<8x8xf32> to vector<8xf32>
    %159 = vector.shape_cast %158 : vector<8xf32> to vector<8x1xf32>
    %160 = tpu.reciprocal %159 {approx = true} : vector<8x1xf32> -> vector<8x1xf32>
    %161 = vector.broadcast %160 : vector<8x1xf32> to vector<8x8xf32>
    %162 = arith.mulf %157, %161 : vector<8x8xf32>
    %163 = vector.extract_strided_slice %121 {offsets = [0, 64], sizes = [8, 64], strides = [1, 1]} : vector<8x128xf32> to vector<8x64xf32>
    %164 = arith.truncf %162 : vector<8x8xf32> to vector<8x8xbf16>
    %165 = arith.truncf %163 : vector<8x64xf32> to vector<8x64xbf16>
    %cst_64 = arith.constant dense<0.000000e+00> : vector<8x64xf32>
    %166 = tpu.matmul %164, %165, %cst_64 {dimension_numbers = #tpu.dot_dimension_numbers<[1], [0], [0], [1], [0, 0, 1, 1], [], []>} : vector<8x8xbf16>, vector<8x64xbf16>, vector<8x64xf32> -> vector<8x64xf32>
    %167 = vector.extract_strided_slice %123 {offsets = [64, 0], sizes = [64, 128], strides = [1, 1]} : vector<128x128xbf16> to vector<64x128xbf16>
    %168 = arith.truncf %166 : vector<8x64xf32> to vector<8x64xbf16>
    %cst_65 = arith.constant dense<0.000000e+00> : vector<8x128xf32>
    %169 = tpu.matmul %168, %167, %cst_65 {dimension_numbers = #tpu.dot_dimension_numbers<[1], [0], [0], [1], [0, 0, 1, 1], [], []>} : vector<8x64xbf16>, vector<64x128xbf16>, vector<8x128xf32> -> vector<8x128xf32>
    %170 = arith.addf %146, %169 : vector<8x128xf32>
    %171 = arith.addf %100, %170 : vector<8x128xf32>
    %c1_66 = arith.constant 1 : index
    %c0_67 = arith.constant 0 : index
    %c0_68 = arith.constant 0 : index
    %172 = vector.load %arg6[%c1_66, %c0_67, %c0_68] : memref<2x1x128xf32, #tpu.memory_space<vmem>>, vector<1x1x128xf32>
    %173 = vector.shape_cast %172 : vector<1x1x128xf32> to vector<1x128xf32>
    %174 = arith.mulf %171, %171 : vector<8x128xf32>
    %cst_69 = arith.constant dense<0.000000e+00> : vector<8xf32>
    %175 = vector.multi_reduction <add>, %174, %cst_69 [1] : vector<8x128xf32> to vector<8xf32>
    %176 = vector.shape_cast %175 : vector<8xf32> to vector<8x1xf32>
    %cst_70 = arith.constant 1.280000e+02 : f32
    %177 = vector.broadcast %cst_70 : f32 to vector<8x1xf32>
    %178 = arith.divf %176, %177 : vector<8x1xf32>
    %cst_71 = arith.constant 9.99999997E-7 : f32
    %179 = vector.broadcast %cst_71 : f32 to vector<8x1xf32>
    %180 = arith.addf %178, %179 : vector<8x1xf32>
    %181 = math.rsqrt %180 : vector<8x1xf32>
    %182 = vector.broadcast %181 : vector<8x1xf32> to vector<8x128xf32>
    %183 = arith.mulf %171, %182 : vector<8x128xf32>
    %184 = vector.broadcast %173 : vector<1x128xf32> to vector<8x128xf32>
    %185 = arith.mulf %183, %184 : vector<8x128xf32>
    %c1_72 = arith.constant 1 : index
    %c0_73 = arith.constant 0 : index
    %c0_74 = arith.constant 0 : index
    %186 = vector.load %arg7[%c1_72, %c0_73, %c0_74] : memref<2x128x256xbf16, #tpu.memory_space<vmem>>, vector<1x128x256xbf16>
    %187 = vector.shape_cast %186 : vector<1x128x256xbf16> to vector<128x256xbf16>
    %188 = arith.truncf %185 : vector<8x128xf32> to vector<8x128xbf16>
    %cst_75 = arith.constant dense<0.000000e+00> : vector<8x256xf32>
    %189 = tpu.matmul %188, %187, %cst_75 {dimension_numbers = #tpu.dot_dimension_numbers<[1], [0], [0], [1], [0, 0, 1, 1], [], []>} : vector<8x128xbf16>, vector<128x256xbf16>, vector<8x256xf32> -> vector<8x256xf32>
    %cst_76 = arith.constant 0.000000e+00 : f32
    %190 = vector.broadcast %cst_76 : f32 to vector<8x256xf32>
    %191 = arith.maximumf %189, %190 : vector<8x256xf32>
    %c1_77 = arith.constant 1 : index
    %c0_78 = arith.constant 0 : index
    %c0_79 = arith.constant 0 : index
    %192 = vector.load %arg8[%c1_77, %c0_78, %c0_79] : memref<2x256x128xbf16, #tpu.memory_space<vmem>>, vector<1x256x128xbf16>
    %193 = vector.shape_cast %192 : vector<1x256x128xbf16> to vector<256x128xbf16>
    %194 = arith.truncf %191 : vector<8x256xf32> to vector<8x256xbf16>
    %cst_80 = arith.constant dense<0.000000e+00> : vector<8x128xf32>
    %195 = tpu.matmul %194, %193, %cst_80 {dimension_numbers = #tpu.dot_dimension_numbers<[1], [0], [0], [1], [0, 0, 1, 1], [], []>} : vector<8x256xbf16>, vector<256x128xbf16>, vector<8x128xf32> -> vector<8x128xf32>
    %196 = arith.addf %171, %195 : vector<8x128xf32>
    %c0_81 = arith.constant 0 : index
    %c0_82 = arith.constant 0 : index
    %197 = vector.load %arg9[%c0_81, %c0_82] : memref<1x128xf32, #tpu.memory_space<vmem>>, vector<1x128xf32>
    %198 = arith.mulf %196, %196 : vector<8x128xf32>
    %cst_83 = arith.constant dense<0.000000e+00> : vector<8xf32>
    %199 = vector.multi_reduction <add>, %198, %cst_83 [1] : vector<8x128xf32> to vector<8xf32>
    %200 = vector.shape_cast %199 : vector<8xf32> to vector<8x1xf32>
    %cst_84 = arith.constant 1.280000e+02 : f32
    %201 = vector.broadcast %cst_84 : f32 to vector<8x1xf32>
    %202 = arith.divf %200, %201 : vector<8x1xf32>
    %cst_85 = arith.constant 9.99999997E-7 : f32
    %203 = vector.broadcast %cst_85 : f32 to vector<8x1xf32>
    %204 = arith.addf %202, %203 : vector<8x1xf32>
    %205 = math.rsqrt %204 : vector<8x1xf32>
    %206 = vector.broadcast %205 : vector<8x1xf32> to vector<8x128xf32>
    %207 = arith.mulf %196, %206 : vector<8x128xf32>
    %208 = vector.broadcast %197 : vector<1x128xf32> to vector<8x128xf32>
    %209 = arith.mulf %207, %208 : vector<8x128xf32>
    %c0_86 = arith.constant 0 : index
    %c0_87 = arith.constant 0 : index
    %210 = vector.load %arg1[%c0_86, %c0_87] : memref<1x128xf32, #tpu.memory_space<vmem>>, vector<1x128xf32>
    %c0_88 = arith.constant 0 : index
    %c0_89 = arith.constant 0 : index
    %c0_90 = arith.constant 0 : index
    %211 = vector.load %arg10[%c0_88, %c0_89, %c0_90] : memref<2x1x128xf32, #tpu.memory_space<vmem>>, vector<1x1x128xf32>
    %212 = vector.shape_cast %211 : vector<1x1x128xf32> to vector<1x128xf32>
    %213 = arith.mulf %210, %210 : vector<1x128xf32>
    %cst_91 = arith.constant dense<0.000000e+00> : vector<1xf32>
    %214 = vector.multi_reduction <add>, %213, %cst_91 [1] : vector<1x128xf32> to vector<1xf32>
    %215 = vector.shape_cast %214 : vector<1xf32> to vector<1x1xf32>
    %cst_92 = arith.constant 1.280000e+02 : f32
    %216 = vector.broadcast %cst_92 : f32 to vector<1x1xf32>
    %217 = arith.divf %215, %216 : vector<1x1xf32>
    %cst_93 = arith.constant 9.99999997E-7 : f32
    %218 = vector.broadcast %cst_93 : f32 to vector<1x1xf32>
    %219 = arith.addf %217, %218 : vector<1x1xf32>
    %220 = math.rsqrt %219 : vector<1x1xf32>
    %221 = vector.broadcast %220 : vector<1x1xf32> to vector<1x128xf32>
    %222 = arith.mulf %210, %221 : vector<1x128xf32>
    %223 = arith.mulf %222, %212 : vector<1x128xf32>
    %c0_94 = arith.constant 0 : index
    %c0_95 = arith.constant 0 : index
    %c0_96 = arith.constant 0 : index
    %224 = vector.load %arg11[%c0_94, %c0_95, %c0_96] : memref<2x128x128xbf16, #tpu.memory_space<vmem>>, vector<1x128x128xbf16>
    %225 = vector.shape_cast %224 : vector<1x128x128xbf16> to vector<128x128xbf16>
    %226 = arith.truncf %223 : vector<1x128xf32> to vector<1x128xbf16>
    %cst_97 = arith.constant dense<0.000000e+00> : vector<1x128xf32>
    %227 = tpu.matmul %226, %225, %cst_97 {dimension_numbers = #tpu.dot_dimension_numbers<[1], [0], [0], [1], [0, 0, 1, 1], [], []>} : vector<1x128xbf16>, vector<128x128xbf16>, vector<1x128xf32> -> vector<1x128xf32>
    %c0_98 = arith.constant 0 : index
    %c0_99 = arith.constant 0 : index
    %c0_100 = arith.constant 0 : index
    %228 = vector.load %arg12[%c0_98, %c0_99, %c0_100] : memref<2x128x128xbf16, #tpu.memory_space<vmem>>, vector<1x128x128xbf16>
    %229 = vector.shape_cast %228 : vector<1x128x128xbf16> to vector<128x128xbf16>
    %230 = arith.truncf %227 : vector<1x128xf32> to vector<1x128xbf16>
    %cst_101 = arith.constant dense<0.000000e+00> : vector<1x128xf32>
    %231 = tpu.matmul %230, %229, %cst_101 {dimension_numbers = #tpu.dot_dimension_numbers<[1], [0], [0], [1], [0, 0, 1, 1], [], []>} : vector<1x128xbf16>, vector<128x128xbf16>, vector<1x128xf32> -> vector<1x128xf32>
    %232 = arith.addf %210, %231 : vector<1x128xf32>
    %c0_102 = arith.constant 0 : index
    %c0_103 = arith.constant 0 : index
    %c0_104 = arith.constant 0 : index
    %233 = vector.load %arg13[%c0_102, %c0_103, %c0_104] : memref<2x1x128xf32, #tpu.memory_space<vmem>>, vector<1x1x128xf32>
    %234 = vector.shape_cast %233 : vector<1x1x128xf32> to vector<1x128xf32>
    %235 = arith.mulf %232, %232 : vector<1x128xf32>
    %cst_105 = arith.constant dense<0.000000e+00> : vector<1xf32>
    %236 = vector.multi_reduction <add>, %235, %cst_105 [1] : vector<1x128xf32> to vector<1xf32>
    %237 = vector.shape_cast %236 : vector<1xf32> to vector<1x1xf32>
    %cst_106 = arith.constant 1.280000e+02 : f32
    %238 = vector.broadcast %cst_106 : f32 to vector<1x1xf32>
    %239 = arith.divf %237, %238 : vector<1x1xf32>
    %cst_107 = arith.constant 9.99999997E-7 : f32
    %240 = vector.broadcast %cst_107 : f32 to vector<1x1xf32>
    %241 = arith.addf %239, %240 : vector<1x1xf32>
    %242 = math.rsqrt %241 : vector<1x1xf32>
    %243 = vector.broadcast %242 : vector<1x1xf32> to vector<1x128xf32>
    %244 = arith.mulf %232, %243 : vector<1x128xf32>
    %245 = arith.mulf %244, %234 : vector<1x128xf32>
    %c0_108 = arith.constant 0 : index
    %c0_109 = arith.constant 0 : index
    %c0_110 = arith.constant 0 : index
    %246 = vector.load %arg14[%c0_108, %c0_109, %c0_110] : memref<2x128x128xbf16, #tpu.memory_space<vmem>>, vector<1x128x128xbf16>
    %247 = vector.shape_cast %246 : vector<1x128x128xbf16> to vector<128x128xbf16>
    %248 = arith.truncf %245 : vector<1x128xf32> to vector<1x128xbf16>
    %cst_111 = arith.constant dense<0.000000e+00> : vector<1x128xf32>
    %249 = tpu.matmul %248, %247, %cst_111 {dimension_numbers = #tpu.dot_dimension_numbers<[1], [0], [0], [1], [0, 0, 1, 1], [], []>} : vector<1x128xbf16>, vector<128x128xbf16>, vector<1x128xf32> -> vector<1x128xf32>
    %c0_112 = arith.constant 0 : index
    %c0_113 = arith.constant 0 : index
    %c0_114 = arith.constant 0 : index
    %250 = vector.load %arg15[%c0_112, %c0_113, %c0_114] : memref<2x128x256xbf16, #tpu.memory_space<vmem>>, vector<1x128x256xbf16>
    %251 = vector.shape_cast %250 : vector<1x128x256xbf16> to vector<128x256xbf16>
    %252 = arith.truncf %209 : vector<8x128xf32> to vector<8x128xbf16>
    %cst_115 = arith.constant dense<0.000000e+00> : vector<8x256xf32>
    %253 = tpu.matmul %252, %251, %cst_115 {dimension_numbers = #tpu.dot_dimension_numbers<[1], [0], [0], [1], [0, 0, 1, 1], [], []>} : vector<8x128xbf16>, vector<128x256xbf16>, vector<8x256xf32> -> vector<8x256xf32>
    %254 = vector.extract_strided_slice %253 {offsets = [0, 0], sizes = [8, 128], strides = [1, 1]} : vector<8x256xf32> to vector<8x128xf32>
    %255 = vector.extract_strided_slice %253 {offsets = [0, 128], sizes = [8, 128], strides = [1, 1]} : vector<8x256xf32> to vector<8x128xf32>
    %c0_116 = arith.constant 0 : index
    %c0_117 = arith.constant 0 : index
    %c0_118 = arith.constant 0 : index
    %256 = vector.load %arg16[%c0_116, %c0_117, %c0_118] : memref<2x128x128xbf16, #tpu.memory_space<vmem>>, vector<1x128x128xbf16>
    %257 = vector.shape_cast %256 : vector<1x128x128xbf16> to vector<128x128xbf16>
    %258 = vector.extract_strided_slice %249 {offsets = [0, 0], sizes = [1, 64], strides = [1, 1]} : vector<1x128xf32> to vector<1x64xf32>
    %259 = vector.extract_strided_slice %254 {offsets = [0, 0], sizes = [8, 64], strides = [1, 1]} : vector<8x128xf32> to vector<8x64xf32>
    %260 = arith.truncf %258 : vector<1x64xf32> to vector<1x64xbf16>
    %261 = arith.truncf %259 : vector<8x64xf32> to vector<8x64xbf16>
    %cst_119 = arith.constant dense<0.000000e+00> : vector<1x8xf32>
    %262 = tpu.matmul %260, %261, %cst_119 {dimension_numbers = #tpu.dot_dimension_numbers<[1], [1], [0], [0], [0, 0, 1, 0], [], []>} : vector<1x64xbf16>, vector<8x64xbf16>, vector<1x8xf32> -> vector<1x8xf32>
    %cst_120 = arith.constant dense<0xFF800000> : vector<1xf32>
    %263 = vector.multi_reduction <maximumf>, %262, %cst_120 [1] : vector<1x8xf32> to vector<1xf32>
    %264 = vector.shape_cast %263 : vector<1xf32> to vector<1x1xf32>
    %265 = vector.broadcast %264 : vector<1x1xf32> to vector<1x8xf32>
    %266 = arith.subf %262, %265 : vector<1x8xf32>
    %267 = math.exp %266 : vector<1x8xf32>
    %cst_121 = arith.constant dense<0.000000e+00> : vector<1xf32>
    %268 = vector.multi_reduction <add>, %267, %cst_121 [1] : vector<1x8xf32> to vector<1xf32>
    %269 = vector.shape_cast %268 : vector<1xf32> to vector<1x1xf32>
    %270 = tpu.reciprocal %269 {approx = true} : vector<1x1xf32> -> vector<1x1xf32>
    %271 = vector.broadcast %270 : vector<1x1xf32> to vector<1x8xf32>
    %272 = arith.mulf %267, %271 : vector<1x8xf32>
    %273 = vector.extract_strided_slice %255 {offsets = [0, 0], sizes = [8, 64], strides = [1, 1]} : vector<8x128xf32> to vector<8x64xf32>
    %274 = arith.truncf %272 : vector<1x8xf32> to vector<1x8xbf16>
    %275 = arith.truncf %273 : vector<8x64xf32> to vector<8x64xbf16>
    %cst_122 = arith.constant dense<0.000000e+00> : vector<1x64xf32>
    %276 = tpu.matmul %274, %275, %cst_122 {dimension_numbers = #tpu.dot_dimension_numbers<[1], [0], [0], [1], [0, 0, 1, 1], [], []>} : vector<1x8xbf16>, vector<8x64xbf16>, vector<1x64xf32> -> vector<1x64xf32>
    %277 = vector.extract_strided_slice %257 {offsets = [0, 0], sizes = [64, 128], strides = [1, 1]} : vector<128x128xbf16> to vector<64x128xbf16>
    %278 = arith.truncf %276 : vector<1x64xf32> to vector<1x64xbf16>
    %cst_123 = arith.constant dense<0.000000e+00> : vector<1x128xf32>
    %279 = tpu.matmul %278, %277, %cst_123 {dimension_numbers = #tpu.dot_dimension_numbers<[1], [0], [0], [1], [0, 0, 1, 1], [], []>} : vector<1x64xbf16>, vector<64x128xbf16>, vector<1x128xf32> -> vector<1x128xf32>
    %280 = vector.extract_strided_slice %249 {offsets = [0, 64], sizes = [1, 64], strides = [1, 1]} : vector<1x128xf32> to vector<1x64xf32>
    %281 = vector.extract_strided_slice %254 {offsets = [0, 64], sizes = [8, 64], strides = [1, 1]} : vector<8x128xf32> to vector<8x64xf32>
    %282 = arith.truncf %280 : vector<1x64xf32> to vector<1x64xbf16>
    %283 = arith.truncf %281 : vector<8x64xf32> to vector<8x64xbf16>
    %cst_124 = arith.constant dense<0.000000e+00> : vector<1x8xf32>
    %284 = tpu.matmul %282, %283, %cst_124 {dimension_numbers = #tpu.dot_dimension_numbers<[1], [1], [0], [0], [0, 0, 1, 0], [], []>} : vector<1x64xbf16>, vector<8x64xbf16>, vector<1x8xf32> -> vector<1x8xf32>
    %cst_125 = arith.constant dense<0xFF800000> : vector<1xf32>
    %285 = vector.multi_reduction <maximumf>, %284, %cst_125 [1] : vector<1x8xf32> to vector<1xf32>
    %286 = vector.shape_cast %285 : vector<1xf32> to vector<1x1xf32>
    %287 = vector.broadcast %286 : vector<1x1xf32> to vector<1x8xf32>
    %288 = arith.subf %284, %287 : vector<1x8xf32>
    %289 = math.exp %288 : vector<1x8xf32>
    %cst_126 = arith.constant dense<0.000000e+00> : vector<1xf32>
    %290 = vector.multi_reduction <add>, %289, %cst_126 [1] : vector<1x8xf32> to vector<1xf32>
    %291 = vector.shape_cast %290 : vector<1xf32> to vector<1x1xf32>
    %292 = tpu.reciprocal %291 {approx = true} : vector<1x1xf32> -> vector<1x1xf32>
    %293 = vector.broadcast %292 : vector<1x1xf32> to vector<1x8xf32>
    %294 = arith.mulf %289, %293 : vector<1x8xf32>
    %295 = vector.extract_strided_slice %255 {offsets = [0, 64], sizes = [8, 64], strides = [1, 1]} : vector<8x128xf32> to vector<8x64xf32>
    %296 = arith.truncf %294 : vector<1x8xf32> to vector<1x8xbf16>
    %297 = arith.truncf %295 : vector<8x64xf32> to vector<8x64xbf16>
    %cst_127 = arith.constant dense<0.000000e+00> : vector<1x64xf32>
    %298 = tpu.matmul %296, %297, %cst_127 {dimension_numbers = #tpu.dot_dimension_numbers<[1], [0], [0], [1], [0, 0, 1, 1], [], []>} : vector<1x8xbf16>, vector<8x64xbf16>, vector<1x64xf32> -> vector<1x64xf32>
    %299 = vector.extract_strided_slice %257 {offsets = [64, 0], sizes = [64, 128], strides = [1, 1]} : vector<128x128xbf16> to vector<64x128xbf16>
    %300 = arith.truncf %298 : vector<1x64xf32> to vector<1x64xbf16>
    %cst_128 = arith.constant dense<0.000000e+00> : vector<1x128xf32>
    %301 = tpu.matmul %300, %299, %cst_128 {dimension_numbers = #tpu.dot_dimension_numbers<[1], [0], [0], [1], [0, 0, 1, 1], [], []>} : vector<1x64xbf16>, vector<64x128xbf16>, vector<1x128xf32> -> vector<1x128xf32>
    %302 = arith.addf %279, %301 : vector<1x128xf32>
    %303 = arith.addf %232, %302 : vector<1x128xf32>
    %c0_129 = arith.constant 0 : index
    %c0_130 = arith.constant 0 : index
    %c0_131 = arith.constant 0 : index
    %304 = vector.load %arg17[%c0_129, %c0_130, %c0_131] : memref<2x1x128xf32, #tpu.memory_space<vmem>>, vector<1x1x128xf32>
    %305 = vector.shape_cast %304 : vector<1x1x128xf32> to vector<1x128xf32>
    %306 = arith.mulf %303, %303 : vector<1x128xf32>
    %cst_132 = arith.constant dense<0.000000e+00> : vector<1xf32>
    %307 = vector.multi_reduction <add>, %306, %cst_132 [1] : vector<1x128xf32> to vector<1xf32>
    %308 = vector.shape_cast %307 : vector<1xf32> to vector<1x1xf32>
    %cst_133 = arith.constant 1.280000e+02 : f32
    %309 = vector.broadcast %cst_133 : f32 to vector<1x1xf32>
    %310 = arith.divf %308, %309 : vector<1x1xf32>
    %cst_134 = arith.constant 9.99999997E-7 : f32
    %311 = vector.broadcast %cst_134 : f32 to vector<1x1xf32>
    %312 = arith.addf %310, %311 : vector<1x1xf32>
    %313 = math.rsqrt %312 : vector<1x1xf32>
    %314 = vector.broadcast %313 : vector<1x1xf32> to vector<1x128xf32>
    %315 = arith.mulf %303, %314 : vector<1x128xf32>
    %316 = arith.mulf %315, %305 : vector<1x128xf32>
    %c0_135 = arith.constant 0 : index
    %c0_136 = arith.constant 0 : index
    %c0_137 = arith.constant 0 : index
    %317 = vector.load %arg18[%c0_135, %c0_136, %c0_137] : memref<2x128x256xbf16, #tpu.memory_space<vmem>>, vector<1x128x256xbf16>
    %318 = vector.shape_cast %317 : vector<1x128x256xbf16> to vector<128x256xbf16>
    %319 = arith.truncf %316 : vector<1x128xf32> to vector<1x128xbf16>
    %cst_138 = arith.constant dense<0.000000e+00> : vector<1x256xf32>
    %320 = tpu.matmul %319, %318, %cst_138 {dimension_numbers = #tpu.dot_dimension_numbers<[1], [0], [0], [1], [0, 0, 1, 1], [], []>} : vector<1x128xbf16>, vector<128x256xbf16>, vector<1x256xf32> -> vector<1x256xf32>
    %cst_139 = arith.constant 0.000000e+00 : f32
    %321 = vector.broadcast %cst_139 : f32 to vector<1x256xf32>
    %322 = arith.maximumf %320, %321 : vector<1x256xf32>
    %c0_140 = arith.constant 0 : index
    %c0_141 = arith.constant 0 : index
    %c0_142 = arith.constant 0 : index
    %323 = vector.load %arg19[%c0_140, %c0_141, %c0_142] : memref<2x256x128xbf16, #tpu.memory_space<vmem>>, vector<1x256x128xbf16>
    %324 = vector.shape_cast %323 : vector<1x256x128xbf16> to vector<256x128xbf16>
    %325 = arith.truncf %322 : vector<1x256xf32> to vector<1x256xbf16>
    %cst_143 = arith.constant dense<0.000000e+00> : vector<1x128xf32>
    %326 = tpu.matmul %325, %324, %cst_143 {dimension_numbers = #tpu.dot_dimension_numbers<[1], [0], [0], [1], [0, 0, 1, 1], [], []>} : vector<1x256xbf16>, vector<256x128xbf16>, vector<1x128xf32> -> vector<1x128xf32>
    %327 = arith.addf %303, %326 : vector<1x128xf32>
    %c1_144 = arith.constant 1 : index
    %c0_145 = arith.constant 0 : index
    %c0_146 = arith.constant 0 : index
    %328 = vector.load %arg10[%c1_144, %c0_145, %c0_146] : memref<2x1x128xf32, #tpu.memory_space<vmem>>, vector<1x1x128xf32>
    %329 = vector.shape_cast %328 : vector<1x1x128xf32> to vector<1x128xf32>
    %330 = arith.mulf %327, %327 : vector<1x128xf32>
    %cst_147 = arith.constant dense<0.000000e+00> : vector<1xf32>
    %331 = vector.multi_reduction <add>, %330, %cst_147 [1] : vector<1x128xf32> to vector<1xf32>
    %332 = vector.shape_cast %331 : vector<1xf32> to vector<1x1xf32>
    %cst_148 = arith.constant 1.280000e+02 : f32
    %333 = vector.broadcast %cst_148 : f32 to vector<1x1xf32>
    %334 = arith.divf %332, %333 : vector<1x1xf32>
    %cst_149 = arith.constant 9.99999997E-7 : f32
    %335 = vector.broadcast %cst_149 : f32 to vector<1x1xf32>
    %336 = arith.addf %334, %335 : vector<1x1xf32>
    %337 = math.rsqrt %336 : vector<1x1xf32>
    %338 = vector.broadcast %337 : vector<1x1xf32> to vector<1x128xf32>
    %339 = arith.mulf %327, %338 : vector<1x128xf32>
    %340 = arith.mulf %339, %329 : vector<1x128xf32>
    %c1_150 = arith.constant 1 : index
    %c0_151 = arith.constant 0 : index
    %c0_152 = arith.constant 0 : index
    %341 = vector.load %arg11[%c1_150, %c0_151, %c0_152] : memref<2x128x128xbf16, #tpu.memory_space<vmem>>, vector<1x128x128xbf16>
    %342 = vector.shape_cast %341 : vector<1x128x128xbf16> to vector<128x128xbf16>
    %343 = arith.truncf %340 : vector<1x128xf32> to vector<1x128xbf16>
    %cst_153 = arith.constant dense<0.000000e+00> : vector<1x128xf32>
    %344 = tpu.matmul %343, %342, %cst_153 {dimension_numbers = #tpu.dot_dimension_numbers<[1], [0], [0], [1], [0, 0, 1, 1], [], []>} : vector<1x128xbf16>, vector<128x128xbf16>, vector<1x128xf32> -> vector<1x128xf32>
    %c1_154 = arith.constant 1 : index
    %c0_155 = arith.constant 0 : index
    %c0_156 = arith.constant 0 : index
    %345 = vector.load %arg12[%c1_154, %c0_155, %c0_156] : memref<2x128x128xbf16, #tpu.memory_space<vmem>>, vector<1x128x128xbf16>
    %346 = vector.shape_cast %345 : vector<1x128x128xbf16> to vector<128x128xbf16>
    %347 = arith.truncf %344 : vector<1x128xf32> to vector<1x128xbf16>
    %cst_157 = arith.constant dense<0.000000e+00> : vector<1x128xf32>
    %348 = tpu.matmul %347, %346, %cst_157 {dimension_numbers = #tpu.dot_dimension_numbers<[1], [0], [0], [1], [0, 0, 1, 1], [], []>} : vector<1x128xbf16>, vector<128x128xbf16>, vector<1x128xf32> -> vector<1x128xf32>
    %349 = arith.addf %327, %348 : vector<1x128xf32>
    %c1_158 = arith.constant 1 : index
    %c0_159 = arith.constant 0 : index
    %c0_160 = arith.constant 0 : index
    %350 = vector.load %arg13[%c1_158, %c0_159, %c0_160] : memref<2x1x128xf32, #tpu.memory_space<vmem>>, vector<1x1x128xf32>
    %351 = vector.shape_cast %350 : vector<1x1x128xf32> to vector<1x128xf32>
    %352 = arith.mulf %349, %349 : vector<1x128xf32>
    %cst_161 = arith.constant dense<0.000000e+00> : vector<1xf32>
    %353 = vector.multi_reduction <add>, %352, %cst_161 [1] : vector<1x128xf32> to vector<1xf32>
    %354 = vector.shape_cast %353 : vector<1xf32> to vector<1x1xf32>
    %cst_162 = arith.constant 1.280000e+02 : f32
    %355 = vector.broadcast %cst_162 : f32 to vector<1x1xf32>
    %356 = arith.divf %354, %355 : vector<1x1xf32>
    %cst_163 = arith.constant 9.99999997E-7 : f32
    %357 = vector.broadcast %cst_163 : f32 to vector<1x1xf32>
    %358 = arith.addf %356, %357 : vector<1x1xf32>
    %359 = math.rsqrt %358 : vector<1x1xf32>
    %360 = vector.broadcast %359 : vector<1x1xf32> to vector<1x128xf32>
    %361 = arith.mulf %349, %360 : vector<1x128xf32>
    %362 = arith.mulf %361, %351 : vector<1x128xf32>
    %c1_164 = arith.constant 1 : index
    %c0_165 = arith.constant 0 : index
    %c0_166 = arith.constant 0 : index
    %363 = vector.load %arg14[%c1_164, %c0_165, %c0_166] : memref<2x128x128xbf16, #tpu.memory_space<vmem>>, vector<1x128x128xbf16>
    %364 = vector.shape_cast %363 : vector<1x128x128xbf16> to vector<128x128xbf16>
    %365 = arith.truncf %362 : vector<1x128xf32> to vector<1x128xbf16>
    %cst_167 = arith.constant dense<0.000000e+00> : vector<1x128xf32>
    %366 = tpu.matmul %365, %364, %cst_167 {dimension_numbers = #tpu.dot_dimension_numbers<[1], [0], [0], [1], [0, 0, 1, 1], [], []>} : vector<1x128xbf16>, vector<128x128xbf16>, vector<1x128xf32> -> vector<1x128xf32>
    %c1_168 = arith.constant 1 : index
    %c0_169 = arith.constant 0 : index
    %c0_170 = arith.constant 0 : index
    %367 = vector.load %arg15[%c1_168, %c0_169, %c0_170] : memref<2x128x256xbf16, #tpu.memory_space<vmem>>, vector<1x128x256xbf16>
    %368 = vector.shape_cast %367 : vector<1x128x256xbf16> to vector<128x256xbf16>
    %369 = arith.truncf %209 : vector<8x128xf32> to vector<8x128xbf16>
    %cst_171 = arith.constant dense<0.000000e+00> : vector<8x256xf32>
    %370 = tpu.matmul %369, %368, %cst_171 {dimension_numbers = #tpu.dot_dimension_numbers<[1], [0], [0], [1], [0, 0, 1, 1], [], []>} : vector<8x128xbf16>, vector<128x256xbf16>, vector<8x256xf32> -> vector<8x256xf32>
    %371 = vector.extract_strided_slice %370 {offsets = [0, 0], sizes = [8, 128], strides = [1, 1]} : vector<8x256xf32> to vector<8x128xf32>
    %372 = vector.extract_strided_slice %370 {offsets = [0, 128], sizes = [8, 128], strides = [1, 1]} : vector<8x256xf32> to vector<8x128xf32>
    %c1_172 = arith.constant 1 : index
    %c0_173 = arith.constant 0 : index
    %c0_174 = arith.constant 0 : index
    %373 = vector.load %arg16[%c1_172, %c0_173, %c0_174] : memref<2x128x128xbf16, #tpu.memory_space<vmem>>, vector<1x128x128xbf16>
    %374 = vector.shape_cast %373 : vector<1x128x128xbf16> to vector<128x128xbf16>
    %375 = vector.extract_strided_slice %366 {offsets = [0, 0], sizes = [1, 64], strides = [1, 1]} : vector<1x128xf32> to vector<1x64xf32>
    %376 = vector.extract_strided_slice %371 {offsets = [0, 0], sizes = [8, 64], strides = [1, 1]} : vector<8x128xf32> to vector<8x64xf32>
    %377 = arith.truncf %375 : vector<1x64xf32> to vector<1x64xbf16>
    %378 = arith.truncf %376 : vector<8x64xf32> to vector<8x64xbf16>
    %cst_175 = arith.constant dense<0.000000e+00> : vector<1x8xf32>
    %379 = tpu.matmul %377, %378, %cst_175 {dimension_numbers = #tpu.dot_dimension_numbers<[1], [1], [0], [0], [0, 0, 1, 0], [], []>} : vector<1x64xbf16>, vector<8x64xbf16>, vector<1x8xf32> -> vector<1x8xf32>
    %cst_176 = arith.constant dense<0xFF800000> : vector<1xf32>
    %380 = vector.multi_reduction <maximumf>, %379, %cst_176 [1] : vector<1x8xf32> to vector<1xf32>
    %381 = vector.shape_cast %380 : vector<1xf32> to vector<1x1xf32>
    %382 = vector.broadcast %381 : vector<1x1xf32> to vector<1x8xf32>
    %383 = arith.subf %379, %382 : vector<1x8xf32>
    %384 = math.exp %383 : vector<1x8xf32>
    %cst_177 = arith.constant dense<0.000000e+00> : vector<1xf32>
    %385 = vector.multi_reduction <add>, %384, %cst_177 [1] : vector<1x8xf32> to vector<1xf32>
    %386 = vector.shape_cast %385 : vector<1xf32> to vector<1x1xf32>
    %387 = tpu.reciprocal %386 {approx = true} : vector<1x1xf32> -> vector<1x1xf32>
    %388 = vector.broadcast %387 : vector<1x1xf32> to vector<1x8xf32>
    %389 = arith.mulf %384, %388 : vector<1x8xf32>
    %390 = vector.extract_strided_slice %372 {offsets = [0, 0], sizes = [8, 64], strides = [1, 1]} : vector<8x128xf32> to vector<8x64xf32>
    %391 = arith.truncf %389 : vector<1x8xf32> to vector<1x8xbf16>
    %392 = arith.truncf %390 : vector<8x64xf32> to vector<8x64xbf16>
    %cst_178 = arith.constant dense<0.000000e+00> : vector<1x64xf32>
    %393 = tpu.matmul %391, %392, %cst_178 {dimension_numbers = #tpu.dot_dimension_numbers<[1], [0], [0], [1], [0, 0, 1, 1], [], []>} : vector<1x8xbf16>, vector<8x64xbf16>, vector<1x64xf32> -> vector<1x64xf32>
    %394 = vector.extract_strided_slice %374 {offsets = [0, 0], sizes = [64, 128], strides = [1, 1]} : vector<128x128xbf16> to vector<64x128xbf16>
    %395 = arith.truncf %393 : vector<1x64xf32> to vector<1x64xbf16>
    %cst_179 = arith.constant dense<0.000000e+00> : vector<1x128xf32>
    %396 = tpu.matmul %395, %394, %cst_179 {dimension_numbers = #tpu.dot_dimension_numbers<[1], [0], [0], [1], [0, 0, 1, 1], [], []>} : vector<1x64xbf16>, vector<64x128xbf16>, vector<1x128xf32> -> vector<1x128xf32>
    %397 = vector.extract_strided_slice %366 {offsets = [0, 64], sizes = [1, 64], strides = [1, 1]} : vector<1x128xf32> to vector<1x64xf32>
    %398 = vector.extract_strided_slice %371 {offsets = [0, 64], sizes = [8, 64], strides = [1, 1]} : vector<8x128xf32> to vector<8x64xf32>
    %399 = arith.truncf %397 : vector<1x64xf32> to vector<1x64xbf16>
    %400 = arith.truncf %398 : vector<8x64xf32> to vector<8x64xbf16>
    %cst_180 = arith.constant dense<0.000000e+00> : vector<1x8xf32>
    %401 = tpu.matmul %399, %400, %cst_180 {dimension_numbers = #tpu.dot_dimension_numbers<[1], [1], [0], [0], [0, 0, 1, 0], [], []>} : vector<1x64xbf16>, vector<8x64xbf16>, vector<1x8xf32> -> vector<1x8xf32>
    %cst_181 = arith.constant dense<0xFF800000> : vector<1xf32>
    %402 = vector.multi_reduction <maximumf>, %401, %cst_181 [1] : vector<1x8xf32> to vector<1xf32>
    %403 = vector.shape_cast %402 : vector<1xf32> to vector<1x1xf32>
    %404 = vector.broadcast %403 : vector<1x1xf32> to vector<1x8xf32>
    %405 = arith.subf %401, %404 : vector<1x8xf32>
    %406 = math.exp %405 : vector<1x8xf32>
    %cst_182 = arith.constant dense<0.000000e+00> : vector<1xf32>
    %407 = vector.multi_reduction <add>, %406, %cst_182 [1] : vector<1x8xf32> to vector<1xf32>
    %408 = vector.shape_cast %407 : vector<1xf32> to vector<1x1xf32>
    %409 = tpu.reciprocal %408 {approx = true} : vector<1x1xf32> -> vector<1x1xf32>
    %410 = vector.broadcast %409 : vector<1x1xf32> to vector<1x8xf32>
    %411 = arith.mulf %406, %410 : vector<1x8xf32>
    %412 = vector.extract_strided_slice %372 {offsets = [0, 64], sizes = [8, 64], strides = [1, 1]} : vector<8x128xf32> to vector<8x64xf32>
    %413 = arith.truncf %411 : vector<1x8xf32> to vector<1x8xbf16>
    %414 = arith.truncf %412 : vector<8x64xf32> to vector<8x64xbf16>
    %cst_183 = arith.constant dense<0.000000e+00> : vector<1x64xf32>
    %415 = tpu.matmul %413, %414, %cst_183 {dimension_numbers = #tpu.dot_dimension_numbers<[1], [0], [0], [1], [0, 0, 1, 1], [], []>} : vector<1x8xbf16>, vector<8x64xbf16>, vector<1x64xf32> -> vector<1x64xf32>
    %416 = vector.extract_strided_slice %374 {offsets = [64, 0], sizes = [64, 128], strides = [1, 1]} : vector<128x128xbf16> to vector<64x128xbf16>
    %417 = arith.truncf %415 : vector<1x64xf32> to vector<1x64xbf16>
    %cst_184 = arith.constant dense<0.000000e+00> : vector<1x128xf32>
    %418 = tpu.matmul %417, %416, %cst_184 {dimension_numbers = #tpu.dot_dimension_numbers<[1], [0], [0], [1], [0, 0, 1, 1], [], []>} : vector<1x64xbf16>, vector<64x128xbf16>, vector<1x128xf32> -> vector<1x128xf32>
    %419 = arith.addf %396, %418 : vector<1x128xf32>
    %420 = arith.addf %349, %419 : vector<1x128xf32>
    %c1_185 = arith.constant 1 : index
    %c0_186 = arith.constant 0 : index
    %c0_187 = arith.constant 0 : index
    %421 = vector.load %arg17[%c1_185, %c0_186, %c0_187] : memref<2x1x128xf32, #tpu.memory_space<vmem>>, vector<1x1x128xf32>
    %422 = vector.shape_cast %421 : vector<1x1x128xf32> to vector<1x128xf32>
    %423 = arith.mulf %420, %420 : vector<1x128xf32>
    %cst_188 = arith.constant dense<0.000000e+00> : vector<1xf32>
    %424 = vector.multi_reduction <add>, %423, %cst_188 [1] : vector<1x128xf32> to vector<1xf32>
    %425 = vector.shape_cast %424 : vector<1xf32> to vector<1x1xf32>
    %cst_189 = arith.constant 1.280000e+02 : f32
    %426 = vector.broadcast %cst_189 : f32 to vector<1x1xf32>
    %427 = arith.divf %425, %426 : vector<1x1xf32>
    %cst_190 = arith.constant 9.99999997E-7 : f32
    %428 = vector.broadcast %cst_190 : f32 to vector<1x1xf32>
    %429 = arith.addf %427, %428 : vector<1x1xf32>
    %430 = math.rsqrt %429 : vector<1x1xf32>
    %431 = vector.broadcast %430 : vector<1x1xf32> to vector<1x128xf32>
    %432 = arith.mulf %420, %431 : vector<1x128xf32>
    %433 = arith.mulf %432, %422 : vector<1x128xf32>
    %c1_191 = arith.constant 1 : index
    %c0_192 = arith.constant 0 : index
    %c0_193 = arith.constant 0 : index
    %434 = vector.load %arg18[%c1_191, %c0_192, %c0_193] : memref<2x128x256xbf16, #tpu.memory_space<vmem>>, vector<1x128x256xbf16>
    %435 = vector.shape_cast %434 : vector<1x128x256xbf16> to vector<128x256xbf16>
    %436 = arith.truncf %433 : vector<1x128xf32> to vector<1x128xbf16>
    %cst_194 = arith.constant dense<0.000000e+00> : vector<1x256xf32>
    %437 = tpu.matmul %436, %435, %cst_194 {dimension_numbers = #tpu.dot_dimension_numbers<[1], [0], [0], [1], [0, 0, 1, 1], [], []>} : vector<1x128xbf16>, vector<128x256xbf16>, vector<1x256xf32> -> vector<1x256xf32>
    %cst_195 = arith.constant 0.000000e+00 : f32
    %438 = vector.broadcast %cst_195 : f32 to vector<1x256xf32>
    %439 = arith.maximumf %437, %438 : vector<1x256xf32>
    %c1_196 = arith.constant 1 : index
    %c0_197 = arith.constant 0 : index
    %c0_198 = arith.constant 0 : index
    %440 = vector.load %arg19[%c1_196, %c0_197, %c0_198] : memref<2x256x128xbf16, #tpu.memory_space<vmem>>, vector<1x256x128xbf16>
    %441 = vector.shape_cast %440 : vector<1x256x128xbf16> to vector<256x128xbf16>
    %442 = arith.truncf %439 : vector<1x256xf32> to vector<1x256xbf16>
    %cst_199 = arith.constant dense<0.000000e+00> : vector<1x128xf32>
    %443 = tpu.matmul %442, %441, %cst_199 {dimension_numbers = #tpu.dot_dimension_numbers<[1], [0], [0], [1], [0, 0, 1, 1], [], []>} : vector<1x256xbf16>, vector<256x128xbf16>, vector<1x128xf32> -> vector<1x128xf32>
    %444 = arith.addf %420, %443 : vector<1x128xf32>
    %c0_200 = arith.constant 0 : index
    %c0_201 = arith.constant 0 : index
    %445 = vector.load %arg20[%c0_200, %c0_201] : memref<1x128xf32, #tpu.memory_space<vmem>>, vector<1x128xf32>
    %446 = arith.mulf %444, %444 : vector<1x128xf32>
    %cst_202 = arith.constant dense<0.000000e+00> : vector<1xf32>
    %447 = vector.multi_reduction <add>, %446, %cst_202 [1] : vector<1x128xf32> to vector<1xf32>
    %448 = vector.shape_cast %447 : vector<1xf32> to vector<1x1xf32>
    %cst_203 = arith.constant 1.280000e+02 : f32
    %449 = vector.broadcast %cst_203 : f32 to vector<1x1xf32>
    %450 = arith.divf %448, %449 : vector<1x1xf32>
    %cst_204 = arith.constant 9.99999997E-7 : f32
    %451 = vector.broadcast %cst_204 : f32 to vector<1x1xf32>
    %452 = arith.addf %450, %451 : vector<1x1xf32>
    %453 = math.rsqrt %452 : vector<1x1xf32>
    %454 = vector.broadcast %453 : vector<1x1xf32> to vector<1x128xf32>
    %455 = arith.mulf %444, %454 : vector<1x128xf32>
    %456 = arith.mulf %455, %445 : vector<1x128xf32>
    %c0_205 = arith.constant 0 : index
    %c0_206 = arith.constant 0 : index
    %457 = vector.load %arg21[%c0_205, %c0_206] : memref<2x128xbf16, #tpu.memory_space<vmem>>, vector<2x128xbf16>
    %458 = arith.truncf %456 : vector<1x128xf32> to vector<1x128xbf16>
    %cst_207 = arith.constant dense<0.000000e+00> : vector<1x2xf32>
    %459 = tpu.matmul %458, %457, %cst_207 {dimension_numbers = #tpu.dot_dimension_numbers<[1], [1], [0], [0], [0, 0, 1, 0], [], []>} : vector<1x128xbf16>, vector<2x128xbf16>, vector<1x2xf32> -> vector<1x2xf32>
    %cst_208 = arith.constant 0.0883883461 : f32
    %460 = vector.broadcast %cst_208 : f32 to vector<1x2xf32>
    %461 = arith.mulf %459, %460 : vector<1x2xf32>
    %cst_209 = arith.constant dense<0xFF800000> : vector<1xf32>
    %462 = vector.multi_reduction <maximumf>, %461, %cst_209 [1] : vector<1x2xf32> to vector<1xf32>
    %463 = vector.shape_cast %462 : vector<1xf32> to vector<1x1xf32>
    %464 = vector.broadcast %463 : vector<1x1xf32> to vector<1x2xf32>
    %465 = arith.subf %461, %464 : vector<1x2xf32>
    %466 = math.exp %465 : vector<1x2xf32>
    %cst_210 = arith.constant dense<0.000000e+00> : vector<1xf32>
    %467 = vector.multi_reduction <add>, %466, %cst_210 [1] : vector<1x2xf32> to vector<1xf32>
    %468 = vector.shape_cast %467 : vector<1xf32> to vector<1x1xf32>
    %469 = vector.broadcast %468 : vector<1x1xf32> to vector<1x2xf32>
    %470 = arith.divf %466, %469 : vector<1x2xf32>
    %c0_211 = arith.constant 0 : index
    %c0_212 = arith.constant 0 : index
    %471 = vector.load %arg22[%c0_211, %c0_212] : memref<1x2xf32, #tpu.memory_space<vmem>>, vector<1x2xf32>
    tpu.vector_store %arg22[%c0_211, %c0_212], %470 {strides = array<i32>} : memref<1x2xf32, #tpu.memory_space<vmem>>, vector<1x2xf32>,
    return
  }
}

</mosaic_0001>

<bundles_post_ra>
// kernel: relevance_forward.1
= control target key start
LH: loop header
LB: loop body
LE: loop exit
PB: predicated region body
PF: predicated region fallthrough
CT: control target
= control target key end

     0   :  { %s7270_s0 = inlined_call_operand.vmem [shape: f32[8,128], index: 0, kind: input, shape index: {}]   ;;  %s7271_s1 = inlined_call_operand.vmem [shape: f32[1,128], index: 1, kind: input, shape index: {}]   ;;  %s7272_s2 = inlined_call_operand.vmem [shape: f32[2,8,8], index: 2, kind: input, shape index: {}]   ;;  %s7273_s3 = inlined_call_operand.hbm [shape: f32[2,1,128], index: 3, kind: input, shape index: {}]   ;;  %s7274_s4 = inlined_call_operand.hbm [shape: bf16[2,128,384], index: 4, kind: input, shape index: {}]   ;;  %s7275_s5 = inlined_call_operand.hbm [shape: bf16[2,128,128], index: 5, kind: input, shape index: {}]   ;;  %s7276_s6 = inlined_call_operand.hbm [shape: f32[2,1,128], index: 6, kind: input, shape index: {}]   ;;  %s7277_s7 = inlined_call_operand.hbm [shape: bf16[2,128,256], index: 7, kind: input, shape index: {}]   ;;  %s7278_s8 = inlined_call_operand.hbm [shape: bf16[2,256,128], index: 8, kind: input, shape index: {}]   ;;  %s7279_s9 = inlined_call_operand.hbm [shape: f32[1,128], index: 9, kind: input, shape index: {}]   ;;  %s7280_s10 = inlined_call_operand.hbm [shape: f32[2,1,128], index: 10, kind: input, shape index: {}]   ;;  %s7281_s11 = inlined_call_operand.hbm [shape: bf16[2,128,128], index: 11, kind: input, shape index: {}]   ;;  %s7282_s12 = inlined_call_operand.hbm [shape: bf16[2,128,128], index: 12, kind: input, shape index: {}]   ;;  %s7283_s13 = inlined_call_operand.hbm [shape: f32[2,1,128], index: 13, kind: input, shape index: {}]   ;;  %s7284_s14 = inlined_call_operand.hbm [shape: bf16[2,128,128], index: 14, kind: input, shape index: {}]   ;;  %s7285_s15 = inlined_call_operand.hbm [shape: bf16[2,128,256], index: 15, kind: input, shape index: {}]   ;;  %s7286_s16 = inlined_call_operand.hbm [shape: bf16[2,128,128], index: 16, kind: input, shape index: {}]   ;;  %s7287_s17 = inlined_call_operand.hbm [shape: f32[2,1,128], index: 17, kind: input, shape index: {}]   ;;  %s7288_s18 = inlined_call_operand.hbm [shape: bf16[2,128,256], index: 18, kind: input, shape index: {}]   ;;  %s7289_s19 = inlined_call_operand.hbm [shape: bf16[2,256,128], index: 19, kind: input, shape index: {}]   ;;  %s7290_s20 = inlined_call_operand.hbm [shape: f32[1,128], index: 20, kind: input, shape index: {}]   ;;  %s7291_s21 = inlined_call_operand.vmem [shape: bf16[2,128], index: 21, kind: input, shape index: {}]   ;;  %s7292_s22 = inlined_call_operand.hbm [shape: f32[1,2], index: 22, kind: output, shape index: {}]  }
   0x1   :  { %7300 = sst [smem:[#allocation43_spill]] %s7270_s0 }
   0x2   :  { %7301 = sst [smem:[#allocation44_spill]] %s7271_s1 }
   0x3   :  { %7302 = sst [smem:[#allocation45_spill]] %s7272_s2 }
   0x4   :  { %7303 = sst [smem:[#allocation46_spill]] %s7273_s3 }
   0x5   :  { %7304 = sst [smem:[#allocation47_spill]] %s7274_s4 }
   0x6   :  { %7305 = sst [smem:[#allocation48_spill]] %s7275_s5 }
   0x7   :  { %7306 = sst [smem:[#allocation49_spill]] %s7276_s6 }
   0x8   :  { %7307 = sst [smem:[#allocation50_spill]] %s7291_s21 }
   0x9   :  { %7308 = sst [smem:[#allocation51_spill]] %s7292_s22 }
   0xa   :  { %27 = vsyncpa [#allocation3], 0 }
   0xb   :  { %28 = vsyncpa [#allocation6], 0 }
   0xc   :  { %29 = vsyncpa [#allocation9], 0 }
   0xd   :  { %30 = vsyncpa [#allocation12], 0 }
   0xe   :  { %31 = vsyncpa [#allocation15], 0 }
   0xf   :  { %32 = vsyncpa [#allocation18], 0 }
  0x10   :  { %33 = vsyncpa [#allocation21], 0 }
  0x11   :  { %34 = vsyncpa [#allocation24], 0 }
  0x12   :  { %35 = vsyncpa [#allocation27], 0 }
  0x13   :  { %36 = vsyncpa [#allocation30], 0 }
  0x14   :  { %37 = vsyncpa [#allocation4], 0  ;;  %s6485_s3 = smov [#allocation5]   ;;  %s7309_s4 = sld [smem:[#allocation47_spill]] }
  0x15   :  { %s61_s28 = sshll.u32 %s6485_s3, 4  ;;  %s62_s28 = int_to_ptr.vmem [resolvable:$true] %s61_s28 }
  0x1a   :  { %s6045_s0 = scalar_lea.hbm %s7309_s4, 6144 }
  0x1b   :  { %p6046_p0 = scmp.ne.s32.totalorder %s7309_s4, %s6045_s0  ;;  %p6049_p1 = scmp.lt.u32.totalorder %s6045_s0, %s7309_s4 }
  0x1d   :  { %p6051_p2 = pnand %p6049_p1, %p6046_p0 }
  0x1f   :  { %6054 = shalt.err (!%p6051_p2)
}
  0x20   :  { %s6055_s6 = scalar_lea.vmem %s62_s28, 6144  ;;  %p6060_p4 = scmp.lt.s32.totalorder %s62_s28, %s62_s28 }
  0x21   :  { %p6056_p3 = scmp.ne.s32.totalorder %s62_s28, %s6055_s6  ;;  %p6061_p5 = scmp.lt.s32.totalorder %s6055_s6, %s6055_s6 }
  0x23   :  { %p6062_p6 = por %p6061_p5, %p6060_p4 }
  0x25   :  { %p6063_p7 = pnand %p6062_p6, %p6056_p3 }
  0x27   :  { %6066 = shalt.err (!%p6063_p7)
}
  0x28   :  { %s6486_s25 = smov 192   ;;  %s6487_s26 = smov 12  }
  0x29   :  { %67 = dma.hbm_to_vmem [thread:$0]  %s7309_s4, 6144, %s62_s28, [#allocation6], %s6486_s25, %s6486_s25, %s6487_s26  }
  0x2a   :  { %s6488_s3 = smov [#allocation8]   ;;  %s7310_s23 = sld [smem:[#allocation49_spill]] }
  0x2b   :  { %s85_s29 = sshll.u32 %s6488_s3, 4  ;;  %s86_s29 = int_to_ptr.vmem [resolvable:$true] %s85_s29 }
  0x30   :  { %s6067_s1 = scalar_lea.hbm %s7310_s23, 32 }
  0x31   :  { %p6068_p8 = scmp.ne.s32.totalorder %s7310_s23, %s6067_s1  ;;  %p6071_p9 = scmp.lt.u32.totalorder %s6067_s1, %s7310_s23 }
  0x33   :  { %p6073_p10 = pnand %p6071_p9, %p6068_p8 }
  0x35   :  { %6076 = shalt.err (!%p6073_p10)
}
  0x36   :  { %s6077_s21 = scalar_lea.vmem %s86_s29, 32  ;;  %p6082_p12 = scmp.lt.s32.totalorder %s86_s29, %s86_s29 }
  0x37   :  { %p6078_p11 = scmp.ne.s32.totalorder %s86_s29, %s6077_s21  ;;  %p6083_p13 = scmp.lt.s32.totalorder %s6077_s21, %s6077_s21 }
  0x39   :  { %p6084_p0 = por %p6083_p13, %p6082_p12 }
  0x3b   :  { %p6085_p1 = pnand %p6084_p0, %p6078_p11 }
  0x3d   :  { %6088 = shalt.err (!%p6085_p1)
}
  0x3e   :  { %s6489_s28 = smov 16   ;;  %s6490_s4 = smov 1  }
  0x3f   :  { %91 = dma.hbm_to_vmem [thread:$0]  %s7310_s23, 32, %s86_s29, [#allocation9], %s6489_s28, %s6489_s28, %s6490_s4  }
  0x40   :  { %s6491_s22 = smov [#allocation11]   ;;  %s6492_s27 = smov [#allocation14]  }
  0x41   :  { %s109_s2 = sshll.u32 %s6491_s22, 4  ;;  %s131_s3 = sshll.u32 %s6492_s27, 4  ;;  %s110_s2 = int_to_ptr.vmem [resolvable:$true] %s109_s2  ;;  %s6657_s3 = int_to_ptr.vmem [resolvable:$true] %s131_s3 }
  0x42   :  { %s6089_s0 = scalar_lea.hbm %s7278_s8, 4096 }
  0x43   :  { %p6090_p2 = scmp.ne.s32.totalorder %s7278_s8, %s6089_s0  ;;  %p6093_p3 = scmp.lt.u32.totalorder %s6089_s0, %s7278_s8 }
  0x45   :  { %p6095_p4 = pnand %p6093_p3, %p6090_p2 }
  0x47   :  { %6098 = shalt.err (!%p6095_p4)
}
  0x48   :  { %s6099_s29 = scalar_lea.vmem %s110_s2, 4096  ;;  %p6104_p6 = scmp.lt.s32.totalorder %s110_s2, %s110_s2 }
  0x49   :  { %p6100_p5 = scmp.ne.s32.totalorder %s110_s2, %s6099_s29  ;;  %p6105_p7 = scmp.lt.s32.totalorder %s6099_s29, %s6099_s29 }
  0x4b   :  { %p6106_p8 = por %p6105_p7, %p6104_p6 }
  0x4d   :  { %p6107_p9 = pnand %p6106_p8, %p6100_p5 }
  0x4f   :  { %6110 = shalt.err (!%p6107_p9)
}
  0x50   :  { %s6493_s23 = smov 64   ;;  %s6494_s25 = smov 4  }
  0x51   :  { %115 = dma.hbm_to_vmem [thread:$0]  %s7278_s8, 4096, %s110_s2, [#allocation12], %s6493_s23, %s6493_s23, %s6494_s25  }
  0x52   :  { %s6111_s30 = scalar_lea.hbm %s7280_s10, 32 }
  0x53   :  { %p6112_p10 = scmp.ne.s32.totalorder %s7280_s10, %s6111_s30  ;;  %p6115_p11 = scmp.lt.u32.totalorder %s6111_s30, %s7280_s10 }
  0x55   :  { %p6117_p12 = pnand %p6115_p11, %p6112_p10 }
  0x57   :  { %6120 = shalt.err (!%p6117_p12)
}
  0x58   :  { %s6121_s6 = scalar_lea.vmem %s6657_s3, 32  ;;  %p6126_p0 = scmp.lt.s32.totalorder %s6657_s3, %s6657_s3 }
  0x59   :  { %p6122_p13 = scmp.ne.s32.totalorder %s6657_s3, %s6121_s6  ;;  %p6127_p1 = scmp.lt.s32.totalorder %s6121_s6, %s6121_s6 }
  0x5b   :  { %p6128_p2 = por %p6127_p1, %p6126_p0 }
  0x5d   :  { %p6129_p3 = pnand %p6128_p2, %p6122_p13 }
  0x5f   :  { %6132 = shalt.err (!%p6129_p3)
}
  0x60   :  { %137 = dma.hbm_to_vmem [thread:$0]  %s7280_s10, 32, %s6657_s3, [#allocation15], %s6489_s28, %s6489_s28, %s6490_s4  }
  0x61   :  { %s6495_s29 = smov [#allocation17]   ;;  %s6496_s22 = smov [#allocation20]  }
  0x62   :  { %s155_s26 = sshll.u32 %s6495_s29, 4  ;;  %s179_s27 = sshll.u32 %s6496_s22, 4  ;;  %s156_s26 = int_to_ptr.vmem [resolvable:$true] %s155_s26  ;;  %s6694_s27 = int_to_ptr.vmem [resolvable:$true] %s179_s27 }
  0x63   :  { %s6133_s0 = scalar_lea.hbm %s7282_s12, 2048 }
  0x64   :  { %p6134_p4 = scmp.ne.s32.totalorder %s7282_s12, %s6133_s0  ;;  %p6137_p5 = scmp.lt.u32.totalorder %s6133_s0, %s7282_s12 }
  0x66   :  { %p6139_p6 = pnand %p6137_p5, %p6134_p4 }
  0x68   :  { %6142 = shalt.err (!%p6139_p6)
}
  0x69   :  { %s6143_s10 = scalar_lea.vmem %s156_s26, 2048  ;;  %p6148_p8 = scmp.lt.s32.totalorder %s156_s26, %s156_s26 }
  0x6a   :  { %p6144_p7 = scmp.ne.s32.totalorder %s156_s26, %s6143_s10  ;;  %p6149_p9 = scmp.lt.s32.totalorder %s6143_s10, %s6143_s10 }
  0x6c   :  { %p6150_p10 = por %p6149_p9, %p6148_p8 }
  0x6e   :  { %p6151_p11 = pnand %p6150_p10, %p6144_p7 }
  0x70   :  { %6154 = shalt.err (!%p6151_p11)
}
  0x71   :  { %161 = dma.hbm_to_vmem [thread:$0]  %s7282_s12, 2048, %s156_s26, [#allocation18], %s6493_s23, %s6493_s23, %s6494_s25  }
  0x72   :  { %s6155_s22 = scalar_lea.hbm %s7284_s14, 2048 }
  0x73   :  { %p6156_p12 = scmp.ne.s32.totalorder %s7284_s14, %s6155_s22  ;;  %p6159_p13 = scmp.lt.u32.totalorder %s6155_s22, %s7284_s14 }
  0x75   :  { %p6161_p0 = pnand %p6159_p13, %p6156_p12 }
  0x77   :  { %6164 = shalt.err (!%p6161_p0)
}
  0x78   :  { %s6165_s5 = scalar_lea.vmem %s6694_s27, 2048  ;;  %p6170_p2 = scmp.lt.s32.totalorder %s6694_s27, %s6694_s27 }
  0x79   :  { %p6166_p1 = scmp.ne.s32.totalorder %s6694_s27, %s6165_s5  ;;  %p6171_p3 = scmp.lt.s32.totalorder %s6165_s5, %s6165_s5 }
  0x7b   :  { %p6172_p4 = por %p6171_p3, %p6170_p2 }
  0x7d   :  { %p6173_p5 = pnand %p6172_p4, %p6166_p1 }
  0x7f   :  { %6176 = shalt.err (!%p6173_p5)
}
  0x80   :  { %185 = dma.hbm_to_vmem [thread:$0]  %s7284_s14, 2048, %s6694_s27, [#allocation21], %s6493_s23, %s6493_s23, %s6494_s25  }
  0x81   :  { %s6497_s24 = smov [#allocation23]   ;;  %s6177_s8 = scalar_lea.hbm %s7286_s16, 2048 }
  0x82   :  { %s203_s6 = sshll.u32 %s6497_s24, 4  ;;  %p6178_p6 = scmp.ne.s32.totalorder %s7286_s16, %s6177_s8  ;;  %s204_s6 = int_to_ptr.vmem [resolvable:$true] %s203_s6 }
  0x83   :  { %p6181_p7 = scmp.lt.u32.totalorder %s6177_s8, %s7286_s16 }
  0x85   :  { %p6183_p8 = pnand %p6181_p7, %p6178_p6 }
  0x87   :  { %6186 = shalt.err (!%p6183_p8)
}
  0x88   :  { %s6187_s30 = scalar_lea.vmem %s204_s6, 2048  ;;  %p6192_p10 = scmp.lt.s32.totalorder %s204_s6, %s204_s6 }
  0x89   :  { %p6188_p9 = scmp.ne.s32.totalorder %s204_s6, %s6187_s30  ;;  %p6193_p11 = scmp.lt.s32.totalorder %s6187_s30, %s6187_s30 }
  0x8b   :  { %p6194_p12 = por %p6193_p11, %p6192_p10 }
  0x8d   :  { %p6195_p13 = pnand %p6194_p12, %p6188_p9 }
  0x8f   :  { %6198 = shalt.err (!%p6195_p13)
}
  0x90   :  { %209 = dma.hbm_to_vmem [thread:$0]  %s7286_s16, 2048, %s204_s6, [#allocation24], %s6493_s23, %s6493_s23, %s6494_s25  }
  0x91   :  { %s6498_s0 = smov [#allocation26]   ;;  %s6499_s5 = smov [#allocation2]  }
  0x92   :  { %s227_s1 = sshll.u32 %s6498_s0, 4  ;;  %s49_s12 = sshll.u32 %s6499_s5, 4  ;;  %s228_s1 = int_to_ptr.vmem [resolvable:$true] %s227_s1  ;;  %s50_s12 = int_to_ptr.vmem [resolvable:$true] %s49_s12 }
  0x93   :  { %s6199_s10 = scalar_lea.hbm %s7288_s18, 4096 }
  0x94   :  { %p6200_p0 = scmp.ne.s32.totalorder %s7288_s18, %s6199_s10  ;;  %p6203_p1 = scmp.lt.u32.totalorder %s6199_s10, %s7288_s18 }
  0x96   :  { %p6205_p2 = pnand %p6203_p1, %p6200_p0 }
  0x98   :  { %6208 = shalt.err (!%p6205_p2)
}
  0x99   :  { %s6209_s16 = scalar_lea.vmem %s228_s1, 4096  ;;  %p6214_p4 = scmp.lt.s32.totalorder %s228_s1, %s228_s1 }
  0x9a   :  { %p6210_p3 = scmp.ne.s32.totalorder %s228_s1, %s6209_s16  ;;  %p6215_p5 = scmp.lt.s32.totalorder %s6209_s16, %s6209_s16 }
  0x9c   :  { %p6216_p6 = por %p6215_p5, %p6214_p4 }
  0x9e   :  { %p6217_p7 = pnand %p6216_p6, %p6210_p3 }
  0xa0   :  { %6220 = shalt.err (!%p6217_p7)
}
  0xa1   :  { %s6500_s6 = smov 128   ;;  %s6501_s22 = smov 8  }
  0xa2   :  { %233 = dma.hbm_to_vmem [thread:$0]  %s7288_s18, 4096, %s228_s1, [#allocation27], %s6500_s6, %s6500_s6, %s6501_s22  }
  0xa3   :  { %s7311_s0 = sld [smem:[#allocation46_spill]] }
  0xa9   :  { %s6221_s5 = scalar_lea.hbm %s7311_s0, 32 }
  0xaa   :  { %p6222_p8 = scmp.ne.s32.totalorder %s7311_s0, %s6221_s5  ;;  %p6225_p9 = scmp.lt.u32.totalorder %s6221_s5, %s7311_s0 }
  0xac   :  { %p6227_p10 = pnand %p6225_p9, %p6222_p8 }
  0xae   :  { %6230 = shalt.err (!%p6227_p10)
}
  0xaf   :  { %s6231_s8 = scalar_lea.vmem %s50_s12, 32  ;;  %p6236_p12 = scmp.lt.s32.totalorder %s50_s12, %s50_s12 }
  0xb0   :  { %p6232_p11 = scmp.ne.s32.totalorder %s50_s12, %s6231_s8  ;;  %p6237_p13 = scmp.lt.s32.totalorder %s6231_s8, %s6231_s8 }
  0xb2   :  { %p6238_p0 = por %p6237_p13, %p6236_p12 }
  0xb4   :  { %p6239_p1 = pnand %p6238_p0, %p6232_p11 }
  0xb6   :  { %6242 = shalt.err (!%p6239_p1)
}
  0xb7   :  { %55 = dma.hbm_to_vmem [thread:$0]  %s7311_s0, 32, %s50_s12, [#allocation3], %s6489_s28, %s6489_s28, %s6490_s4  }
  0xb8   :  { %s6502_s2 = smov [#allocation7]   ;;  %s6503_s16 = smov [#allocation10]  }
  0xb9   :  { %s73_s29 = sshll.u32 %s6502_s2, 4  ;;  %s97_s21 = sshll.u32 %s6503_s16, 4  ;;  %s74_s29 = int_to_ptr.vmem [resolvable:$true] %s73_s29  ;;  %s98_s21 = int_to_ptr.vmem [resolvable:$true] %s97_s21 }
  0xba   :  { %s7312_s27 = sld [smem:[#allocation48_spill]] }
  0xc0   :  { %s6243_s5 = scalar_lea.hbm %s7312_s27, 2048 }
  0xc1   :  { %p6244_p2 = scmp.ne.s32.totalorder %s7312_s27, %s6243_s5  ;;  %p6247_p3 = scmp.lt.u32.totalorder %s6243_s5, %s7312_s27 }
  0xc3   :  { %p6249_p4 = pnand %p6247_p3, %p6244_p2 }
  0xc5   :  { %6252 = shalt.err (!%p6249_p4)
}
  0xc6   :  { %s6253_s12 = scalar_lea.vmem %s74_s29, 2048  ;;  %p6258_p6 = scmp.lt.s32.totalorder %s74_s29, %s74_s29 }
  0xc7   :  { %p6254_p5 = scmp.ne.s32.totalorder %s74_s29, %s6253_s12  ;;  %p6259_p7 = scmp.lt.s32.totalorder %s6253_s12, %s6253_s12 }
  0xc9   :  { %p6260_p8 = por %p6259_p7, %p6258_p6 }
  0xcb   :  { %p6261_p9 = pnand %p6260_p8, %p6254_p5 }
  0xcd   :  { %6264 = shalt.err (!%p6261_p9)
}
  0xce   :  { %79 = dma.hbm_to_vmem [thread:$0]  %s7312_s27, 2048, %s74_s29, [#allocation6], %s6493_s23, %s6493_s23, %s6494_s25  }
  0xcf   :  { %s6265_s2 = scalar_lea.hbm %s7277_s7, 4096 }
  0xd0   :  { %p6266_p10 = scmp.ne.s32.totalorder %s7277_s7, %s6265_s2  ;;  %p6269_p11 = scmp.lt.u32.totalorder %s6265_s2, %s7277_s7 }
  0xd2   :  { %p6271_p12 = pnand %p6269_p11, %p6266_p10 }
  0xd4   :  { %6274 = shalt.err (!%p6271_p12)
}
  0xd5   :  { %s6275_s26 = scalar_lea.vmem %s98_s21, 4096  ;;  %p6280_p0 = scmp.lt.s32.totalorder %s98_s21, %s98_s21 }
  0xd6   :  { %p6276_p13 = scmp.ne.s32.totalorder %s98_s21, %s6275_s26  ;;  %p6281_p1 = scmp.lt.s32.totalorder %s6275_s26, %s6275_s26 }
  0xd8   :  { %p6282_p2 = por %p6281_p1, %p6280_p0 }
  0xda   :  { %p6283_p3 = pnand %p6282_p2, %p6276_p13 }
  0xdc   :  { %6286 = shalt.err (!%p6283_p3)
}
  0xdd   :  { %103 = dma.hbm_to_vmem [thread:$0]  %s7277_s7, 4096, %s98_s21, [#allocation9], %s6500_s6, %s6500_s6, %s6501_s22  }
  0xde   :  { %s6504_s24 = smov [#allocation13]   ;;  %s6505_s3 = smov [#allocation16]  }
  0xdf   :  { %s122_s10 = sshll.u32 %s6504_s24, 4  ;;  %s143_s12 = sshll.u32 %s6505_s3, 4  ;;  %s123_s10 = int_to_ptr.vmem [resolvable:$true] %s122_s10  ;;  %s144_s12 = int_to_ptr.vmem [resolvable:$true] %s143_s12 }
  0xe0   :  { %s6287_s18 = scalar_lea.hbm %s7279_s9, 16 }
  0xe1   :  { %p6288_p4 = scmp.ne.s32.totalorder %s7279_s9, %s6287_s18  ;;  %p6291_p5 = scmp.lt.u32.totalorder %s6287_s18, %s7279_s9 }
  0xe3   :  { %p6293_p6 = pnand %p6291_p5, %p6288_p4 }
  0xe5   :  { %6296 = shalt.err (!%p6293_p6)
}
  0xe6   :  { %s6297_s7 = scalar_lea.vmem %s123_s10, 16  ;;  %s6301_s21 = scalar_lea.vmem %s123_s10, 32 }
  0xe7   :  { %p6298_p7 = scmp.ne.s32.totalorder %s123_s10, %s6297_s7  ;;  %p6302_p8 = scmp.lt.s32.totalorder %s123_s10, %s123_s10 }
  0xe8   :  { %p6303_p9 = scmp.lt.s32.totalorder %s6301_s21, %s6297_s7 }
  0xea   :  { %p6304_p10 = por %p6303_p9, %p6302_p8 }
  0xec   :  { %p6305_p11 = pnand %p6304_p10, %p6298_p7 }
  0xee   :  { %6308 = shalt.err (!%p6305_p11)
}
  0xef   :  { %125 = dma.hbm_to_vmem [thread:$0]  %s7279_s9, 16, %s123_s10, [#allocation12]  }
  0xf0   :  { %s6309_s27 = scalar_lea.hbm %s7281_s11, 2048 }
  0xf1   :  { %p6310_p12 = scmp.ne.s32.totalorder %s7281_s11, %s6309_s27  ;;  %p6313_p13 = scmp.lt.u32.totalorder %s6309_s27, %s7281_s11 }
  0xf3   :  { %p6315_p0 = pnand %p6313_p13, %p6310_p12 }
  0xf5   :  { %6318 = shalt.err (!%p6315_p0)
}
  0xf6   :  { %s6319_s18 = scalar_lea.vmem %s144_s12, 2048  ;;  %p6324_p2 = scmp.lt.s32.totalorder %s144_s12, %s144_s12 }
  0xf7   :  { %p6320_p1 = scmp.ne.s32.totalorder %s144_s12, %s6319_s18  ;;  %p6325_p3 = scmp.lt.s32.totalorder %s6319_s18, %s6319_s18 }
  0xf9   :  { %p6326_p4 = por %p6325_p3, %p6324_p2 }
  0xfb   :  { %p6327_p5 = pnand %p6326_p4, %p6320_p1 }
  0xfd   :  { %6330 = shalt.err (!%p6327_p5)
}
  0xfe   :  { %149 = dma.hbm_to_vmem [thread:$0]  %s7281_s11, 2048, %s144_s12, [#allocation15], %s6493_s23, %s6493_s23, %s6494_s25  }
  0xff   :  { %s6506_s1 = smov [#allocation19]   ;;  %s6507_s16 = smov [#allocation22]  }
 0x100   :  { %s167_s2 = sshll.u32 %s6506_s1, 4  ;;  %s191_s30 = sshll.u32 %s6507_s16, 4  ;;  %s168_s2 = int_to_ptr.vmem [resolvable:$true] %s167_s2  ;;  %s192_s30 = int_to_ptr.vmem [resolvable:$true] %s191_s30 }
 0x101   :  { %s6331_s14 = scalar_lea.hbm %s7283_s13, 32 }
 0x102   :  { %p6332_p6 = scmp.ne.s32.totalorder %s7283_s13, %s6331_s14  ;;  %p6335_p7 = scmp.lt.u32.totalorder %s6331_s14, %s7283_s13 }
 0x104   :  { %p6337_p8 = pnand %p6335_p7, %p6332_p6 }
 0x106   :  { %6340 = shalt.err (!%p6337_p8)
}
 0x107   :  { %s6341_s11 = scalar_lea.vmem %s168_s2, 32  ;;  %p6346_p10 = scmp.lt.s32.totalorder %s168_s2, %s168_s2 }
 0x108   :  { %p6342_p9 = scmp.ne.s32.totalorder %s168_s2, %s6341_s11  ;;  %p6347_p11 = scmp.lt.s32.totalorder %s6341_s11, %s6341_s11 }
 0x10a   :  { %p6348_p12 = por %p6347_p11, %p6346_p10 }
 0x10c   :  { %p6349_p13 = pnand %p6348_p12, %p6342_p9 }
 0x10e   :  { %6352 = shalt.err (!%p6349_p13)
}
 0x10f   :  { %173 = dma.hbm_to_vmem [thread:$0]  %s7283_s13, 32, %s168_s2, [#allocation18], %s6489_s28, %s6489_s28, %s6490_s4  }
 0x110   :  { %s6353_s8 = scalar_lea.hbm %s7285_s15, 4096 }
 0x111   :  { %p6354_p0 = scmp.ne.s32.totalorder %s7285_s15, %s6353_s8  ;;  %p6357_p1 = scmp.lt.u32.totalorder %s6353_s8, %s7285_s15 }
 0x113   :  { %p6359_p2 = pnand %p6357_p1, %p6354_p0 }
 0x115   :  { %6362 = shalt.err (!%p6359_p2)
}
 0x116   :  { %s6363_s16 = scalar_lea.vmem %s192_s30, 4096  ;;  %p6368_p4 = scmp.lt.s32.totalorder %s192_s30, %s192_s30 }
 0x117   :  { %p6364_p3 = scmp.ne.s32.totalorder %s192_s30, %s6363_s16  ;;  %p6369_p5 = scmp.lt.s32.totalorder %s6363_s16, %s6363_s16 }
 0x119   :  { %p6370_p6 = por %p6369_p5, %p6368_p4 }
 0x11b   :  { %p6371_p7 = pnand %p6370_p6, %p6364_p3 }
 0x11d   :  { %6374 = shalt.err (!%p6371_p7)
}
 0x11e   :  { %197 = dma.hbm_to_vmem [thread:$0]  %s7285_s15, 4096, %s192_s30, [#allocation21], %s6500_s6, %s6500_s6, %s6501_s22  }
 0x11f   :  { %s6508_s7 = smov [#allocation25]   ;;  %s6509_s14 = smov [#allocation28]  }
 0x120   :  { %s215_s21 = sshll.u32 %s6508_s7, 4  ;;  %s239_s5 = sshll.u32 %s6509_s14, 4  ;;  %s216_s21 = int_to_ptr.vmem [resolvable:$true] %s215_s21  ;;  %s240_s5 = int_to_ptr.vmem [resolvable:$true] %s239_s5 }
 0x121   :  { %s6375_s27 = scalar_lea.hbm %s7287_s17, 32 }
 0x122   :  { %p6376_p8 = scmp.ne.s32.totalorder %s7287_s17, %s6375_s27  ;;  %p6379_p9 = scmp.lt.u32.totalorder %s6375_s27, %s7287_s17 }
 0x124   :  { %p6381_p10 = pnand %p6379_p9, %p6376_p8 }
 0x126   :  { %6384 = shalt.err (!%p6381_p10)
}
 0x127   :  { %s6385_s15 = scalar_lea.vmem %s216_s21, 32  ;;  %p6390_p12 = scmp.lt.s32.totalorder %s216_s21, %s216_s21 }
 0x128   :  { %p6386_p11 = scmp.ne.s32.totalorder %s216_s21, %s6385_s15  ;;  %p6391_p13 = scmp.lt.s32.totalorder %s6385_s15, %s6385_s15 }
 0x12a   :  { %p6392_p0 = por %p6391_p13, %p6390_p12 }
 0x12c   :  { %p6393_p1 = pnand %p6392_p0, %p6386_p11 }
 0x12e   :  { %6396 = shalt.err (!%p6393_p1)
}
 0x12f   :  { %221 = dma.hbm_to_vmem [thread:$0]  %s7287_s17, 32, %s216_s21, [#allocation24], %s6489_s28, %s6489_s28, %s6490_s4  }
 0x130   :  { %s6397_s8 = scalar_lea.hbm %s7289_s19, 4096 }
 0x131   :  { %p6398_p2 = scmp.ne.s32.totalorder %s7289_s19, %s6397_s8  ;;  %p6401_p3 = scmp.lt.u32.totalorder %s6397_s8, %s7289_s19 }
 0x133   :  { %p6403_p4 = pnand %p6401_p3, %p6398_p2 }
 0x135   :  { %6406 = shalt.err (!%p6403_p4)
}
 0x136   :  { %s6407_s16 = scalar_lea.vmem %s240_s5, 4096  ;;  %p6412_p6 = scmp.lt.s32.totalorder %s240_s5, %s240_s5 }
 0x137   :  { %p6408_p5 = scmp.ne.s32.totalorder %s240_s5, %s6407_s16  ;;  %p6413_p7 = scmp.lt.s32.totalorder %s6407_s16, %s6407_s16 }
 0x139   :  { %p6414_p8 = por %p6413_p7, %p6412_p6 }
 0x13b   :  { %p6415_p9 = pnand %p6414_p8, %p6408_p5 }
 0x13d   :  { %6418 = shalt.err (!%p6415_p9)
}
 0x13e   :  { %245 = dma.hbm_to_vmem [thread:$0]  %s7289_s19, 4096, %s240_s5, [#allocation27], %s6493_s23, %s6493_s23, %s6494_s25  }
 0x13f   :  { %s6510_s4 = smov [#allocation29]   ;;  %s6419_s21 = scalar_lea.hbm %s7290_s20, 16 }
 0x140   :  { %s252_s13 = sshll.u32 %s6510_s4, 4  ;;  %p6420_p10 = scmp.ne.s32.totalorder %s7290_s20, %s6419_s21  ;;  %s253_s13 = int_to_ptr.vmem [resolvable:$true] %s252_s13 }
 0x141   :  { %p6423_p11 = scmp.lt.u32.totalorder %s6419_s21, %s7290_s20 }
 0x143   :  { %p6425_p12 = pnand %p6423_p11, %p6420_p10 }
 0x145   :  { %6428 = shalt.err (!%p6425_p12)
}
 0x146   :  { %s6429_s11 = scalar_lea.vmem %s253_s13, 16  ;;  %s6433_s19 = scalar_lea.vmem %s253_s13, 32 }
 0x147   :  { %p6430_p13 = scmp.ne.s32.totalorder %s253_s13, %s6429_s11  ;;  %p6434_p0 = scmp.lt.s32.totalorder %s253_s13, %s253_s13 }
 0x148   :  { %p6435_p1 = scmp.lt.s32.totalorder %s6433_s19, %s6429_s11 }
 0x14a   :  { %p6436_p2 = por %p6435_p1, %p6434_p0 }
 0x14c   :  { %p6437_p3 = pnand %p6436_p2, %p6430_p13 }
 0x14e   :  { %6440 = shalt.err (!%p6437_p3)
}
 0x14f   :  { %255 = dma.hbm_to_vmem [thread:$0]  %s7290_s20, 16, %s253_s13, [#allocation30]  }
 0x150   :  { %6463 = dma.done.wait [#allocation3], 32  }
 0x151   :  { %6464 = vsyncadd [#allocation3], 4294967264 }
 0x152   :  { %6465 = dma.done.wait [#allocation6], 8192  }
 0x153   :  { %6466 = vsyncadd [#allocation6], 4294959104 }
 0x154   :  { %6467 = dma.done.wait [#allocation9], 4128  }
 0x155   :  { %6468 = vsyncadd [#allocation9], 4294963168 }
 0x156   :  { %6469 = dma.done.wait [#allocation12], 4112  }
 0x157   :  { %6470 = vsyncadd [#allocation12], 4294963184 }
 0x158   :  { %6471 = dma.done.wait [#allocation15], 2080  }
 0x159   :  { %6472 = vsyncadd [#allocation15], 4294965216 }
 0x15a   :  { %6473 = dma.done.wait [#allocation18], 2080  }
 0x15b   :  { %6474 = vsyncadd [#allocation18], 4294965216 }
 0x15c   :  { %6475 = dma.done.wait [#allocation21], 6144  }
 0x15d   :  { %6476 = vsyncadd [#allocation21], 4294961152 }
 0x15e   :  { %6477 = dma.done.wait [#allocation24], 2080  }
 0x15f   :  { %6478 = vsyncadd [#allocation24], 4294965216 }
 0x160   :  { %6479 = dma.done.wait [#allocation27], 8192  }
 0x161   :  { %6480 = vsyncadd [#allocation27], 4294959104 }
 0x162   :  { %6481 = dma.done.wait [#allocation30], 16  }
 0x163   :  { %6482 = vsyncadd [#allocation30], 4294967280  ;;  %v6511_v0 = vmov 0.0   ;;  %s7313_s24 = sld [smem:[#allocation43_spill]]  ;;  %v5632_v3 = vld [vmem:[#allocation5 + $0x4] ss:$12 sps:$4 sm:$0xff]  }
 0x164   :  { %5244 = vmatprep.subr.bf16.mxu1 %v6511_v0  ;;  %v5634_v4 = vld [vmem:[#allocation5] ss:$12 sps:$4 sm:$0xff]   ;;  %v5635_v5 = vld [vmem:[#allocation5 + $0x8] ss:$12 sps:$4 sm:$0xff]   ;;  %494 = vmatprep.subr.bf16.mxu0 %v5632_v3  ;;  %v5638_v7 = vld [vmem:[#allocation5 + $0x18] ss:$12 sps:$4 sm:$0xff]  }
 0x165   :  { %v5636_v6 = vld [vmem:[#allocation5 + $0x1c] ss:$12 sps:$4 sm:$0xff]   ;;  %495 = vmatpush1.bf16.msra.mxu0 %v5634_v4  ;;  %5245 = vmatpush3.bf16.msra.mxu1 %v5635_v5  ;;  %v5639_v8 = vld [vmem:[#allocation5 + $0x20] ss:$12 sps:$4 sm:$0xff]   ;;  %v5643_v11 = vld [vmem:[#allocation5 + $0x38] ss:$12 sps:$4 sm:$0xff]  }
 0x166   :  { %496 = vmatprep.subr.bf16.mxu0 %v5636_v6  ;;  %5246 = vmatprep.subr.bf16.mxu1 %v6511_v0  ;;  %v5640_v9 = vld [vmem:[#allocation5 + $0x34] ss:$12 sps:$4 sm:$0xff]   ;;  %v5642_v10 = vld [vmem:[#allocation5 + $0x30] ss:$12 sps:$4 sm:$0xff]   ;;  %v5644_v12 = vld [vmem:[#allocation5 + $0x4c] ss:$12 sps:$4 sm:$0xff]  }
 0x167   :  { %v5646_v13 = vld [vmem:[#allocation5 + $0x48] ss:$12 sps:$4 sm:$0xff]   ;;  %v5647_v14 = vld [vmem:[#allocation5 + $0x50] ss:$12 sps:$4 sm:$0xff]   ;;  %v5650_v16 = vld [vmem:[#allocation5 + $0x60] ss:$12 sps:$4 sm:$0xff]  }
 0x168   :  { %v5648_v15 = vld [vmem:[#allocation5 + $0x64] ss:$12 sps:$4 sm:$0xff]   ;;  %v5651_v17 = vld [vmem:[#allocation5 + $0x68] ss:$12 sps:$4 sm:$0xff]   ;;  %v5655_v20 = vld [vmem:[#allocation5 + $0x80] ss:$12 sps:$4 sm:$0xff]  }
 0x169   :  { %v313_v1 = vld [vmem:[%s7313_s24] sm:$0xff]  ;;  %497 = vmatpush1.bf16.msra.mxu0 %v5638_v7  ;;  %5247 = vmatpush3.bf16.msra.mxu1 %v5639_v8  ;;  %v6512_v24 = vmov 0   ;;  %vm6513_vm0 = vmmov 0   ;;  %v5660_v25 = vld [vmem:[#allocation5 + $0xac] ss:$12 sps:$4 sm:$0xff]   ;;  %vm657_vm1 = vcmask 1043456  }
 0x16a   :  { %v318_v2 = vmul.f32 %v313_v1, %v313_v1  ;;  %498 = vmatprep.subr.bf16.mxu0 %v5640_v9  ;;  %5248 = vmatprep.subr.bf16.mxu1 %v6511_v0  ;;  %v5652_v18 = vld [vmem:[#allocation5 + $0x7c] ss:$12 sps:$4 sm:$0xff]   ;;  %v5654_v19 = vld [vmem:[#allocation5 + $0x78] ss:$12 sps:$4 sm:$0xff]   ;;  %v5656_v21 = vld [vmem:[#allocation5 + $0x94] ss:$12 sps:$4 sm:$0xff]  }
 0x16b   :  { %v5658_v22 = vld [vmem:[#allocation5 + $0x90] ss:$12 sps:$4 sm:$0xff]   ;;  %v5659_v23 = vld [vmem:[#allocation5 + $0x98] ss:$12 sps:$4 sm:$0xff]   ;;  %526 = vmatprep.mubr.bf16.mxu0 %v6512_v24  ;;  %5260 = vmatprep.mubr.msk.bf16.mxu1 %vm6513_vm0, %v6511_v0  ;;  %v5662_v26 = vld [vmem:[#allocation5 + $0xa8] ss:$12 sps:$4 sm:$0xff]  }
 0x16c   :  { %319 = vadd.xlane.f32.xlu0 %v318_v2  ;;  %v5663_v27 = vld [vmem:[#allocation5 + $0xb0] ss:$12 sps:$4 sm:$0xff]   ;;  %vm593_vm2 = vcmask 523264   ;;  %s7314_s30 = sld [smem:[#allocation45_spill]]  ;;  %vm640_vm3 = vcmask 64512   ;;  %s7315_s10 = sld [smem:[#allocation44_spill]] }
 0x16d   :  { %499 = vmatpush1.bf16.msra.mxu0 %v5642_v10  ;;  %5249 = vmatpush3.bf16.msra.mxu1 %v5643_v11  ;;  %v4693_v32 = vld [vmem:[#allocation2] ss:$0 sm:$0xff]  ;;  %vm2257_vm4 = vcmask 1040384   ;;  %vm2794_vm5 = vcmask 57344   ;;  %s7316_s16 = sld [smem:[#allocation50_spill]]  ;;  %vm4655_vm6 = vcmask 8192  }
 0x16e   :  { %5250 = vmatprep.subr.bf16.mxu1 %v6511_v0  ;;  %500 = vmatprep.subr.bf16.mxu0 %v5644_v12  ;;  %v6924_v33 = vld [vmem:[%s7313_s24] sm:$0xff]  ;;  %s6514_s17 = smov [#allocation31]  }
 0x16f   :  { %s4674_s28 = sshll.u32 %s6514_s17, 4  ;;  %s4675_s28 = int_to_ptr.vmem [resolvable:$true] %s4674_s28 }
 0x170   :  { %s6441_s4 = scalar_lea.vmem %s4675_s28, 16  ;;  %s6445_s13 = scalar_lea.vmem %s4675_s28, 32 }
 0x171   :  { %501 = vmatpush1.bf16.msra.mxu0 %v5646_v13  ;;  %5251 = vmatpush3.bf16.msra.mxu1 %v5647_v14  ;;  %p6442_p4 = scmp.ne.s32.totalorder %s4675_s28, %s6441_s4  ;;  %p6446_p5 = scmp.lt.s32.totalorder %s4675_s28, %s4675_s28 }
 0x172   :  { %5252 = vmatprep.subr.bf16.mxu1 %v6511_v0  ;;  %502 = vmatprep.subr.bf16.mxu0 %v5648_v15  ;;  %v6948_v53 = vld [vmem:[%s7314_s30] sm:$0xff]  ;;  %v6955_v60 = vld [vmem:[%s7314_s30 + $0x8] sm:$0xff]  ;;  %p6447_p6 = scmp.lt.s32.totalorder %s6445_s13, %s6441_s4 }
 0x174   :  { %p6448_p7 = por %p6447_p6, %p6446_p5 }
 0x175   :  { %503 = vmatpush1.bf16.msra.mxu0 %v5650_v16  ;;  %5253 = vmatpush3.bf16.msra.mxu1 %v5651_v17 }
 0x176   :  { %504 = vmatprep.subr.bf16.mxu0 %v5652_v18  ;;  %5254 = vmatprep.subr.bf16.mxu1 %v6511_v0  ;;  %v5668_v18 = vld [vmem:[#allocation7 + $0x20] sm:$0xff]   ;;  %p6449_p8 = pnand %p6448_p7, %p6442_p4 }
 0x179   :  { %505 = vmatpush1.bf16.msra.mxu0 %v5654_v19  ;;  %5255 = vmatpush3.bf16.msra.mxu1 %v5655_v20  ;;  %v5669_v19 = vld [vmem:[#allocation7 + $0x28] sm:$0xff]   ;;  %v5670_v20 = vld [vmem:[#allocation7 + $0x30] sm:$0xff]  }
 0x17a   :  { %506 = vmatprep.subr.bf16.mxu0 %v5656_v21  ;;  %5256 = vmatprep.subr.bf16.mxu1 %v6511_v0 }
 0x17d   :  { %507 = vmatpush1.bf16.msra.mxu0 %v5658_v22  ;;  %5257 = vmatpush3.bf16.msra.mxu1 %v5659_v23 }
 0x17e   :  { %508 = vmatprep.subr.bf16.mxu0 %v5660_v25  ;;  %5258 = vmatprep.subr.bf16.mxu1 %v6511_v0 }
 0x181   :  { %509 = vmatpush1.bf16.msra.mxu0 %v5662_v26  ;;  %5259 = vmatpush3.bf16.msra.mxu1 %v5663_v27  ;;  %v5664_v27 = vld [vmem:[#allocation7] sm:$0xff]  }
 0x182   :  { %5270 = vmatprep.subr.bf16.mxu1 %v6511_v0  ;;  %5264 = vmatprep.subr.bf16.mxu0 %v6511_v0 }
 0x1f9   :  { %v320_v28 = vpop.xlane.xlu0 %319 }
 0x1fa   :  { %v322_v29 = vmul.f32 0.0078125, %v320_v28 }
 0x1fc   :  { %v323_v30 = vadd.f32 1e-06, %v322_v29  ;;  %v5665_v29 = vld [vmem:[#allocation7 + $0x8] sm:$0xff]  }
 0x1fe   :  { %5984 = vrsqrt.f32 %v323_v30  ;;  %v5666_v30 = vld [vmem:[#allocation7 + $0x10] sm:$0xff]  }
 0x208   :  { %v5985_v31 = vpop.eup %5984 }
 0x209   :  { %v325_v34 = vmul.f32 %v6924_v33, %v5985_v31  ;;  %v5667_v31 = vld [vmem:[#allocation7 + $0x18] sm:$0xff]  }
 0x20b   :  { %v332_v35 = vmul.f32 %v4693_v32, %v325_v34  ;;  %v5671_v32 = vld [vmem:[#allocation7 + $0x38] sm:$0xff]  }
 0x20d   :  { %v365_v36 = vpack.c.bf16 %v332_v35, %v332_v35 }
 0x20f   :  { %527 = vmatmul.mubr.bf16.vlgmr.msra.gmra.mrb[0].mxu0 %v365_v36  ;;  %5261 = vmatmul.mubr.bf16.vlgmr.msra.gmra.mrb[0].mxu1 %v365_v36 }
 0x210   :  { %5266 = vmatprep.mubr.msk.bf16.mxu0 %vm6513_vm0, %v6511_v0  ;;  %5272 = vmatprep.mubr.msk.bf16.mxu1 %vm6513_vm0, %v6511_v0 }
 0x2e2   :  { %v528_v37 = vpop.f32.mrb[0].mxu0  ;;  %v569_v38 = vpop.f32.mrb[0].mxu1 }
 0x2e3   :  { %v591_v39 = vpack.c.bf16 %v528_v37, %v528_v37  ;;  %v653_v40 = vpack.c.bf16 %v569_v38, %v569_v38  ;;  %v530_v41 = vpop.f32.mrb[1].mxu0  ;;  %v5262_v42 = vpop.f32.mrb[1].mxu1 }
 0x2e4   :  { %v592_v43 = vpack.c.bf16 %v530_v41, %v530_v41  ;;  %v532_v44 = vpop.f32.mrb[2].mxu0  ;;  %v572_v45 = vpop.f32.mrb[2].mxu1 }
 0x2e5   :  { %v659_v46 = vsel %vm657_vm1, %v653_v40, 0  ;;  %v5263_v47 = vpop.f32.mrb[3].mxu1  ;;  %703 = vrot.lane.b32.xlu1 %v591_v39, %s6493_s23  ;;  %v533_v48 = vpop.f32.mrb[3].mxu0  ;;  %v5672_v44 = vld [vmem:[#allocation10] ss:$8 sps:$4 sm:$0xff]  }
 0x2e6   :  { %v598_v49 = vsel %vm593_vm2, %v592_v43, 0  ;;  %5271 = vmatpush3.bf16.msra.mxu1 %v659_v46  ;;  %706 = vrot.lane.b32.xlu0 %v592_v43, %s6493_s23  ;;  %v5674_v45 = vld [vmem:[#allocation10 + $0x4] ss:$8 sps:$4 sm:$0xff]   ;;  %v5677_v46 = vld [vmem:[#allocation10 + $0x14] ss:$8 sps:$4 sm:$0xff]  }
 0x2e7   :  { %5265 = vmatpush3.bf16.xpose.msra.mxu0 %v598_v49  ;;  %5282 = vmatprep.subr.bf16.mxu1 %v6511_v0  ;;  %v5675_v47 = vld [vmem:[#allocation10 + $0x10] ss:$8 sps:$4 sm:$0xff]   ;;  %v5680_v48 = vld [vmem:[#allocation10 + $0x24] ss:$8 sps:$4 sm:$0xff]  }
 0x2e8   :  { %5276 = vmatprep.subr.bf16.mxu0 %v6511_v0 }
 0x2ee   :  { %5267 = vmatmul.mubr.msk.bf16.vlgmr.msra.gmra.mrb[4].mxu0 %vm593_vm2, %v591_v39 }
 0x2ef   :  { %5278 = vmatprep.mubr.msk.bf16.mxu0 %vm6513_vm0, %v6511_v0 }
 0x357   :  { %v704_v52 = vpop.permute.xlu1 %703 }
 0x358   :  { %v707_v50 = vpop.permute.xlu0 %706 }
 0x359   :  { %v712_v51 = vsel %vm593_vm2, %v707_v50, 0 }
 0x35a   :  { %5277 = vmatpush3.bf16.xpose.msra.mxu0 %v712_v51  ;;  %v5678_v51 = vld [vmem:[#allocation10 + $0x20] ss:$8 sps:$4 sm:$0xff]  }
 0x35b   :  { %5288 = vmatprep.subr.bf16.mxu0 %v6511_v0 }
 0x361   :  { %5279 = vmatmul.mubr.msk.bf16.vlgmr.msra.gmra.mrb[8].mxu0 %vm593_vm2, %v704_v52 }
 0x362   :  { %5296 = vmatprep.mubr.msk.bf16.mxu0 %vm6513_vm0, %v6511_v0  ;;  %5289 = vmatpush3.bf16.msra.mxu0 %v5668_v18  ;;  %v5705_v18 = vld [vmem:[#allocation11 + $0x20] sm:$0xff]  }
 0x363   :  { %5290 = vmatprep.subr.bf16.mxu0 %v6511_v0 }
 0x366   :  { %5291 = vmatpush3.bf16.msra.mxu0 %v5669_v19  ;;  %v5706_v19 = vld [vmem:[#allocation11 + $0x68] sm:$0xff]  }
 0x367   :  { %5292 = vmatprep.subr.bf16.mxu0 %v6511_v0 }
 0x36a   :  { %5293 = vmatpush3.bf16.msra.mxu0 %v5670_v20  ;;  %v5707_v20 = vld [vmem:[#allocation11 + $0x28] sm:$0xff]  }
 0x36b   :  { %5294 = vmatprep.subr.bf16.mxu0 %v6511_v0 }
 0x36e   :  { %5295 = vmatpush3.bf16.msra.mxu0 %v5671_v32  ;;  %v5710_v32 = vld [vmem:[#allocation11 + $0x78] sm:$0xff]  }
 0x36f   :  { %1063 = vmatprep.subr.bf16.mxu0 %v5674_v45  ;;  %v5715_v45 = vld [vmem:[#allocation5 + $0xc8] ss:$12 sps:$4 sm:$0xff]  }
 0x3c1   :  { %v634_v54 = vpop.f32.mrb[4].mxu0 }
 0x3c2   :  { %v635_v55 = vadd.f32 %v634_v54, %v6948_v53  ;;  %v5268_v56 = vpop.f32.mrb[5].mxu0 }
 0x3c3   :  { %v637_v57 = vpop.f32.mrb[6].mxu0 }
 0x3c4   :  { %v5269_v58 = vpop.f32.mrb[7].mxu0  ;;  %v641_v59 = vsel %vm640_vm3, %v635_v55, -inf }
 0x3c5   :  { %642 = vmax.xlane.f32.xlu1 %v641_v59 }
 0x434   :  { %v748_v61 = vpop.f32.mrb[8].mxu0 }
 0x435   :  { %v749_v62 = vadd.f32 %v6955_v60, %v748_v61  ;;  %v5280_v63 = vpop.f32.mrb[9].mxu0 }
 0x436   :  { %v751_v1 = vpop.f32.mrb[10].mxu0  ;;  %v5683_v63 = vld [vmem:[#allocation10 + $0x34] ss:$8 sps:$4 sm:$0xff]  }
 0x437   :  { %v5281_v2 = vpop.f32.mrb[11].mxu0  ;;  %v754_v3 = vsel %vm640_vm3, %v749_v62, -inf  ;;  %v5681_v1 = vld [vmem:[#allocation10 + $0x30] ss:$8 sps:$4 sm:$0xff]  }
 0x438   :  { %755 = vmax.xlane.f32.xlu0 %v754_v3  ;;  %v5686_v2 = vld [vmem:[#allocation10 + $0x44] ss:$8 sps:$4 sm:$0xff]   ;;  %v5684_v3 = vld [vmem:[#allocation10 + $0x40] ss:$8 sps:$4 sm:$0xff]  }
 0x452   :  { %v643_v4 = vpop.xlane.xlu1 %642 }
 0x453   :  { %v644_v5 = vsub.f32 %v635_v55, %v643_v4  ;;  %v5689_v4 = vld [vmem:[#allocation10 + $0x54] ss:$8 sps:$4 sm:$0xff]  }
 0x455   :  { %v645_v6 = vmul.f32 1.442695, %v644_v5  ;;  %v5687_v5 = vld [vmem:[#allocation10 + $0x50] ss:$8 sps:$4 sm:$0xff]  }
 0x457   :  { %5986 = vpow2.f32 %v645_v6  ;;  %v5692_v6 = vld [vmem:[#allocation10 + $0x64] ss:$8 sps:$4 sm:$0xff]  }
 0x461   :  { %v5987_v7 = vpop.eup %5986 }
 0x462   :  { %v647_v8 = vsel %vm640_vm3, %v5987_v7, 0.0 }
 0x463   :  { %648 = vadd.xlane.f32.xlu1 %v647_v8  ;;  %v5693_v8 = vld [vmem:[#allocation10 + $0x70] ss:$8 sps:$4 sm:$0xff]  }
 0x4c5   :  { %v756_v9 = vpop.xlane.xlu0 %755 }
 0x4c6   :  { %v757_v10 = vsub.f32 %v749_v62, %v756_v9  ;;  %v5696_v9 = vld [vmem:[#allocation11 + $0x40] sm:$0xff]  }
 0x4c8   :  { %v758_v11 = vmul.f32 1.442695, %v757_v10  ;;  %v5697_v10 = vld [vmem:[#allocation11] sm:$0xff]  }
 0x4ca   :  { %5988 = vpow2.f32 %v758_v11  ;;  %v5698_v11 = vld [vmem:[#allocation11 + $0x48] sm:$0xff]  }
 0x4d4   :  { %v5989_v12 = vpop.eup %5988 }
 0x4d5   :  { %v760_v13 = vsel %vm640_vm3, %v5989_v12, 0.0 }
 0x4d6   :  { %761 = vadd.xlane.f32.xlu1 %v760_v13  ;;  %v5700_v13 = vld [vmem:[#allocation11 + $0x50] sm:$0xff]  }
 0x4e7   :  { %767 = vrot.lane.b32.xlu1 %v653_v40, %s6493_s23 }
 0x4f0   :  { %v649_v14 = vpop.xlane.xlu1 %648 }
 0x4f1   :  { %5990 = vrcp.f32 %v649_v14  ;;  %v5701_v14 = vld [vmem:[#allocation11 + $0x10] sm:$0xff]  }
 0x4fb   :  { %v5991_v15 = vpop.eup %5990 }
 0x4fc   :  { %v651_v16 = vmul.f32 %v5991_v15, %v5987_v7  ;;  %v5695_v7 = vld [vmem:[#allocation10 + $0x74] ss:$8 sps:$4 sm:$0xff]  }
 0x4fd   :  { %v5702_v15 = vld [vmem:[#allocation11 + $0x58] sm:$0xff]  }
 0x4fe   :  { %v652_v17 = vpack.c.bf16 %v651_v16, %v651_v16  ;;  %v5703_v16 = vld [vmem:[#allocation11 + $0x18] sm:$0xff]  }
 0x500   :  { %5273 = vmatmul.mubr.msk.bf16.vlgmr.msra.gmra.mrb[4].mxu1 %vm640_vm3, %v652_v17  ;;  %v5704_v17 = vld [vmem:[#allocation11 + $0x60] sm:$0xff]  }
 0x501   :  { %5284 = vmatprep.mubr.msk.bf16.mxu1 %vm6513_vm0, %v6511_v0 }
 0x563   :  { %v762_v21 = vpop.xlane.xlu1 %761 }
 0x564   :  { %5992 = vrcp.f32 %v762_v21  ;;  %v5708_v21 = vld [vmem:[#allocation11 + $0x70] sm:$0xff]  }
 0x567   :  { %v768_v22 = vpop.permute.xlu1 %767 }
 0x568   :  { %v773_v23 = vsel %vm657_vm1, %v768_v22, 0 }
 0x569   :  { %5283 = vmatpush3.bf16.msra.mxu1 %v773_v23 }
 0x56a   :  { %5300 = vmatprep.subr.bf16.mxu1 %v6511_v0 }
 0x56e   :  { %v5993_v25 = vpop.eup %5992 }
 0x56f   :  { %v764_v26 = vmul.f32 %v5993_v25, %v5989_v12  ;;  %v5699_v12 = vld [vmem:[#allocation11 + $0x8] sm:$0xff]  }
 0x571   :  { %v765_v28 = vpack.c.bf16 %v764_v26, %v764_v26 }
 0x573   :  { %5285 = vmatmul.mubr.msk.bf16.vlgmr.msra.gmra.mrb[8].mxu1 %vm640_vm3, %v765_v28 }
 0x574   :  { %5301 = vmatpush3.bf16.msra.mxu1 %v5664_v27  ;;  %5308 = vmatprep.mubr.msk.bf16.mxu1 %vm6513_vm0, %v6511_v0  ;;  %v4732_v27 = vld [vmem:[#allocation8] ss:$0 sm:$0xff] }
 0x575   :  { %5302 = vmatprep.subr.bf16.mxu1 %v6511_v0 }
 0x578   :  { %5303 = vmatpush3.bf16.msra.mxu1 %v5665_v29 }
 0x579   :  { %5304 = vmatprep.subr.bf16.mxu1 %v6511_v0 }
 0x57c   :  { %5305 = vmatpush3.bf16.msra.mxu1 %v5666_v30 }
 0x57d   :  { %5306 = vmatprep.subr.bf16.mxu1 %v6511_v0 }
 0x580   :  { %5307 = vmatpush3.bf16.msra.mxu1 %v5667_v31  ;;  %v5709_v31 = vld [vmem:[#allocation11 + $0x30] sm:$0xff]  }
 0x581   :  { %5037 = vmatprep.subr.bf16.mxu1 %v5696_v9  ;;  %v5742_v9 = vld [vmem:[#allocation5 + $0x16c] ss:$12 sps:$4 sm:$0xff]  }
 0x5d3   :  { %v695_v34 = vpop.f32.mrb[4].mxu1 }
 0x5d4   :  { %v701_v35 = vpack.c.bf16 %v695_v34, %v695_v34  ;;  %v5274_v36 = vpop.f32.mrb[5].mxu1  ;;  %v5711_v34 = vld [vmem:[#allocation11 + $0x38] sm:$0xff]  }
 0x5d5   :  { %v698_v37 = vpop.f32.mrb[6].mxu1 }
 0x5d6   :  { %v5275_v38 = vpop.f32.mrb[7].mxu1  ;;  %5309 = vmatmul.mubr.msk.bf16.vlgmr.msra.gmra.mrb[12].mxu1 %vm593_vm2, %v701_v35 }
 0x5d7   :  { %5038 = vmatpush3.bf16.msra.mxu1 %v5697_v10  ;;  %v5740_v10 = vld [vmem:[#allocation5 + $0x168] ss:$12 sps:$4 sm:$0xff]  }
 0x5d8   :  { %5039 = vmatprep.subr.bf16.mxu1 %v5698_v11  ;;  %v5743_v11 = vld [vmem:[#allocation5 + $0x170] ss:$12 sps:$4 sm:$0xff]  }
 0x5db   :  { %5040 = vmatpush3.bf16.msra.mxu1 %v5699_v12 }
 0x5dc   :  { %5041 = vmatprep.subr.bf16.mxu1 %v5700_v13 }
 0x5df   :  { %5042 = vmatpush3.bf16.msra.mxu1 %v5701_v14 }
 0x5e0   :  { %5043 = vmatprep.subr.bf16.mxu1 %v5702_v15 }
 0x5e3   :  { %5044 = vmatpush3.bf16.msra.mxu1 %v5703_v16  ;;  %v4765_v16 = vld [vmem:[#allocation2 + $0x1] ss:$0 sm:$0xff] }
 0x5e4   :  { %5045 = vmatprep.subr.bf16.mxu1 %v5704_v17 }
 0x5e7   :  { %5046 = vmatpush3.bf16.msra.mxu1 %v5705_v18 }
 0x5e8   :  { %5047 = vmatprep.subr.bf16.mxu1 %v5706_v19 }
 0x5eb   :  { %5048 = vmatpush3.bf16.msra.mxu1 %v5707_v20 }
 0x5ec   :  { %5049 = vmatprep.subr.bf16.mxu1 %v5708_v21 }
 0x5ef   :  { %5050 = vmatpush3.bf16.msra.mxu1 %v5709_v31 }
 0x5f0   :  { %5051 = vmatprep.subr.bf16.mxu1 %v5710_v32 }
 0x5f3   :  { %5052 = vmatpush3.bf16.msra.mxu1 %v5711_v34 }
 0x5f4   :  { %5312 = vmatprep.subr.bf16.mxu1 %v6511_v0 }
 0x646   :  { %v809_v39 = vpop.f32.mrb[8].mxu1 }
 0x647   :  { %v815_v40 = vpack.c.bf16 %v809_v39, %v809_v39  ;;  %v5286_v41 = vpop.f32.mrb[9].mxu1 }
 0x648   :  { %v812_v42 = vpop.f32.mrb[10].mxu1 }
 0x649   :  { %v5287_v43 = vpop.f32.mrb[11].mxu1  ;;  %5297 = vmatmul.mubr.msk.bf16.vlgmr.msra.gmra.mrb[12].mxu0 %vm593_vm2, %v815_v40 }
 0x64a   :  { %1095 = vmatprep.mubr.bf16.mxu0 %v6512_v24  ;;  %1064 = vmatpush1.bf16.msra.mxu0 %v5672_v44  ;;  %v5712_v43 = vld [vmem:[#allocation5 + $0xc0] ss:$12 sps:$4 sm:$0xff]   ;;  %v5714_v44 = vld [vmem:[#allocation5 + $0xc4] ss:$12 sps:$4 sm:$0xff]  }
 0x64b   :  { %1065 = vmatprep.subr.bf16.mxu0 %v5677_v46  ;;  %v5718_v46 = vld [vmem:[#allocation5 + $0xdc] ss:$12 sps:$4 sm:$0xff]  }
 0x64e   :  { %1066 = vmatpush1.bf16.msra.mxu0 %v5675_v47  ;;  %v5719_v47 = vld [vmem:[#allocation5 + $0xe0] ss:$12 sps:$4 sm:$0xff]  }
 0x64f   :  { %1067 = vmatprep.subr.bf16.mxu0 %v5680_v48  ;;  %v5716_v48 = vld [vmem:[#allocation5 + $0xd8] ss:$12 sps:$4 sm:$0xff]  }
 0x652   :  { %1068 = vmatpush1.bf16.msra.mxu0 %v5678_v51  ;;  %v5720_v51 = vld [vmem:[#allocation5 + $0xf0] ss:$12 sps:$4 sm:$0xff]  }
 0x653   :  { %1069 = vmatprep.subr.bf16.mxu0 %v5683_v63  ;;  %v5724_v63 = vld [vmem:[#allocation5 + $0x108] ss:$12 sps:$4 sm:$0xff]  }
 0x656   :  { %1070 = vmatpush1.bf16.msra.mxu0 %v5681_v1  ;;  %v5727_v1 = vld [vmem:[#allocation5 + $0x110] ss:$12 sps:$4 sm:$0xff]  }
 0x657   :  { %1071 = vmatprep.subr.bf16.mxu0 %v5686_v2  ;;  %v5730_v2 = vld [vmem:[#allocation5 + $0x124] ss:$12 sps:$4 sm:$0xff]  }
 0x65a   :  { %1072 = vmatpush1.bf16.msra.mxu0 %v5684_v3  ;;  %v5728_v3 = vld [vmem:[#allocation5 + $0x120] ss:$12 sps:$4 sm:$0xff]  }
 0x65b   :  { %1073 = vmatprep.subr.bf16.mxu0 %v5689_v4  ;;  %v5731_v4 = vld [vmem:[#allocation5 + $0x128] ss:$12 sps:$4 sm:$0xff]  }
 0x65e   :  { %1074 = vmatpush1.bf16.msra.mxu0 %v5687_v5  ;;  %v5734_v5 = vld [vmem:[#allocation5 + $0x13c] ss:$12 sps:$4 sm:$0xff]  }
 0x65f   :  { %1075 = vmatprep.subr.bf16.mxu0 %v5692_v6  ;;  %v5735_v6 = vld [vmem:[#allocation5 + $0x140] ss:$12 sps:$4 sm:$0xff]  }
 0x6a9   :  { %v944_v49 = vpop.f32.mrb[12].mxu1 }
 0x6aa   :  { %v5310_v50 = vpop.f32.mrb[13].mxu1 }
 0x6ab   :  { %v947_v52 = vpop.f32.mrb[14].mxu1  ;;  %v5723_v50 = vld [vmem:[#allocation5 + $0xf8] ss:$12 sps:$4 sm:$0xff]  }
 0x6ac   :  { %v5311_v54 = vpop.f32.mrb[15].mxu1 }
 0x71c   :  { %v877_v55 = vpop.f32.mrb[12].mxu0 }
 0x71d   :  { %v945_v56 = vadd.f32 %v944_v49, %v877_v55  ;;  %v5298_v57 = vpop.f32.mrb[13].mxu0  ;;  %v5722_v49 = vld [vmem:[#allocation5 + $0xf4] ss:$12 sps:$4 sm:$0xff]  }
 0x71e   :  { %v880_v58 = vpop.f32.mrb[14].mxu0 }
 0x71f   :  { %v6980_v59 = vadd.f32 %v6924_v33, %v945_v56  ;;  %v5299_v61 = vpop.f32.mrb[15].mxu0  ;;  %v5690_v33 = vld [vmem:[#allocation10 + $0x60] ss:$8 sps:$4 sm:$0xff]  }
 0x720   :  { %1076 = vmatpush1.bf16.msra.mxu0 %v5690_v33  ;;  %v5738_v33 = vld [vmem:[#allocation5 + $0x154] ss:$12 sps:$4 sm:$0xff]  }
 0x721   :  { %v952_v62 = vmul.f32 %v6980_v59, %v6980_v59  ;;  %1077 = vmatprep.subr.bf16.mxu0 %v5695_v7  ;;  %v5736_v7 = vld [vmem:[#allocation5 + $0x150] ss:$12 sps:$4 sm:$0xff]  }
 0x723   :  { %953 = vadd.xlane.f32.xlu0 %v952_v62  ;;  %v5726_v62 = vld [vmem:[#allocation5 + $0x10c] ss:$12 sps:$4 sm:$0xff]  }
 0x724   :  { %1078 = vmatpush1.bf16.msra.mxu0 %v5693_v8  ;;  %v5739_v8 = vld [vmem:[#allocation5 + $0x158] ss:$12 sps:$4 sm:$0xff]  }
 0x725   :  { %1455 = vmatprep.subr.bf16.mxu0 %v5714_v44 }
 0x7b0   :  { %v954_v22 = vpop.xlane.xlu0 %953 }
 0x7b1   :  { %v955_v23 = vmul.f32 0.0078125, %v954_v22 }
 0x7b3   :  { %v956_v25 = vadd.f32 1e-06, %v955_v23 }
 0x7b5   :  { %5994 = vrsqrt.f32 %v956_v25 }
 0x7bf   :  { %v5995_v26 = vpop.eup %5994 }
 0x7c0   :  { %v958_v28 = vmul.f32 %v5995_v26, %v6980_v59 }
 0x7c2   :  { %v965_v29 = vmul.f32 %v4732_v27, %v958_v28 }
 0x7c4   :  { %v982_v30 = vpack.c.bf16 %v965_v29, %v965_v29 }
 0x7c6   :  { %1096 = vmatmul.mubr.bf16.vlgmr.msra.gmra.mrb[16].mxu0 %v982_v30 }
 0x7c7   :  { %1487 = vmatprep.mubr.bf16.mxu0 %v6512_v24  ;;  %1456 = vmatpush1.bf16.msra.mxu0 %v5712_v43 }
 0x7c8   :  { %1457 = vmatprep.subr.bf16.mxu0 %v5718_v46 }
 0x7cb   :  { %1458 = vmatpush1.bf16.msra.mxu0 %v5716_v48 }
 0x7cc   :  { %1459 = vmatprep.subr.bf16.mxu0 %v5722_v49 }
 0x7cf   :  { %1460 = vmatpush1.bf16.msra.mxu0 %v5720_v51 }
 0x7d0   :  { %1461 = vmatprep.subr.bf16.mxu0 %v5726_v62 }
 0x7d3   :  { %1462 = vmatpush1.bf16.msra.mxu0 %v5724_v63 }
 0x7d4   :  { %1463 = vmatprep.subr.bf16.mxu0 %v5730_v2 }
 0x7d7   :  { %1464 = vmatpush1.bf16.msra.mxu0 %v5728_v3  ;;  %v5748_v3 = vld [vmem:[#allocation7 + $0x60] sm:$0xff]  }
 0x7d8   :  { %1465 = vmatprep.subr.bf16.mxu0 %v5734_v5  ;;  %v5750_v5 = vld [vmem:[#allocation7 + $0x70] sm:$0xff]  }
 0x899   :  { %v1097_v35 = vpop.f32.mrb[16].mxu0 }
 0x89a   :  { %v1104_v36 = vmax.f32 %v1097_v35, 0.0  ;;  %v1099_v37 = vpop.f32.mrb[17].mxu0 }
 0x89b   :  { %v1105_v38 = vmax.f32 %v1099_v37, 0.0  ;;  %v1101_v39 = vpop.f32.mrb[18].mxu0 }
 0x89c   :  { %v1102_v40 = vpop.f32.mrb[19].mxu0  ;;  %v1138_v42 = vpack.c.bf16 %v1104_v36, %v1104_v36 }
 0x89d   :  { %v1139_v41 = vpack.c.bf16 %v1105_v38, %v1105_v38 }
 0x89f   :  { %1268 = vmatprep.mubr.bf16.mxu1 %v1139_v41 }
 0x8a0   :  { %1269 = vmatmul.mubr.bf16.vlgmr.msra.gmra.mrb[16].mxu1 %v1138_v42 }
 0x8a1   :  { %5328 = vmatprep.mubr.msk.bf16.mxu1 %vm6513_vm0, %v6511_v0  ;;  %5313 = vmatpush3.bf16.msra.mxu1 %v5715_v45 }
 0x8a2   :  { %5314 = vmatprep.subr.bf16.mxu1 %v6511_v0 }
 0x8a5   :  { %5315 = vmatpush3.bf16.msra.mxu1 %v5719_v47 }
 0x8a6   :  { %5316 = vmatprep.subr.bf16.mxu1 %v6511_v0 }
 0x8a9   :  { %5317 = vmatpush3.bf16.msra.mxu1 %v5723_v50 }
 0x8aa   :  { %5318 = vmatprep.subr.bf16.mxu1 %v6511_v0 }
 0x8ad   :  { %5319 = vmatpush3.bf16.msra.mxu1 %v5727_v1 }
 0x8ae   :  { %5320 = vmatprep.subr.bf16.mxu1 %v6511_v0 }
 0x8b1   :  { %5321 = vmatpush3.bf16.msra.mxu1 %v5731_v4  ;;  %v5749_v4 = vld [vmem:[#allocation7 + $0x68] sm:$0xff]  }
 0x8b2   :  { %5322 = vmatprep.subr.bf16.mxu1 %v6511_v0 }
 0x8b5   :  { %5323 = vmatpush3.bf16.msra.mxu1 %v5735_v6 }
 0x8b6   :  { %5324 = vmatprep.subr.bf16.mxu1 %v6511_v0 }
 0x8b9   :  { %5325 = vmatpush3.bf16.msra.mxu1 %v5739_v8 }
 0x8ba   :  { %5326 = vmatprep.subr.bf16.mxu1 %v6511_v0 }
 0x8bd   :  { %5327 = vmatpush3.bf16.msra.mxu1 %v5743_v11  ;;  %v5745_v11 = vld [vmem:[#allocation7 + $0x48] sm:$0xff]  }
 0x8be   :  { %5338 = vmatprep.subr.bf16.mxu1 %v6511_v0 }
 0x973   :  { %v5053_v52 = vpop.f32.mrb[16].mxu1 }
 0x974   :  { %v5054_v54 = vpop.f32.mrb[17].mxu1 }
 0x975   :  { %v5055_v55 = vadd.f32 %v5054_v54, %v5053_v52  ;;  %v5056_v56 = vpop.f32.mrb[18].mxu1 }
 0x976   :  { %v5057_v57 = vpop.f32.mrb[19].mxu1 }
 0x977   :  { %v6993_v58 = vadd.f32 %v5055_v55, %v6980_v59  ;;  %v5732_v59 = vld [vmem:[#allocation5 + $0x138] ss:$12 sps:$4 sm:$0xff]  }
 0x978   :  { %1466 = vmatpush1.bf16.msra.mxu0 %v5732_v59 }
 0x979   :  { %v1279_v61 = vmul.f32 %v6993_v58, %v6993_v58  ;;  %1467 = vmatprep.subr.bf16.mxu0 %v5738_v33 }
 0x97b   :  { %1280 = vadd.xlane.f32.xlu0 %v1279_v61 }
 0x97c   :  { %1468 = vmatpush1.bf16.msra.mxu0 %v5736_v7 }
 0x97d   :  { %1469 = vmatprep.subr.bf16.mxu0 %v5742_v9  ;;  %v5744_v9 = vld [vmem:[#allocation7 + $0x40] sm:$0xff]  }
 0x980   :  { %1470 = vmatpush1.bf16.msra.mxu0 %v5740_v10 }
 0x981   :  { %5332 = vmatprep.subr.bf16.mxu0 %v6511_v0 }
 0xa08   :  { %v1281_v12 = vpop.xlane.xlu0 %1280 }
 0xa09   :  { %v1282_v13 = vmul.f32 0.0078125, %v1281_v12  ;;  %v5746_v12 = vld [vmem:[#allocation7 + $0x50] sm:$0xff]  }
 0xa0b   :  { %v1283_v14 = vadd.f32 1e-06, %v1282_v13  ;;  %v5747_v13 = vld [vmem:[#allocation7 + $0x58] sm:$0xff]  }
 0xa0d   :  { %5996 = vrsqrt.f32 %v1283_v14  ;;  %v5751_v14 = vld [vmem:[#allocation7 + $0x78] sm:$0xff]  }
 0xa17   :  { %v5997_v15 = vpop.eup %5996 }
 0xa18   :  { %v1285_v17 = vmul.f32 %v5997_v15, %v6993_v58 }
 0xa1a   :  { %v1292_v18 = vmul.f32 %v4765_v16, %v1285_v17 }
 0xa1c   :  { %v1326_v19 = vpack.c.bf16 %v1292_v18, %v1292_v18 }
 0xa1e   :  { %1488 = vmatmul.mubr.bf16.vlgmr.msra.gmra.mrb[20].mxu0 %v1326_v19  ;;  %5329 = vmatmul.mubr.bf16.vlgmr.msra.gmra.mrb[20].mxu1 %v1326_v19 }
 0xa1f   :  { %5334 = vmatprep.mubr.msk.bf16.mxu0 %vm6513_vm0, %v6511_v0  ;;  %5340 = vmatprep.mubr.msk.bf16.mxu1 %vm6513_vm0, %v6511_v0 }
 0xaf1   :  { %v1489_v20 = vpop.f32.mrb[20].mxu0  ;;  %v1530_v21 = vpop.f32.mrb[20].mxu1 }
 0xaf2   :  { %v1553_v22 = vpack.c.bf16 %v1489_v20, %v1489_v20  ;;  %v1613_v23 = vpack.c.bf16 %v1530_v21, %v1530_v21  ;;  %v1491_v25 = vpop.f32.mrb[21].mxu0  ;;  %v5330_v26 = vpop.f32.mrb[21].mxu1 }
 0xaf3   :  { %v1554_v27 = vpack.c.bf16 %v1491_v25, %v1491_v25  ;;  %v1493_v28 = vpop.f32.mrb[22].mxu0  ;;  %v1533_v29 = vpop.f32.mrb[22].mxu1  ;;  %v5752_v26 = vld [vmem:[#allocation10 + $0x80] ss:$8 sps:$4 sm:$0xff]  }
 0xaf4   :  { %v1618_v30 = vsel %vm657_vm1, %v1613_v23, 0  ;;  %v5331_v31 = vpop.f32.mrb[23].mxu1  ;;  %1662 = vrot.lane.b32.xlu1 %v1553_v22, %s6493_s23  ;;  %v1494_v32 = vpop.f32.mrb[23].mxu0  ;;  %v5757_v28 = vld [vmem:[#allocation10 + $0x94] ss:$8 sps:$4 sm:$0xff]  }
 0xaf5   :  { %v1559_v34 = vsel %vm593_vm2, %v1554_v27, 0  ;;  %5339 = vmatpush3.bf16.msra.mxu1 %v1618_v30  ;;  %1665 = vrot.lane.b32.xlu0 %v1554_v27, %s6493_s23  ;;  %v5754_v27 = vld [vmem:[#allocation10 + $0x84] ss:$8 sps:$4 sm:$0xff]   ;;  %v5755_v31 = vld [vmem:[#allocation10 + $0x90] ss:$8 sps:$4 sm:$0xff]  }
 0xaf6   :  { %5333 = vmatpush3.bf16.xpose.msra.mxu0 %v1559_v34  ;;  %5350 = vmatprep.subr.bf16.mxu1 %v6511_v0  ;;  %v5760_v34 = vld [vmem:[#allocation10 + $0xa4] ss:$8 sps:$4 sm:$0xff]  }
 0xaf7   :  { %5344 = vmatprep.subr.bf16.mxu0 %v6511_v0 }
 0xafd   :  { %5335 = vmatmul.mubr.msk.bf16.vlgmr.msra.gmra.mrb[24].mxu0 %vm593_vm2, %v1553_v22 }
 0xafe   :  { %5346 = vmatprep.mubr.msk.bf16.mxu0 %vm6513_vm0, %v6511_v0 }
 0xb66   :  { %v1663_v37 = vpop.permute.xlu1 %1662 }
 0xb67   :  { %v1666_v35 = vpop.permute.xlu0 %1665 }
 0xb68   :  { %v1671_v36 = vsel %vm593_vm2, %v1666_v35, 0 }
 0xb69   :  { %5345 = vmatpush3.bf16.xpose.msra.mxu0 %v1671_v36  ;;  %v5758_v36 = vld [vmem:[#allocation10 + $0xa0] ss:$8 sps:$4 sm:$0xff]  }
 0xb6a   :  { %5356 = vmatprep.subr.bf16.mxu0 %v6511_v0 }
 0xb70   :  { %5347 = vmatmul.mubr.msk.bf16.vlgmr.msra.gmra.mrb[28].mxu0 %vm593_vm2, %v1663_v37 }
 0xb71   :  { %5364 = vmatprep.mubr.msk.bf16.mxu0 %vm6513_vm0, %v6511_v0  ;;  %5357 = vmatpush3.bf16.msra.mxu0 %v5748_v3  ;;  %v5792_v3 = vld [vmem:[#allocation11 + $0xe0] sm:$0xff]  }
 0xb72   :  { %5358 = vmatprep.subr.bf16.mxu0 %v6511_v0 }
 0xb75   :  { %5359 = vmatpush3.bf16.msra.mxu0 %v5749_v4  ;;  %v5793_v4 = vld [vmem:[#allocation11 + $0xa0] sm:$0xff]  }
 0xb76   :  { %5360 = vmatprep.subr.bf16.mxu0 %v6511_v0 }
 0xb79   :  { %5361 = vmatpush3.bf16.msra.mxu0 %v5750_v5  ;;  %v5794_v5 = vld [vmem:[#allocation11 + $0xe8] sm:$0xff]  }
 0xb7a   :  { %5362 = vmatprep.subr.bf16.mxu0 %v6511_v0 }
 0xb7d   :  { %5363 = vmatpush3.bf16.msra.mxu0 %v5751_v14 }
 0xb7e   :  { %2024 = vmatprep.subr.bf16.mxu0 %v5754_v27  ;;  %v5782_v27 = vld [vmem:[#allocation16 + $0x30] sm:$0xff]  }
 0xbd0   :  { %v1595_v38 = vpop.f32.mrb[24].mxu0 }
 0xbd1   :  { %v1596_v39 = vadd.f32 %v1595_v38, %v6948_v53  ;;  %v5336_v40 = vpop.f32.mrb[25].mxu0 }
 0xbd2   :  { %v1598_v41 = vpop.f32.mrb[26].mxu0  ;;  %v7049_v40 = vld [vmem:[%s7315_s10] sm:$0x1] }
 0xbd3   :  { %v5337_v42 = vpop.f32.mrb[27].mxu0  ;;  %v1601_v43 = vsel %vm640_vm3, %v1596_v39, -inf }
 0xbd4   :  { %1602 = vmax.xlane.f32.xlu1 %v1601_v43 }
 0xc43   :  { %v1707_v44 = vpop.f32.mrb[28].mxu0 }
 0xc44   :  { %v1708_v45 = vadd.f32 %v6955_v60, %v1707_v44  ;;  %v5348_v46 = vpop.f32.mrb[29].mxu0  ;;  %v2256_v44 = vmul.f32 %v7049_v40, %v7049_v40 }
 0xc45   :  { %v1710_v47 = vpop.f32.mrb[30].mxu0 }
 0xc46   :  { %v5349_v48 = vpop.f32.mrb[31].mxu0  ;;  %v1713_v49 = vsel %vm640_vm3, %v1708_v45, -inf  ;;  %v2258_v46 = vsel %vm2257_vm4, %v2256_v44, 0.0  ;;  %v5763_v47 = vld [vmem:[#allocation10 + $0xb4] ss:$8 sps:$4 sm:$0xff]   ;;  %v5800_v44 = vld [vmem:[#allocation17] sm:$0xff]  }
 0xc47   :  { %1714 = vmax.xlane.f32.xlu0 %v1713_v49  ;;  %v5761_v48 = vld [vmem:[#allocation10 + $0xb0] ss:$8 sps:$4 sm:$0xff]   ;;  %v5766_v49 = vld [vmem:[#allocation10 + $0xc4] ss:$8 sps:$4 sm:$0xff]  }
 0xc61   :  { %v1603_v50 = vpop.xlane.xlu1 %1602 }
 0xc62   :  { %v1604_v51 = vsub.f32 %v1596_v39, %v1603_v50  ;;  %v5764_v50 = vld [vmem:[#allocation10 + $0xc0] ss:$8 sps:$4 sm:$0xff]  }
 0xc64   :  { %v1605_v52 = vmul.f32 1.442695, %v1604_v51  ;;  %v5767_v51 = vld [vmem:[#allocation10 + $0xd0] ss:$8 sps:$4 sm:$0xff]  }
 0xc66   :  { %5998 = vpow2.f32 %v1605_v52  ;;  %v5772_v52 = vld [vmem:[#allocation10 + $0xe4] ss:$8 sps:$4 sm:$0xff]  }
 0xc70   :  { %v5999_v53 = vpop.eup %5998 }
 0xc71   :  { %v1607_v54 = vsel %vm640_vm3, %v5999_v53, 0.0 }
 0xc72   :  { %1608 = vadd.xlane.f32.xlu1 %v1607_v54  ;;  %v5775_v54 = vld [vmem:[#allocation10 + $0xf4] ss:$8 sps:$4 sm:$0xff]  }
 0xcd4   :  { %v1715_v55 = vpop.xlane.xlu0 %1714 }
 0xcd5   :  { %v1716_v56 = vsub.f32 %v1708_v45, %v1715_v55  ;;  %v5773_v55 = vld [vmem:[#allocation10 + $0xf0] ss:$8 sps:$4 sm:$0xff]  }
 0xcd7   :  { %v1717_v57 = vmul.f32 1.442695, %v1716_v56  ;;  %v5784_v56 = vld [vmem:[#allocation11 + $0xc0] sm:$0xff]  }
 0xcd9   :  { %6000 = vpow2.f32 %v1717_v57  ;;  %v5785_v57 = vld [vmem:[#allocation11 + $0x80] sm:$0xff]  }
 0xce3   :  { %v6001_v61 = vpop.eup %6000 }
 0xce4   :  { %v1719_v60 = vsel %vm640_vm3, %v6001_v61, 0.0 }
 0xce5   :  { %1720 = vadd.xlane.f32.xlu1 %v1719_v60  ;;  %v5787_v60 = vld [vmem:[#allocation11 + $0x88] sm:$0xff]  }
 0xcf6   :  { %1726 = vrot.lane.b32.xlu1 %v1613_v23, %s6493_s23 }
 0xcff   :  { %v1609_v62 = vpop.xlane.xlu1 %1608 }
 0xd00   :  { %6002 = vrcp.f32 %v1609_v62  ;;  %v5788_v62 = vld [vmem:[#allocation11 + $0xd0] sm:$0xff]  }
 0xd0a   :  { %v6003_v63 = vpop.eup %6002 }
 0xd0b   :  { %v1611_v1 = vmul.f32 %v6003_v63, %v5999_v53  ;;  %v5770_v53 = vld [vmem:[#allocation10 + $0xe0] ss:$8 sps:$4 sm:$0xff]   ;;  %v5789_v63 = vld [vmem:[#allocation11 + $0x90] sm:$0xff]  }
 0xd0d   :  { %v1612_v2 = vpack.c.bf16 %v1611_v1, %v1611_v1  ;;  %v5790_v1 = vld [vmem:[#allocation11 + $0xd8] sm:$0xff]  }
 0xd0f   :  { %5341 = vmatmul.mubr.msk.bf16.vlgmr.msra.gmra.mrb[24].mxu1 %vm640_vm3, %v1612_v2  ;;  %v5791_v2 = vld [vmem:[#allocation11 + $0x98] sm:$0xff]  }
 0xd10   :  { %5352 = vmatprep.mubr.msk.bf16.mxu1 %vm6513_vm0, %v6511_v0 }
 0xd72   :  { %v1721_v59 = vpop.xlane.xlu1 %1720 }
 0xd73   :  { %6004 = vrcp.f32 %v1721_v59  ;;  %v5795_v59 = vld [vmem:[#allocation11 + $0xa8] sm:$0xff]  }
 0xd76   :  { %v1727_v6 = vpop.permute.xlu1 %1726 }
 0xd77   :  { %v1732_v33 = vsel %vm657_vm1, %v1727_v6, 0  ;;  %v5796_v6 = vld [vmem:[#allocation11 + $0xf0] sm:$0xff]  }
 0xd78   :  { %5351 = vmatpush3.bf16.msra.mxu1 %v1732_v33  ;;  %v5797_v33 = vld [vmem:[#allocation11 + $0xb0] sm:$0xff]  }
 0xd79   :  { %5368 = vmatprep.subr.bf16.mxu1 %v6511_v0 }
 0xd7d   :  { %v6005_v7 = vpop.eup %6004 }
 0xd7e   :  { %v1723_v8 = vmul.f32 %v6005_v7, %v6001_v61  ;;  %v5786_v61 = vld [vmem:[#allocation11 + $0xc8] sm:$0xff]  }
 0xd80   :  { %v1724_v10 = vpack.c.bf16 %v1723_v8, %v1723_v8 }
 0xd82   :  { %5353 = vmatmul.mubr.msk.bf16.vlgmr.msra.gmra.mrb[28].mxu1 %vm640_vm3, %v1724_v10 }
 0xd83   :  { %5369 = vmatpush3.bf16.msra.mxu1 %v5744_v9  ;;  %5376 = vmatprep.mubr.msk.bf16.mxu1 %vm6513_vm0, %v6511_v0 }
 0xd84   :  { %5370 = vmatprep.subr.bf16.mxu1 %v6511_v0 }
 0xd87   :  { %5371 = vmatpush3.bf16.msra.mxu1 %v5745_v11  ;;  %v4804_v11 = vld [vmem:[#allocation8 + $0x1] ss:$0 sm:$0xff] }
 0xd88   :  { %5372 = vmatprep.subr.bf16.mxu1 %v6511_v0 }
 0xd8b   :  { %5373 = vmatpush3.bf16.msra.mxu1 %v5746_v12 }
 0xd8c   :  { %5374 = vmatprep.subr.bf16.mxu1 %v6511_v0 }
 0xd8f   :  { %5375 = vmatpush3.bf16.msra.mxu1 %v5747_v13 }
 0xd90   :  { %5086 = vmatprep.subr.bf16.mxu1 %v5784_v56 }
 0xde2   :  { %v1654_v15 = vpop.f32.mrb[24].mxu1 }
 0xde3   :  { %v1660_v16 = vpack.c.bf16 %v1654_v15, %v1654_v15  ;;  %v5342_v17 = vpop.f32.mrb[25].mxu1  ;;  %v5776_v15 = vld [vmem:[#allocation16] sm:$0xff]  }
 0xde4   :  { %v1657_v18 = vpop.f32.mrb[26].mxu1 }
 0xde5   :  { %v5343_v19 = vpop.f32.mrb[27].mxu1  ;;  %5377 = vmatmul.mubr.msk.bf16.vlgmr.msra.gmra.mrb[32].mxu1 %vm593_vm2, %v1660_v16  ;;  %v5777_v18 = vld [vmem:[#allocation16 + $0x8] sm:$0xff]  }
 0xde6   :  { %5087 = vmatpush3.bf16.msra.mxu1 %v5785_v57  ;;  %v5808_v57 = vld [vmem:[#allocation22] ss:$8 sps:$4 sm:$0xff]  }
 0xde7   :  { %5088 = vmatprep.subr.bf16.mxu1 %v5786_v61  ;;  %v5810_v61 = vld [vmem:[#allocation22 + $0x4] ss:$8 sps:$4 sm:$0xff]  }
 0xdea   :  { %5089 = vmatpush3.bf16.msra.mxu1 %v5787_v60  ;;  %v5813_v60 = vld [vmem:[#allocation22 + $0x14] ss:$8 sps:$4 sm:$0xff]  }
 0xdeb   :  { %5090 = vmatprep.subr.bf16.mxu1 %v5788_v62  ;;  %v5811_v62 = vld [vmem:[#allocation22 + $0x10] ss:$8 sps:$4 sm:$0xff]  }
 0xdee   :  { %5091 = vmatpush3.bf16.msra.mxu1 %v5789_v63  ;;  %v5816_v63 = vld [vmem:[#allocation22 + $0x24] ss:$8 sps:$4 sm:$0xff]  }
 0xdef   :  { %5092 = vmatprep.subr.bf16.mxu1 %v5790_v1  ;;  %v5814_v1 = vld [vmem:[#allocation22 + $0x20] ss:$8 sps:$4 sm:$0xff]  }
 0xdf2   :  { %5093 = vmatpush3.bf16.msra.mxu1 %v5791_v2 }
 0xdf3   :  { %5094 = vmatprep.subr.bf16.mxu1 %v5792_v3 }
 0xdf6   :  { %5095 = vmatpush3.bf16.msra.mxu1 %v5793_v4 }
 0xdf7   :  { %5096 = vmatprep.subr.bf16.mxu1 %v5794_v5 }
 0xdfa   :  { %5097 = vmatpush3.bf16.msra.mxu1 %v5795_v59 }
 0xdfb   :  { %5098 = vmatprep.subr.bf16.mxu1 %v5796_v6 }
 0xdfe   :  { %5099 = vmatpush3.bf16.msra.mxu1 %v5797_v33 }
 0xe55   :  { %v1768_v20 = vpop.f32.mrb[28].mxu1 }
 0xe56   :  { %v1774_v21 = vpack.c.bf16 %v1768_v20, %v1768_v20  ;;  %v5354_v22 = vpop.f32.mrb[29].mxu1  ;;  %v5778_v20 = vld [vmem:[#allocation16 + $0x10] sm:$0xff]  }
 0xe57   :  { %v1771_v23 = vpop.f32.mrb[30].mxu1  ;;  %v5780_v22 = vld [vmem:[#allocation16 + $0x20] sm:$0xff]  }
 0xe58   :  { %v5355_v25 = vpop.f32.mrb[31].mxu1  ;;  %5365 = vmatmul.mubr.msk.bf16.vlgmr.msra.gmra.mrb[32].mxu0 %vm593_vm2, %v1774_v21  ;;  %v5779_v21 = vld [vmem:[#allocation16 + $0x18] sm:$0xff]  }
 0xe59   :  { %2056 = vmatprep.mubr.bf16.mxu0 %v6512_v24  ;;  %2025 = vmatpush1.bf16.msra.mxu0 %v5752_v26  ;;  %v5781_v25 = vld [vmem:[#allocation16 + $0x28] sm:$0xff]  }
 0xe5a   :  { %2026 = vmatprep.subr.bf16.mxu0 %v5757_v28  ;;  %v2255_v28 = vld [vmem:[#allocation14] sm:$0x1] }
 0xe5d   :  { %2027 = vmatpush1.bf16.msra.mxu0 %v5755_v31 }
 0xe5e   :  { %2028 = vmatprep.subr.bf16.mxu0 %v5760_v34  ;;  %v5799_v34 = vld [vmem:[#allocation11 + $0xb8] sm:$0xff]  }
 0xe61   :  { %2029 = vmatpush1.bf16.msra.mxu0 %v5758_v36 }
 0xe62   :  { %2030 = vmatprep.subr.bf16.mxu0 %v5763_v47  ;;  %v5802_v47 = vld [vmem:[#allocation17 + $0x10] sm:$0xff]  }
 0xe65   :  { %2031 = vmatpush1.bf16.msra.mxu0 %v5761_v48  ;;  %v5803_v48 = vld [vmem:[#allocation17 + $0x18] sm:$0xff]  }
 0xe66   :  { %2032 = vmatprep.subr.bf16.mxu0 %v5766_v49  ;;  %v5804_v49 = vld [vmem:[#allocation17 + $0x20] sm:$0xff]  }
 0xe69   :  { %2033 = vmatpush1.bf16.msra.mxu0 %v5764_v50  ;;  %v5805_v50 = vld [vmem:[#allocation17 + $0x28] sm:$0xff]  }
 0xeb8   :  { %v1903_v29 = vpop.f32.mrb[32].mxu1 }
 0xeb9   :  { %v5378_v30 = vpop.f32.mrb[33].mxu1 }
 0xeba   :  { %v1906_v32 = vpop.f32.mrb[34].mxu1  ;;  %v5783_v30 = vld [vmem:[#allocation16 + $0x38] sm:$0xff]  }
 0xebb   :  { %v5379_v35 = vpop.f32.mrb[35].mxu1  ;;  %v5798_v32 = vld [vmem:[#allocation11 + $0xf8] sm:$0xff]  }
 0xebc   :  { %5100 = vmatprep.subr.bf16.mxu1 %v5798_v32 }
 0xebd   :  { %5101 = vmatpush3.bf16.msra.mxu1 %v5799_v34 }
 0xebe   :  { %5400 = vmatprep.subr.bf16.mxu1 %v6511_v0 }
 0xf2b   :  { %v1836_v37 = vpop.f32.mrb[32].mxu0 }
 0xf2c   :  { %v1904_v38 = vadd.f32 %v1903_v29, %v1836_v37  ;;  %v5366_v39 = vpop.f32.mrb[33].mxu0 }
 0xf2d   :  { %v1839_v41 = vpop.f32.mrb[34].mxu0 }
 0xf2e   :  { %v7052_v42 = vadd.f32 %v1904_v38, %v6993_v58  ;;  %v5367_v43 = vpop.f32.mrb[35].mxu0  ;;  %v5769_v58 = vld [vmem:[#allocation10 + $0xd4] ss:$8 sps:$4 sm:$0xff]  }
 0xf2f   :  { %2034 = vmatprep.subr.bf16.mxu0 %v5769_v58  ;;  %v5806_v58 = vld [vmem:[#allocation17 + $0x30] sm:$0xff]  }
 0xf30   :  { %v1912_v45 = vmul.f32 %v7052_v42, %v7052_v42  ;;  %2035 = vmatpush1.bf16.msra.mxu0 %v5767_v51 }
 0xf31   :  { %2036 = vmatprep.subr.bf16.mxu0 %v5772_v52  ;;  %v5807_v52 = vld [vmem:[#allocation17 + $0x38] sm:$0xff]  }
 0xf32   :  { %1913 = vadd.xlane.f32.xlu0 %v1912_v45 }
 0xf34   :  { %2037 = vmatpush1.bf16.msra.mxu0 %v5770_v53 }
 0xf35   :  { %2038 = vmatprep.subr.bf16.mxu0 %v5775_v54 }
 0xf36   :  { %2259 = vadd.xlane.f32.xlu0 %v2258_v46  ;;  %v5801_v46 = vld [vmem:[#allocation17 + $0x8] sm:$0xff]  }
 0xf38   :  { %2039 = vmatpush1.bf16.msra.mxu0 %v5773_v55 }
 0xf39   :  { %5380 = vmatprep.subr.bf16.mxu0 %v6511_v0 }
 0xfbf   :  { %v1914_v7 = vpop.xlane.xlu0 %1913 }
 0xfc0   :  { %v1915_v8 = vmul.f32 0.0078125, %v1914_v7  ;;  %v5819_v7 = vld [vmem:[#allocation22 + $0x34] ss:$8 sps:$4 sm:$0xff]  }
 0xfc2   :  { %v1916_v9 = vadd.f32 1e-06, %v1915_v8  ;;  %v5817_v8 = vld [vmem:[#allocation22 + $0x30] ss:$8 sps:$4 sm:$0xff]  }
 0xfc3   :  { %v2260_v14 = vpop.xlane.xlu0 %2259 }
 0xfc4   :  { %6006 = vrsqrt.f32 %v1916_v9  ;;  %v2261_v17 = vmul.f32 0.0078125, %v2260_v14  ;;  %v5820_v9 = vld [vmem:[#allocation22 + $0x40] ss:$8 sps:$4 sm:$0xff]   ;;  %v5828_v14 = vld [vmem:[#allocation22 + $0x64] ss:$8 sps:$4 sm:$0xff]  }
 0xfc6   :  { %v2262_v19 = vadd.f32 1e-06, %v2261_v17  ;;  %v5826_v17 = vld [vmem:[#allocation22 + $0x60] ss:$8 sps:$4 sm:$0xff]  }
 0xfc8   :  { %6008 = vrsqrt.f32 %v2262_v19  ;;  %v5831_v19 = vld [vmem:[#allocation22 + $0x74] ss:$8 sps:$4 sm:$0xff]  }
 0xfce   :  { %v6007_v10 = vpop.eup %6006 }
 0xfcf   :  { %v1918_v12 = vmul.f32 %v6007_v10, %v7052_v42  ;;  %v5822_v10 = vld [vmem:[#allocation22 + $0x44] ss:$8 sps:$4 sm:$0xff]  }
 0xfd1   :  { %v1925_v13 = vmul.f32 %v4804_v11, %v1918_v12  ;;  %v5825_v11 = vld [vmem:[#allocation22 + $0x54] ss:$8 sps:$4 sm:$0xff]   ;;  %v5832_v12 = vld [vmem:[#allocation20] sm:$0xff]  }
 0xfd2   :  { %v6009_v23 = vpop.eup %6008 }
 0xfd3   :  { %v1943_v16 = vpack.c.bf16 %v1925_v13, %v1925_v13  ;;  %v2264_v26 = vmul.f32 %v6009_v23, %v7049_v40  ;;  %v5823_v13 = vld [vmem:[#allocation22 + $0x50] ss:$8 sps:$4 sm:$0xff]  }
 0xfd4   :  { %v5829_v23 = vld [vmem:[#allocation22 + $0x70] ss:$8 sps:$4 sm:$0xff]  }
 0xfd5   :  { %2057 = vmatmul.mubr.bf16.vlgmr.msra.gmra.mrb[36].mxu0 %v1943_v16  ;;  %v2265_v29 = vmul.f32 %v2264_v26, %v2255_v28  ;;  %v5835_v26 = vld [vmem:[#allocation20 + $0x18] sm:$0xff]   ;;  %v5837_v28 = vld [vmem:[#allocation20 + $0x28] sm:$0xff]  }
 0xfd6   :  { %5381 = vmatpush3.bf16.msra.mxu0 %v5776_v15  ;;  %5396 = vmatprep.mubr.msk.bf16.mxu0 %vm6513_vm0, %v6511_v0 }
 0xfd7   :  { %5382 = vmatprep.subr.bf16.mxu0 %v6511_v0  ;;  %v2282_v31 = vpack.c.bf16 %v2265_v29, %v2265_v29  ;;  %v5838_v29 = vld [vmem:[#allocation20 + $0x30] sm:$0xff]  }
 0xfda   :  { %5383 = vmatpush3.bf16.msra.mxu0 %v5777_v18 }
 0xfdb   :  { %5384 = vmatprep.subr.bf16.mxu0 %v6511_v0 }
 0xfde   :  { %5385 = vmatpush3.bf16.msra.mxu0 %v5778_v20 }
 0xfdf   :  { %5386 = vmatprep.subr.bf16.mxu0 %v6511_v0 }
 0xfe2   :  { %5387 = vmatpush3.bf16.msra.mxu0 %v5779_v21 }
 0xfe3   :  { %5388 = vmatprep.subr.bf16.mxu0 %v6511_v0 }
 0xfe6   :  { %5389 = vmatpush3.bf16.msra.mxu0 %v5780_v22 }
 0xfe7   :  { %5390 = vmatprep.subr.bf16.mxu0 %v6511_v0 }
 0xfea   :  { %5391 = vmatpush3.bf16.msra.mxu0 %v5781_v25  ;;  %v5834_v25 = vld [vmem:[#allocation20 + $0x10] sm:$0xff]  }
 0xfeb   :  { %5392 = vmatprep.subr.bf16.mxu0 %v6511_v0 }
 0xfee   :  { %5393 = vmatpush3.bf16.msra.mxu0 %v5782_v27  ;;  %v5836_v27 = vld [vmem:[#allocation20 + $0x20] sm:$0xff]  }
 0xfef   :  { %5394 = vmatprep.subr.bf16.mxu0 %v6511_v0 }
 0xff2   :  { %5395 = vmatpush3.bf16.msra.mxu0 %v5783_v30  ;;  %v5839_v30 = vld [vmem:[#allocation20 + $0x38] sm:$0xff]  }
 0xff3   :  { %5420 = vmatprep.subr.bf16.mxu0 %v6511_v0 }
 0xff5   :  { %5397 = vmatmul.mubr.bf16.vlgmr.msra.gmra.mrb[40].mxu0 %v2282_v31 }
 0xff6   :  { %5436 = vmatprep.mubr.msk.bf16.mxu0 %vm6513_vm0, %v6511_v0  ;;  %5421 = vmatpush3.bf16.msra.mxu0 %v5832_v12 }
 0xff7   :  { %5422 = vmatprep.subr.bf16.mxu0 %v6511_v0 }
0x10a8   :  { %v2058_v35 = vpop.f32.mrb[36].mxu0 }
0x10a9   :  { %v2065_v36 = vmax.f32 %v2058_v35, 0.0  ;;  %v2060_v37 = vpop.f32.mrb[37].mxu0 }
0x10aa   :  { %v2066_v38 = vmax.f32 %v2060_v37, 0.0  ;;  %v2062_v39 = vpop.f32.mrb[38].mxu0 }
0x10ab   :  { %v2063_v41 = vpop.f32.mrb[39].mxu0  ;;  %v2100_v45 = vpack.c.bf16 %v2065_v36, %v2065_v36  ;;  %v4837_v36 = vld [vmem:[#allocation13] ss:$0 sm:$0xff] }
0x10ac   :  { %v2101_v43 = vpack.c.bf16 %v2066_v38, %v2066_v38 }
0x10ae   :  { %2230 = vmatprep.mubr.bf16.mxu1 %v2101_v43 }
0x10af   :  { %2231 = vmatmul.mubr.bf16.vlgmr.msra.gmra.mrb[36].mxu1 %v2100_v45 }
0x10b0   :  { %5401 = vmatpush3.bf16.msra.mxu1 %v5800_v44  ;;  %5416 = vmatprep.mubr.msk.bf16.mxu1 %vm6513_vm0, %v6511_v0 }
0x10b1   :  { %5402 = vmatprep.subr.bf16.mxu1 %v6511_v0 }
0x10b4   :  { %5403 = vmatpush3.bf16.msra.mxu1 %v5801_v46  ;;  %v2477_v46 = vld [vmem:[#allocation19] sm:$0x1] }
0x10b5   :  { %5404 = vmatprep.subr.bf16.mxu1 %v6511_v0 }
0x10b8   :  { %5405 = vmatpush3.bf16.msra.mxu1 %v5802_v47 }
0x10b9   :  { %5406 = vmatprep.subr.bf16.mxu1 %v6511_v0 }
0x10bc   :  { %5407 = vmatpush3.bf16.msra.mxu1 %v5803_v48 }
0x10bd   :  { %5408 = vmatprep.subr.bf16.mxu1 %v6511_v0 }
0x10c0   :  { %5409 = vmatpush3.bf16.msra.mxu1 %v5804_v49 }
0x10c1   :  { %5410 = vmatprep.subr.bf16.mxu1 %v6511_v0 }
0x10c4   :  { %5411 = vmatpush3.bf16.msra.mxu1 %v5805_v50 }
0x10c5   :  { %5412 = vmatprep.subr.bf16.mxu1 %v6511_v0 }
0x10c8   :  { %5413 = vmatpush3.bf16.msra.mxu1 %v5806_v58  ;;  %v2365_v51 = vpop.f32.mrb[40].mxu0 }
0x10c9   :  { %v5398_v53 = vpop.f32.mrb[41].mxu0  ;;  %5414 = vmatprep.subr.bf16.mxu1 %v6511_v0  ;;  %v2387_v55 = vpack.c.bf16 %v2365_v51, %v2365_v51 }
0x10ca   :  { %v2368_v54 = vpop.f32.mrb[42].mxu0 }
0x10cb   :  { %v5399_v56 = vpop.f32.mrb[43].mxu0 }
0x10cc   :  { %5415 = vmatpush3.bf16.msra.mxu1 %v5807_v52 }
0x10cd   :  { %2689 = vmatprep.subr.bf16.mxu1 %v5810_v61 }
0x10cf   :  { %5417 = vmatmul.mubr.bf16.vlgmr.msra.gmra.mrb[40].mxu1 %v2387_v55 }
0x10d0   :  { %2721 = vmatprep.mubr.bf16.mxu1 %v6512_v24  ;;  %2690 = vmatpush1.bf16.msra.mxu1 %v5808_v57 }
0x10d1   :  { %2691 = vmatprep.subr.bf16.mxu1 %v5813_v60 }
0x10d4   :  { %2692 = vmatpush1.bf16.msra.mxu1 %v5811_v62 }
0x10d5   :  { %2693 = vmatprep.subr.bf16.mxu1 %v5816_v63 }
0x10d8   :  { %2694 = vmatpush1.bf16.msra.mxu1 %v5814_v1 }
0x10d9   :  { %2695 = vmatprep.subr.bf16.mxu1 %v5819_v7 }
0x10dc   :  { %2696 = vmatpush1.bf16.msra.mxu1 %v5817_v8 }
0x10dd   :  { %2697 = vmatprep.subr.bf16.mxu1 %v5822_v10 }
0x10e0   :  { %2698 = vmatpush1.bf16.msra.mxu1 %v5820_v9 }
0x10e1   :  { %2699 = vmatprep.subr.bf16.mxu1 %v5825_v11 }
0x10e4   :  { %2700 = vmatpush1.bf16.msra.mxu1 %v5823_v13 }
0x10e5   :  { %2701 = vmatprep.subr.bf16.mxu1 %v5828_v14 }
0x10e8   :  { %2702 = vmatpush1.bf16.msra.mxu1 %v5826_v17 }
0x10e9   :  { %2703 = vmatprep.subr.bf16.mxu1 %v5831_v19 }
0x10ec   :  { %2704 = vmatpush1.bf16.msra.mxu1 %v5829_v23 }
0x10ed   :  { %5446 = vmatprep.subr.bf16.mxu1 %v6511_v0 }
0x1182   :  { %v5102_v2 = vpop.f32.mrb[36].mxu1 }
0x1183   :  { %v5103_v3 = vpop.f32.mrb[37].mxu1 }
0x1184   :  { %v5104_v4 = vadd.f32 %v5103_v3, %v5102_v2  ;;  %v5105_v5 = vpop.f32.mrb[38].mxu1 }
0x1185   :  { %v5106_v59 = vpop.f32.mrb[39].mxu1 }
0x1186   :  { %v2238_v6 = vadd.f32 %v5104_v4, %v7052_v42 }
0x1188   :  { %v2240_v33 = vmul.f32 %v2238_v6, %v2238_v6 }
0x118a   :  { %2241 = vadd.xlane.f32.xlu0 %v2240_v33 }
0x11a2   :  { %v2470_v15 = vpop.f32.mrb[40].mxu1 }
0x11a3   :  { %v7088_v42 = vadd.f32 %v2470_v15, %v7049_v40  ;;  %v5418_v16 = vpop.f32.mrb[41].mxu1  ;;  %v5833_v40 = vld [vmem:[#allocation20 + $0x8] sm:$0xff]  }
0x11a4   :  { %v2473_v18 = vpop.f32.mrb[42].mxu1  ;;  %5423 = vmatpush3.bf16.msra.mxu0 %v5833_v40 }
0x11a5   :  { %v5419_v20 = vpop.f32.mrb[43].mxu1  ;;  %v2478_v21 = vmul.f32 %v7088_v42, %v7088_v42  ;;  %5424 = vmatprep.subr.bf16.mxu0 %v6511_v0 }
0x11a7   :  { %v2479_v22 = vsel %vm2257_vm4, %v2478_v21, 0.0 }
0x11a8   :  { %2480 = vadd.xlane.f32.xlu0 %v2479_v22  ;;  %5425 = vmatpush3.bf16.msra.mxu0 %v5834_v25 }
0x11a9   :  { %5426 = vmatprep.subr.bf16.mxu0 %v6511_v0 }
0x11ac   :  { %5427 = vmatpush3.bf16.msra.mxu0 %v5835_v26  ;;  %v5844_v26 = vld [vmem:[#allocation23 + $0x20] sm:$0xff]  }
0x11ad   :  { %5428 = vmatprep.subr.bf16.mxu0 %v6511_v0 }
0x11b0   :  { %5429 = vmatpush3.bf16.msra.mxu0 %v5836_v27  ;;  %v5845_v27 = vld [vmem:[#allocation23 + $0x28] sm:$0xff]  }
0x11b1   :  { %5430 = vmatprep.subr.bf16.mxu0 %v6511_v0 }
0x11b4   :  { %5431 = vmatpush3.bf16.msra.mxu0 %v5837_v28  ;;  %v5846_v28 = vld [vmem:[#allocation23 + $0x30] sm:$0xff]  }
0x11b5   :  { %5432 = vmatprep.subr.bf16.mxu0 %v6511_v0 }
0x11b8   :  { %5433 = vmatpush3.bf16.msra.mxu0 %v5838_v29 }
0x11b9   :  { %5434 = vmatprep.subr.bf16.mxu0 %v6511_v0 }
0x11bc   :  { %5435 = vmatpush3.bf16.msra.mxu0 %v5839_v30 }
0x11bd   :  { %5440 = vmatprep.subr.bf16.mxu0 %v6511_v0 }
0x1217   :  { %v2242_v31 = vpop.xlane.xlu0 %2241 }
0x1218   :  { %v2243_v32 = vmul.f32 0.0078125, %v2242_v31 }
0x121a   :  { %v2244_v34 = vadd.f32 1e-06, %v2243_v32 }
0x121c   :  { %6010 = vrsqrt.f32 %v2244_v34 }
0x1226   :  { %v6011_v35 = vpop.eup %6010 }
0x1227   :  { %v2246_v37 = vmul.f32 %v6011_v35, %v2238_v6  ;;  %v5840_v35 = vld [vmem:[#allocation23] sm:$0xff]  }
0x1229   :  { %v2253_v38 = vmul.f32 %v4837_v36, %v2246_v37  ;;  %v5841_v37 = vld [vmem:[#allocation23 + $0x8] sm:$0xff]  }
0x122b   :  { %v7101_v39 = vpack.c.bf16 %v2253_v38, %v2253_v38  ;;  %v5842_v38 = vld [vmem:[#allocation23 + $0x10] sm:$0xff]  }
0x122d   :  { %2722 = vmatmul.mubr.bf16.vlgmr.msra.gmra.mrb[44].mxu1 %v7101_v39 }
0x122e   :  { %5448 = vmatprep.mubr.msk.bf16.mxu1 %vm6513_vm0, %v6511_v0 }
0x1235   :  { %v2481_v41 = vpop.xlane.xlu0 %2480 }
0x1236   :  { %v2482_v43 = vmul.f32 0.0078125, %v2481_v41  ;;  %v5843_v41 = vld [vmem:[#allocation23 + $0x18] sm:$0xff]  }
0x1238   :  { %v2483_v44 = vadd.f32 1e-06, %v2482_v43  ;;  %v5847_v43 = vld [vmem:[#allocation23 + $0x38] sm:$0xff]  }
0x123a   :  { %6012 = vrsqrt.f32 %v2483_v44 }
0x1244   :  { %v6013_v45 = vpop.eup %6012 }
0x1245   :  { %v2485_v47 = vmul.f32 %v6013_v45, %v7088_v42 }
0x1247   :  { %v2486_v48 = vmul.f32 %v2485_v47, %v2477_v46 }
0x1249   :  { %v2503_v49 = vpack.c.bf16 %v2486_v48, %v2486_v48 }
0x124b   :  { %5437 = vmatmul.mubr.bf16.vlgmr.msra.gmra.mrb[44].mxu0 %v2503_v49 }
0x124c   :  { %5442 = vmatprep.mubr.msk.bf16.mxu0 %vm6513_vm0, %v6511_v0 }
0x1300   :  { %v2723_v50 = vpop.f32.mrb[44].mxu1 }
0x1301   :  { %v2747_v58 = vpack.c.bf16 %v2723_v50, %v2723_v50  ;;  %v2725_v51 = vpop.f32.mrb[45].mxu1 }
0x1302   :  { %v2807_v52 = vpack.c.bf16 %v2725_v51, %v2725_v51  ;;  %v2727_v53 = vpop.f32.mrb[46].mxu1 }
0x1303   :  { %v2752_v54 = vsel %vm593_vm2, %v2747_v58, 0  ;;  %2859 = vrot.lane.b32.xlu1 %v2747_v58, %s6493_s23  ;;  %v2728_v55 = vpop.f32.mrb[47].mxu1  ;;  %v5848_v53 = vld [vmem:[#allocation26] ss:$8 sps:$4 sm:$0xff]  }
0x1304   :  { %v2812_v56 = vsel %vm657_vm1, %v2807_v52, 0  ;;  %5441 = vmatpush3.bf16.xpose.msra.mxu0 %v2752_v54  ;;  %v5850_v54 = vld [vmem:[#allocation26 + $0x4] ss:$8 sps:$4 sm:$0xff]   ;;  %v5853_v55 = vld [vmem:[#allocation26 + $0x14] ss:$8 sps:$4 sm:$0xff]  }
0x1305   :  { %5447 = vmatpush3.bf16.msra.mxu1 %v2812_v56  ;;  %5452 = vmatprep.subr.bf16.mxu0 %v6511_v0  ;;  %v5851_v56 = vld [vmem:[#allocation26 + $0x10] ss:$8 sps:$4 sm:$0xff]  }
0x1306   :  { %5458 = vmatprep.subr.bf16.mxu1 %v6511_v0 }
0x131e   :  { %v2586_v57 = vpop.f32.mrb[44].mxu0 }
0x131f   :  { %v2746_v61 = vpack.c.bf16 %v2586_v57, %v2586_v57  ;;  %v5438_v60 = vpop.f32.mrb[45].mxu0  ;;  %v5856_v57 = vld [vmem:[#allocation26 + $0x24] ss:$8 sps:$4 sm:$0xff]  }
0x1320   :  { %v2589_v62 = vpop.f32.mrb[46].mxu0 }
0x1321   :  { %2856 = vrot.lane.b32.xlu0 %v2746_v61, %s6493_s23  ;;  %v5439_v63 = vpop.f32.mrb[47].mxu0  ;;  %5443 = vmatmul.mubr.msk.bf16.vlgmr.msra.gmra.mrb[48].mxu0 %vm593_vm2, %v2746_v61 }
0x1322   :  { %5454 = vmatprep.mubr.msk.bf16.mxu0 %vm6513_vm0, %v6511_v0  ;;  %v5854_v63 = vld [vmem:[#allocation26 + $0x20] ss:$8 sps:$4 sm:$0xff]  }
0x1375   :  { %v2860_v1 = vpop.permute.xlu1 %2859 }
0x1376   :  { %v2865_v2 = vsel %vm593_vm2, %v2860_v1, 0 }
0x1377   :  { %5453 = vmatpush3.bf16.xpose.msra.mxu0 %v2865_v2 }
0x1378   :  { %5464 = vmatprep.subr.bf16.mxu0 %v6511_v0 }
0x1393   :  { %v2857_v3 = vpop.permute.xlu0 %2856 }
0x1394   :  { %5455 = vmatmul.mubr.msk.bf16.vlgmr.msra.gmra.mrb[52].mxu0 %vm593_vm2, %v2857_v3 }
0x1395   :  { %5472 = vmatprep.mubr.msk.bf16.mxu0 %vm6513_vm0, %v6511_v0  ;;  %5465 = vmatpush3.bf16.msra.mxu0 %v5844_v26  ;;  %v5881_v26 = vld [vmem:[#allocation28 + $0x20] sm:$0xff]  }
0x1396   :  { %5466 = vmatprep.subr.bf16.mxu0 %v6511_v0 }
0x1399   :  { %5467 = vmatpush3.bf16.msra.mxu0 %v5845_v27  ;;  %v5882_v27 = vld [vmem:[#allocation28 + $0x68] sm:$0xff]  }
0x139a   :  { %5468 = vmatprep.subr.bf16.mxu0 %v6511_v0 }
0x139d   :  { %5469 = vmatpush3.bf16.msra.mxu0 %v5846_v28  ;;  %v5883_v28 = vld [vmem:[#allocation28 + $0x28] sm:$0xff]  }
0x139e   :  { %5470 = vmatprep.subr.bf16.mxu0 %v6511_v0 }
0x13a1   :  { %5471 = vmatpush3.bf16.msra.mxu0 %v5847_v43  ;;  %v5886_v43 = vld [vmem:[#allocation28 + $0x78] sm:$0xff]  }
0x13a2   :  { %3211 = vmatprep.subr.bf16.mxu0 %v5850_v54  ;;  %v5890_v54 = vld [vmem:[#allocation16 + $0x50] sm:$0xff]  }
0x13f4   :  { %v2788_v4 = vpop.f32.mrb[48].mxu0 }
0x13f5   :  { %v5444_v5 = vpop.f32.mrb[49].mxu0  ;;  %v2795_v59 = vsel %vm2794_vm5, %v2788_v4, -inf }
0x13f6   :  { %2796 = vmax.xlane.f32.xlu1 %v2795_v59  ;;  %v2791_v6 = vpop.f32.mrb[50].mxu0 }
0x13f7   :  { %v5445_v33 = vpop.f32.mrb[51].mxu0 }
0x1467   :  { %v2901_v7 = vpop.f32.mrb[52].mxu0 }
0x1468   :  { %v5456_v8 = vpop.f32.mrb[53].mxu0  ;;  %v2907_v9 = vsel %vm2794_vm5, %v2901_v7, -inf }
0x1469   :  { %2908 = vmax.xlane.f32.xlu0 %v2907_v9  ;;  %v2904_v10 = vpop.f32.mrb[54].mxu0  ;;  %v5859_v8 = vld [vmem:[#allocation26 + $0x34] ss:$8 sps:$4 sm:$0xff]   ;;  %v5857_v9 = vld [vmem:[#allocation26 + $0x30] ss:$8 sps:$4 sm:$0xff]  }
0x146a   :  { %v5457_v11 = vpop.f32.mrb[55].mxu0  ;;  %v5862_v10 = vld [vmem:[#allocation26 + $0x44] ss:$8 sps:$4 sm:$0xff]  }
0x146b   :  { %v5860_v11 = vld [vmem:[#allocation26 + $0x40] ss:$8 sps:$4 sm:$0xff]  }
0x1483   :  { %v2797_v12 = vpop.xlane.xlu1 %2796 }
0x1484   :  { %v2798_v13 = vsub.f32 %v2788_v4, %v2797_v12  ;;  %v5865_v12 = vld [vmem:[#allocation26 + $0x54] ss:$8 sps:$4 sm:$0xff]  }
0x1486   :  { %v2799_v14 = vmul.f32 1.442695, %v2798_v13  ;;  %v5863_v13 = vld [vmem:[#allocation26 + $0x50] ss:$8 sps:$4 sm:$0xff]  }
0x1488   :  { %6014 = vpow2.f32 %v2799_v14  ;;  %v5866_v14 = vld [vmem:[#allocation26 + $0x60] ss:$8 sps:$4 sm:$0xff]  }
0x1492   :  { %v6015_v15 = vpop.eup %6014 }
0x1493   :  { %v2801_v16 = vsel %vm2794_vm5, %v6015_v15, 0.0 }
0x1494   :  { %2802 = vadd.xlane.f32.xlu1 %v2801_v16  ;;  %v5869_v16 = vld [vmem:[#allocation26 + $0x70] ss:$8 sps:$4 sm:$0xff]  }
0x14f6   :  { %v2909_v17 = vpop.xlane.xlu0 %2908 }
0x14f7   :  { %v2910_v18 = vsub.f32 %v2901_v7, %v2909_v17  ;;  %v5872_v17 = vld [vmem:[#allocation28 + $0x40] sm:$0xff]  }
0x14f9   :  { %v2911_v19 = vmul.f32 1.442695, %v2910_v18  ;;  %v5873_v18 = vld [vmem:[#allocation28] sm:$0xff]  }
0x14fb   :  { %6016 = vpow2.f32 %v2911_v19  ;;  %v5874_v19 = vld [vmem:[#allocation28 + $0x48] sm:$0xff]  }
0x1505   :  { %v6017_v20 = vpop.eup %6016 }
0x1506   :  { %v2913_v21 = vsel %vm2794_vm5, %v6017_v20, 0.0 }
0x1507   :  { %2914 = vadd.xlane.f32.xlu1 %v2913_v21  ;;  %v5876_v21 = vld [vmem:[#allocation28 + $0x50] sm:$0xff]  }
0x1518   :  { %2920 = vrot.lane.b32.xlu1 %v2807_v52, %s6493_s23 }
0x1521   :  { %v2803_v22 = vpop.xlane.xlu1 %2802 }
0x1522   :  { %6018 = vrcp.f32 %v2803_v22  ;;  %v5877_v22 = vld [vmem:[#allocation28 + $0x10] sm:$0xff]  }
0x152c   :  { %v6019_v23 = vpop.eup %6018 }
0x152d   :  { %v2805_v40 = vmul.f32 %v6019_v23, %v6015_v15  ;;  %v5871_v15 = vld [vmem:[#allocation26 + $0x74] ss:$8 sps:$4 sm:$0xff]  }
0x152e   :  { %v5878_v23 = vld [vmem:[#allocation28 + $0x58] sm:$0xff]  }
0x152f   :  { %v2806_v25 = vpack.c.bf16 %v2805_v40, %v2805_v40  ;;  %v5879_v40 = vld [vmem:[#allocation28 + $0x18] sm:$0xff]  }
0x1531   :  { %5449 = vmatmul.mubr.msk.bf16.vlgmr.msra.gmra.mrb[48].mxu1 %vm640_vm3, %v2806_v25  ;;  %v5880_v25 = vld [vmem:[#allocation28 + $0x60] sm:$0xff]  }
0x1532   :  { %5460 = vmatprep.mubr.msk.bf16.mxu1 %vm6513_vm0, %v6511_v0 }
0x1594   :  { %v2915_v29 = vpop.xlane.xlu1 %2914 }
0x1595   :  { %6020 = vrcp.f32 %v2915_v29  ;;  %v5884_v29 = vld [vmem:[#allocation28 + $0x70] sm:$0xff]  }
0x1598   :  { %v2921_v30 = vpop.permute.xlu1 %2920 }
0x1599   :  { %v2926_v31 = vsel %vm657_vm1, %v2921_v30, 0 }
0x159a   :  { %5459 = vmatpush3.bf16.msra.mxu1 %v2926_v31 }
0x159b   :  { %5476 = vmatprep.subr.bf16.mxu1 %v6511_v0 }
0x159f   :  { %v6021_v32 = vpop.eup %6020 }
0x15a0   :  { %v2917_v34 = vmul.f32 %v6021_v32, %v6017_v20  ;;  %v5875_v20 = vld [vmem:[#allocation28 + $0x8] sm:$0xff]  }
0x15a2   :  { %v2918_v36 = vpack.c.bf16 %v2917_v34, %v2917_v34 }
0x15a4   :  { %5461 = vmatmul.mubr.msk.bf16.vlgmr.msra.gmra.mrb[52].mxu1 %vm640_vm3, %v2918_v36 }
0x15a5   :  { %5477 = vmatpush3.bf16.msra.mxu1 %v5840_v35  ;;  %5484 = vmatprep.mubr.msk.bf16.mxu1 %vm6513_vm0, %v6511_v0  ;;  %v3104_v35 = vld [vmem:[#allocation25] sm:$0x1] }
0x15a6   :  { %5478 = vmatprep.subr.bf16.mxu1 %v6511_v0 }
0x15a9   :  { %5479 = vmatpush3.bf16.msra.mxu1 %v5841_v37 }
0x15aa   :  { %5480 = vmatprep.subr.bf16.mxu1 %v6511_v0 }
0x15ad   :  { %5481 = vmatpush3.bf16.msra.mxu1 %v5842_v38 }
0x15ae   :  { %5482 = vmatprep.subr.bf16.mxu1 %v6511_v0 }
0x15b1   :  { %5483 = vmatpush3.bf16.msra.mxu1 %v5843_v41  ;;  %v5885_v41 = vld [vmem:[#allocation28 + $0x30] sm:$0xff]  }
0x15b2   :  { %5153 = vmatprep.subr.bf16.mxu1 %v5872_v17 }
0x1604   :  { %v2848_v44 = vpop.f32.mrb[48].mxu1 }
0x1605   :  { %v2854_v45 = vpack.c.bf16 %v2848_v44, %v2848_v44  ;;  %v5450_v46 = vpop.f32.mrb[49].mxu1  ;;  %v5887_v44 = vld [vmem:[#allocation28 + $0x38] sm:$0xff]  }
0x1606   :  { %v2851_v47 = vpop.f32.mrb[50].mxu1 }
0x1607   :  { %v5451_v48 = vpop.f32.mrb[51].mxu1  ;;  %5485 = vmatmul.mubr.msk.bf16.vlgmr.msra.gmra.mrb[56].mxu1 %vm593_vm2, %v2854_v45 }
0x1608   :  { %5154 = vmatpush3.bf16.msra.mxu1 %v5873_v18 }
0x1609   :  { %5155 = vmatprep.subr.bf16.mxu1 %v5874_v19 }
0x160c   :  { %5156 = vmatpush3.bf16.msra.mxu1 %v5875_v20  ;;  %v5906_v20 = vld [vmem:[#allocation22 + $0x84] ss:$8 sps:$4 sm:$0xff]  }
0x160d   :  { %5157 = vmatprep.subr.bf16.mxu1 %v5876_v21 }
0x1610   :  { %5158 = vmatpush3.bf16.msra.mxu1 %v5877_v22  ;;  %v5904_v22 = vld [vmem:[#allocation22 + $0x80] ss:$8 sps:$4 sm:$0xff]  }
0x1611   :  { %5159 = vmatprep.subr.bf16.mxu1 %v5878_v23 }
0x1614   :  { %5160 = vmatpush3.bf16.msra.mxu1 %v5879_v40 }
0x1615   :  { %5161 = vmatprep.subr.bf16.mxu1 %v5880_v25  ;;  %v5909_v25 = vld [vmem:[#allocation22 + $0x94] ss:$8 sps:$4 sm:$0xff]  }
0x1618   :  { %5162 = vmatpush3.bf16.msra.mxu1 %v5881_v26 }
0x1619   :  { %5163 = vmatprep.subr.bf16.mxu1 %v5882_v27 }
0x161c   :  { %5164 = vmatpush3.bf16.msra.mxu1 %v5883_v28  ;;  %v5907_v28 = vld [vmem:[#allocation22 + $0x90] ss:$8 sps:$4 sm:$0xff]  }
0x161d   :  { %5165 = vmatprep.subr.bf16.mxu1 %v5884_v29  ;;  %v5912_v29 = vld [vmem:[#allocation22 + $0xa4] ss:$8 sps:$4 sm:$0xff]  }
0x1620   :  { %5166 = vmatpush3.bf16.msra.mxu1 %v5885_v41  ;;  %v5922_v41 = vld [vmem:[#allocation22 + $0xe0] ss:$8 sps:$4 sm:$0xff]  }
0x1621   :  { %5167 = vmatprep.subr.bf16.mxu1 %v5886_v43  ;;  %v5927_v43 = vld [vmem:[#allocation22 + $0xf4] ss:$8 sps:$4 sm:$0xff]  }
0x1624   :  { %5168 = vmatpush3.bf16.msra.mxu1 %v5887_v44  ;;  %v5925_v44 = vld [vmem:[#allocation22 + $0xf0] ss:$8 sps:$4 sm:$0xff]  }
0x1625   :  { %5508 = vmatprep.subr.bf16.mxu1 %v6511_v0 }
0x1677   :  { %v2962_v49 = vpop.f32.mrb[52].mxu1 }
0x1678   :  { %v2968_v50 = vpack.c.bf16 %v2962_v49, %v2962_v49  ;;  %v5462_v58 = vpop.f32.mrb[53].mxu1 }
0x1679   :  { %v2965_v51 = vpop.f32.mrb[54].mxu1 }
0x167a   :  { %v5463_v52 = vpop.f32.mrb[55].mxu1  ;;  %5473 = vmatmul.mubr.msk.bf16.vlgmr.msra.gmra.mrb[56].mxu0 %vm593_vm2, %v2968_v50 }
0x167b   :  { %3243 = vmatprep.mubr.bf16.mxu0 %v6512_v24  ;;  %3212 = vmatpush1.bf16.msra.mxu0 %v5848_v53  ;;  %v5888_v52 = vld [vmem:[#allocation16 + $0x40] sm:$0xff]   ;;  %v5889_v53 = vld [vmem:[#allocation16 + $0x48] sm:$0xff]  }
0x167c   :  { %3213 = vmatprep.subr.bf16.mxu0 %v5853_v55 }
0x167f   :  { %3214 = vmatpush1.bf16.msra.mxu0 %v5851_v56 }
0x1680   :  { %3215 = vmatprep.subr.bf16.mxu0 %v5856_v57 }
0x1683   :  { %3216 = vmatpush1.bf16.msra.mxu0 %v5854_v63 }
0x1684   :  { %3217 = vmatprep.subr.bf16.mxu0 %v5859_v8  ;;  %v5899_v8 = vld [vmem:[#allocation17 + $0x58] sm:$0xff]  }
0x1687   :  { %3218 = vmatpush1.bf16.msra.mxu0 %v5857_v9  ;;  %v5900_v9 = vld [vmem:[#allocation17 + $0x60] sm:$0xff]  }
0x1688   :  { %3219 = vmatprep.subr.bf16.mxu0 %v5862_v10  ;;  %v5901_v10 = vld [vmem:[#allocation17 + $0x68] sm:$0xff]  }
0x168b   :  { %3220 = vmatpush1.bf16.msra.mxu0 %v5860_v11  ;;  %v5902_v11 = vld [vmem:[#allocation17 + $0x70] sm:$0xff]  }
0x168c   :  { %3221 = vmatprep.subr.bf16.mxu0 %v5865_v12  ;;  %v5903_v12 = vld [vmem:[#allocation17 + $0x78] sm:$0xff]  }
0x168f   :  { %3222 = vmatpush1.bf16.msra.mxu0 %v5863_v13 }
0x16da   :  { %v3097_v61 = vpop.f32.mrb[56].mxu1 }
0x16db   :  { %v5486_v60 = vpop.f32.mrb[57].mxu1 }
0x16dc   :  { %v3100_v62 = vpop.f32.mrb[58].mxu1 }
0x16dd   :  { %v5487_v1 = vpop.f32.mrb[59].mxu1 }
0x174d   :  { %v3030_v2 = vpop.f32.mrb[56].mxu0 }
0x174e   :  { %v3098_v3 = vadd.f32 %v3097_v61, %v3030_v2  ;;  %v5474_v4 = vpop.f32.mrb[57].mxu0  ;;  %v5891_v2 = vld [vmem:[#allocation16 + $0x58] sm:$0xff]  }
0x174f   :  { %v3033_v5 = vpop.f32.mrb[58].mxu0  ;;  %v5893_v4 = vld [vmem:[#allocation16 + $0x68] sm:$0xff]  }
0x1750   :  { %v7146_v59 = vadd.f32 %v3098_v3, %v7088_v42  ;;  %v5475_v6 = vpop.f32.mrb[59].mxu0  ;;  %v5868_v42 = vld [vmem:[#allocation26 + $0x64] ss:$8 sps:$4 sm:$0xff]   ;;  %v5892_v3 = vld [vmem:[#allocation16 + $0x60] sm:$0xff]  }
0x1751   :  { %3223 = vmatprep.subr.bf16.mxu0 %v5868_v42  ;;  %v5894_v5 = vld [vmem:[#allocation16 + $0x70] sm:$0xff]   ;;  %v5896_v6 = vld [vmem:[#allocation17 + $0x40] sm:$0xff]  }
0x1752   :  { %v3105_v33 = vmul.f32 %v7146_v59, %v7146_v59  ;;  %3224 = vmatpush1.bf16.msra.mxu0 %v5866_v14 }
0x1753   :  { %3225 = vmatprep.subr.bf16.mxu0 %v5871_v15 }
0x1754   :  { %v3106_v7 = vsel %vm2257_vm4, %v3105_v33, 0.0  ;;  %v5897_v33 = vld [vmem:[#allocation17 + $0x48] sm:$0xff]  }
0x1755   :  { %3107 = vadd.xlane.f32.xlu0 %v3106_v7  ;;  %v5898_v7 = vld [vmem:[#allocation17 + $0x50] sm:$0xff]  }
0x1756   :  { %3226 = vmatpush1.bf16.msra.mxu0 %v5869_v16  ;;  %v3426_v16 = vld [vmem:[#allocation14 + $0x1] sm:$0x1] }
0x1757   :  { %5488 = vmatprep.subr.bf16.mxu0 %v6511_v0 }
0x17e2   :  { %v3108_v30 = vpop.xlane.xlu0 %3107 }
0x17e3   :  { %v3109_v31 = vmul.f32 0.0078125, %v3108_v30  ;;  %v5910_v30 = vld [vmem:[#allocation22 + $0xa0] ss:$8 sps:$4 sm:$0xff]  }
0x17e5   :  { %v3110_v32 = vadd.f32 1e-06, %v3109_v31  ;;  %v5915_v31 = vld [vmem:[#allocation22 + $0xb4] ss:$8 sps:$4 sm:$0xff]  }
0x17e7   :  { %6022 = vrsqrt.f32 %v3110_v32  ;;  %v5913_v32 = vld [vmem:[#allocation22 + $0xb0] ss:$8 sps:$4 sm:$0xff]  }
0x17f1   :  { %v6023_v34 = vpop.eup %6022 }
0x17f2   :  { %v3112_v36 = vmul.f32 %v6023_v34, %v7146_v59  ;;  %v5918_v34 = vld [vmem:[#allocation22 + $0xc4] ss:$8 sps:$4 sm:$0xff]  }
0x17f4   :  { %v3113_v37 = vmul.f32 %v3112_v36, %v3104_v35  ;;  %v5916_v35 = vld [vmem:[#allocation22 + $0xc0] ss:$8 sps:$4 sm:$0xff]   ;;  %v5921_v36 = vld [vmem:[#allocation22 + $0xd4] ss:$8 sps:$4 sm:$0xff]  }
0x17f6   :  { %v3130_v38 = vpack.c.bf16 %v3113_v37, %v3113_v37  ;;  %v5919_v37 = vld [vmem:[#allocation22 + $0xd0] ss:$8 sps:$4 sm:$0xff]  }
0x17f8   :  { %3244 = vmatmul.mubr.bf16.vlgmr.msra.gmra.mrb[60].mxu0 %v3130_v38  ;;  %v5924_v38 = vld [vmem:[#allocation22 + $0xe4] ss:$8 sps:$4 sm:$0xff]  }
0x17f9   :  { %5504 = vmatprep.mubr.msk.bf16.mxu0 %vm6513_vm0, %v6511_v0  ;;  %5489 = vmatpush3.bf16.msra.mxu0 %v5888_v52 }
0x17fa   :  { %5490 = vmatprep.subr.bf16.mxu0 %v6511_v0 }
0x17fd   :  { %5491 = vmatpush3.bf16.msra.mxu0 %v5889_v53 }
0x17fe   :  { %5492 = vmatprep.subr.bf16.mxu0 %v6511_v0 }
0x1801   :  { %5493 = vmatpush3.bf16.msra.mxu0 %v5890_v54  ;;  %v5932_v54 = vld [vmem:[#allocation20 + $0x60] sm:$0xff]  }
0x1802   :  { %5494 = vmatprep.subr.bf16.mxu0 %v6511_v0 }
0x1805   :  { %5495 = vmatpush3.bf16.msra.mxu0 %v5891_v2 }
0x1806   :  { %5496 = vmatprep.subr.bf16.mxu0 %v6511_v0 }
0x1809   :  { %5497 = vmatpush3.bf16.msra.mxu0 %v5892_v3 }
0x180a   :  { %5498 = vmatprep.subr.bf16.mxu0 %v6511_v0 }
0x180d   :  { %5499 = vmatpush3.bf16.msra.mxu0 %v5893_v4 }
0x180e   :  { %5500 = vmatprep.subr.bf16.mxu0 %v6511_v0 }
0x1811   :  { %5501 = vmatpush3.bf16.msra.mxu0 %v5894_v5 }
0x1812   :  { %5502 = vmatprep.subr.bf16.mxu0 %v6511_v0 }
0x18cb   :  { %v3245_v45 = vpop.f32.mrb[60].mxu0 }
0x18cc   :  { %v3252_v46 = vmax.f32 %v3245_v45, 0.0  ;;  %v3247_v47 = vpop.f32.mrb[61].mxu0  ;;  %v5928_v45 = vld [vmem:[#allocation20 + $0x40] sm:$0xff]  }
0x18cd   :  { %v3253_v48 = vmax.f32 %v3247_v47, 0.0  ;;  %v3249_v49 = vpop.f32.mrb[62].mxu0  ;;  %v5930_v47 = vld [vmem:[#allocation20 + $0x50] sm:$0xff]  }
0x18ce   :  { %v3250_v50 = vpop.f32.mrb[63].mxu0  ;;  %v3286_v51 = vpack.c.bf16 %v3252_v46, %v3252_v46  ;;  %v5929_v46 = vld [vmem:[#allocation20 + $0x48] sm:$0xff]  }
0x18cf   :  { %v3287_v58 = vpack.c.bf16 %v3253_v48, %v3253_v48  ;;  %v5931_v48 = vld [vmem:[#allocation20 + $0x58] sm:$0xff]  }
0x18d1   :  { %3416 = vmatprep.mubr.bf16.mxu1 %v3287_v58 }
0x18d2   :  { %3417 = vmatmul.mubr.bf16.vlgmr.msra.gmra.mrb[60].mxu1 %v3286_v51 }
0x18d3   :  { %5524 = vmatprep.mubr.msk.bf16.mxu1 %vm6513_vm0, %v6511_v0  ;;  %5509 = vmatpush3.bf16.msra.mxu1 %v5896_v6 }
0x18d4   :  { %5510 = vmatprep.subr.bf16.mxu1 %v6511_v0 }
0x18d7   :  { %5511 = vmatpush3.bf16.msra.mxu1 %v5897_v33  ;;  %v3650_v33 = vld [vmem:[#allocation19 + $0x1] sm:$0x1] }
0x18d8   :  { %5512 = vmatprep.subr.bf16.mxu1 %v6511_v0 }
0x18db   :  { %5513 = vmatpush3.bf16.msra.mxu1 %v5898_v7 }
0x18dc   :  { %5514 = vmatprep.subr.bf16.mxu1 %v6511_v0 }
0x18df   :  { %5515 = vmatpush3.bf16.msra.mxu1 %v5899_v8 }
0x18e0   :  { %5516 = vmatprep.subr.bf16.mxu1 %v6511_v0 }
0x18e3   :  { %5517 = vmatpush3.bf16.msra.mxu1 %v5900_v9 }
0x18e4   :  { %5518 = vmatprep.subr.bf16.mxu1 %v6511_v0 }
0x18e7   :  { %5519 = vmatpush3.bf16.msra.mxu1 %v5901_v10 }
0x18e8   :  { %5520 = vmatprep.subr.bf16.mxu1 %v6511_v0 }
0x18eb   :  { %5521 = vmatpush3.bf16.msra.mxu1 %v5902_v11 }
0x18ec   :  { %5522 = vmatprep.subr.bf16.mxu1 %v6511_v0 }
0x18ef   :  { %5523 = vmatpush3.bf16.msra.mxu1 %v5903_v12 }
0x18f0   :  { %3863 = vmatprep.subr.bf16.mxu1 %v5906_v20 }
0x19a5   :  { %v5169_v55 = vpop.f32.mrb[60].mxu1 }
0x19a6   :  { %v5170_v56 = vpop.f32.mrb[61].mxu1 }
0x19a7   :  { %v5171_v57 = vadd.f32 %v5170_v56, %v5169_v55  ;;  %v5172_v61 = vpop.f32.mrb[62].mxu1  ;;  %v5933_v55 = vld [vmem:[#allocation20 + $0x68] sm:$0xff]   ;;  %v5934_v56 = vld [vmem:[#allocation20 + $0x70] sm:$0xff]  }
0x19a8   :  { %v5173_v60 = vpop.f32.mrb[63].mxu1 }
0x19a9   :  { %v7162_v62 = vadd.f32 %v5171_v57, %v7146_v59  ;;  %v5895_v59 = vld [vmem:[#allocation16 + $0x78] sm:$0xff]  }
0x19aa   :  { %5503 = vmatpush3.bf16.msra.mxu0 %v5895_v59  ;;  %v5935_v57 = vld [vmem:[#allocation20 + $0x78] sm:$0xff]  }
0x19ab   :  { %v3427_v63 = vmul.f32 %v7162_v62, %v7162_v62  ;;  %5528 = vmatprep.subr.bf16.mxu0 %v6511_v0 }
0x19ad   :  { %v3428_v1 = vsel %vm2257_vm4, %v3427_v63, 0.0 }
0x19ae   :  { %3429 = vadd.xlane.f32.xlu0 %v3428_v1 }
0x1a3b   :  { %v3430_v13 = vpop.xlane.xlu0 %3429 }
0x1a3c   :  { %v3431_v42 = vmul.f32 0.0078125, %v3430_v13 }
0x1a3e   :  { %v3432_v14 = vadd.f32 1e-06, %v3431_v42 }
0x1a40   :  { %6024 = vrsqrt.f32 %v3432_v14 }
0x1a4a   :  { %v6025_v15 = vpop.eup %6024 }
0x1a4b   :  { %v3434_v17 = vmul.f32 %v6025_v15, %v7162_v62 }
0x1a4d   :  { %v3435_v18 = vmul.f32 %v3434_v17, %v3426_v16 }
0x1a4f   :  { %v3453_v19 = vpack.c.bf16 %v3435_v18, %v3435_v18 }
0x1a51   :  { %5505 = vmatmul.mubr.bf16.vlgmr.msra.gmra.mrb[64].mxu0 %v3453_v19 }
0x1a52   :  { %5544 = vmatprep.mubr.msk.bf16.mxu0 %vm6513_vm0, %v6511_v0  ;;  %5529 = vmatpush3.bf16.msra.mxu0 %v5928_v45 }
0x1a53   :  { %5530 = vmatprep.subr.bf16.mxu0 %v6511_v0 }
0x1a56   :  { %5531 = vmatpush3.bf16.msra.mxu0 %v5929_v46  ;;  %v5940_v46 = vld [vmem:[#allocation23 + $0x60] sm:$0xff]  }
0x1a57   :  { %5532 = vmatprep.subr.bf16.mxu0 %v6511_v0 }
0x1a5a   :  { %5533 = vmatpush3.bf16.msra.mxu0 %v5930_v47  ;;  %v5941_v47 = vld [vmem:[#allocation23 + $0x68] sm:$0xff]  }
0x1a5b   :  { %5534 = vmatprep.subr.bf16.mxu0 %v6511_v0 }
0x1a5e   :  { %5535 = vmatpush3.bf16.msra.mxu0 %v5931_v48  ;;  %v5942_v48 = vld [vmem:[#allocation23 + $0x70] sm:$0xff]  }
0x1a5f   :  { %5536 = vmatprep.subr.bf16.mxu0 %v6511_v0 }
0x1a62   :  { %5537 = vmatpush3.bf16.msra.mxu0 %v5932_v54 }
0x1a63   :  { %5538 = vmatprep.subr.bf16.mxu0 %v6511_v0 }
0x1a66   :  { %5539 = vmatpush3.bf16.msra.mxu0 %v5933_v55  ;;  %v5937_v55 = vld [vmem:[#allocation23 + $0x48] sm:$0xff]  }
0x1a67   :  { %5540 = vmatprep.subr.bf16.mxu0 %v6511_v0 }
0x1a6a   :  { %5541 = vmatpush3.bf16.msra.mxu0 %v5934_v56  ;;  %v5938_v56 = vld [vmem:[#allocation23 + $0x50] sm:$0xff]  }
0x1a6b   :  { %5542 = vmatprep.subr.bf16.mxu0 %v6511_v0 }
0x1a6e   :  { %5543 = vmatpush3.bf16.msra.mxu0 %v5935_v57  ;;  %v5939_v57 = vld [vmem:[#allocation23 + $0x58] sm:$0xff]  }
0x1a6f   :  { %5548 = vmatprep.subr.bf16.mxu0 %v6511_v0 }
0x1b24   :  { %v3536_v21 = vpop.f32.mrb[64].mxu0 }
0x1b25   :  { %v3559_v23 = vpack.c.bf16 %v3536_v21, %v3536_v21  ;;  %v5506_v40 = vpop.f32.mrb[65].mxu0 }
0x1b26   :  { %v3539_v26 = vpop.f32.mrb[66].mxu0 }
0x1b27   :  { %v5507_v27 = vpop.f32.mrb[67].mxu0  ;;  %5525 = vmatmul.mubr.bf16.vlgmr.msra.gmra.mrb[64].mxu1 %v3559_v23 }
0x1b28   :  { %3864 = vmatpush1.bf16.msra.mxu1 %v5904_v22  ;;  %3895 = vmatprep.mubr.bf16.mxu1 %v6512_v24 }
0x1b29   :  { %3865 = vmatprep.subr.bf16.mxu1 %v5909_v25 }
0x1b2c   :  { %3866 = vmatpush1.bf16.msra.mxu1 %v5907_v28 }
0x1b2d   :  { %3867 = vmatprep.subr.bf16.mxu1 %v5912_v29 }
0x1b30   :  { %3868 = vmatpush1.bf16.msra.mxu1 %v5910_v30 }
0x1b31   :  { %3869 = vmatprep.subr.bf16.mxu1 %v5915_v31 }
0x1b34   :  { %3870 = vmatpush1.bf16.msra.mxu1 %v5913_v32 }
0x1b35   :  { %3871 = vmatprep.subr.bf16.mxu1 %v5918_v34 }
0x1b38   :  { %3872 = vmatpush1.bf16.msra.mxu1 %v5916_v35 }
0x1b39   :  { %3873 = vmatprep.subr.bf16.mxu1 %v5921_v36 }
0x1b3c   :  { %3874 = vmatpush1.bf16.msra.mxu1 %v5919_v37 }
0x1b3d   :  { %3875 = vmatprep.subr.bf16.mxu1 %v5924_v38 }
0x1b40   :  { %3876 = vmatpush1.bf16.msra.mxu1 %v5922_v41 }
0x1b41   :  { %3877 = vmatprep.subr.bf16.mxu1 %v5927_v43 }
0x1b44   :  { %3878 = vmatpush1.bf16.msra.mxu1 %v5925_v44 }
0x1b45   :  { %5554 = vmatprep.subr.bf16.mxu1 %v6511_v0 }
0x1b47   :  { %3896 = vmatmul.mubr.bf16.vlgmr.msra.gmra.mrb[68].mxu1 %v7101_v39 }
0x1b48   :  { %5556 = vmatprep.mubr.msk.bf16.mxu1 %vm6513_vm0, %v6511_v0 }
0x1bfa   :  { %v3642_v39 = vpop.f32.mrb[64].mxu1 }
0x1bfb   :  { %v7192_v49 = vadd.f32 %v3642_v39, %v7162_v62  ;;  %v5526_v50 = vpop.f32.mrb[65].mxu1 }
0x1bfc   :  { %v3645_v58 = vpop.f32.mrb[66].mxu1 }
0x1bfd   :  { %v5527_v51 = vpop.f32.mrb[67].mxu1  ;;  %v3651_v52 = vmul.f32 %v7192_v49, %v7192_v49 }
0x1bff   :  { %v3652_v53 = vsel %vm2257_vm4, %v3651_v52, 0.0 }
0x1c00   :  { %3653 = vadd.xlane.f32.xlu0 %v3652_v53  ;;  %v5936_v53 = vld [vmem:[#allocation23 + $0x40] sm:$0xff]  }
0x1c1a   :  { %v3897_v61 = vpop.f32.mrb[68].mxu1 }
0x1c1b   :  { %v3922_v60 = vpack.c.bf16 %v3897_v61, %v3897_v61  ;;  %v3899_v62 = vpop.f32.mrb[69].mxu1  ;;  %v5943_v61 = vld [vmem:[#allocation23 + $0x78] sm:$0xff]  }
0x1c1c   :  { %v3981_v63 = vpack.c.bf16 %v3899_v62, %v3899_v62  ;;  %v3901_v1 = vpop.f32.mrb[70].mxu1 }
0x1c1d   :  { %4033 = vrot.lane.b32.xlu1 %v3922_v60, %s6493_s23  ;;  %v3902_v2 = vpop.f32.mrb[71].mxu1  ;;  %v3927_v10 = vsel %vm593_vm2, %v3922_v60, 0 }
0x1c1e   :  { %v3986_v3 = vsel %vm657_vm1, %v3981_v63, 0 }
0x1c1f   :  { %5555 = vmatpush3.bf16.msra.mxu1 %v3986_v3 }
0x1c20   :  { %5566 = vmatprep.subr.bf16.mxu1 %v6511_v0 }
0x1c8d   :  { %v3654_v4 = vpop.xlane.xlu0 %3653 }
0x1c8e   :  { %v3655_v5 = vmul.f32 0.0078125, %v3654_v4 }
0x1c8f   :  { %v4034_v11 = vpop.permute.xlu1 %4033 }
0x1c90   :  { %v3656_v59 = vadd.f32 1e-06, %v3655_v5  ;;  %v4039_v15 = vsel %vm593_vm2, %v4034_v11, 0 }
0x1c92   :  { %6026 = vrsqrt.f32 %v3656_v59 }
0x1c9c   :  { %v6027_v6 = vpop.eup %6026 }
0x1c9d   :  { %v3658_v7 = vmul.f32 %v6027_v6, %v7192_v49 }
0x1c9f   :  { %v3659_v8 = vmul.f32 %v3658_v7, %v3650_v33  ;;  %v5944_v33 = vld [vmem:[#allocation26 + $0x80] ss:$8 sps:$4 sm:$0xff]   ;;  %v5946_v7 = vld [vmem:[#allocation26 + $0x84] ss:$8 sps:$4 sm:$0xff]  }
0x1ca1   :  { %v3677_v9 = vpack.c.bf16 %v3659_v8, %v3659_v8  ;;  %v5949_v8 = vld [vmem:[#allocation26 + $0x94] ss:$8 sps:$4 sm:$0xff]  }
0x1ca3   :  { %5545 = vmatmul.mubr.bf16.vlgmr.msra.gmra.mrb[68].mxu0 %v3677_v9  ;;  %v5947_v9 = vld [vmem:[#allocation26 + $0x90] ss:$8 sps:$4 sm:$0xff]  }
0x1ca4   :  { %5549 = vmatpush3.bf16.xpose.msra.mxu0 %v3927_v10  ;;  %5550 = vmatprep.mubr.msk.bf16.mxu0 %vm6513_vm0, %v6511_v0  ;;  %v5952_v10 = vld [vmem:[#allocation26 + $0xa4] ss:$8 sps:$4 sm:$0xff]  }
0x1ca5   :  { %5560 = vmatprep.subr.bf16.mxu0 %v6511_v0 }
0x1d76   :  { %v3760_v12 = vpop.f32.mrb[68].mxu0 }
0x1d77   :  { %v3921_v13 = vpack.c.bf16 %v3760_v12, %v3760_v12  ;;  %v5546_v42 = vpop.f32.mrb[69].mxu0 }
0x1d78   :  { %v3763_v14 = vpop.f32.mrb[70].mxu0  ;;  %v5950_v42 = vld [vmem:[#allocation26 + $0xa0] ss:$8 sps:$4 sm:$0xff]  }
0x1d79   :  { %4030 = vrot.lane.b32.xlu0 %v3921_v13, %s6493_s23  ;;  %v5547_v16 = vpop.f32.mrb[71].mxu0  ;;  %5551 = vmatmul.mubr.msk.bf16.vlgmr.msra.gmra.mrb[72].mxu0 %vm593_vm2, %v3921_v13 }
0x1d7a   :  { %5561 = vmatpush3.bf16.xpose.msra.mxu0 %v4039_v15  ;;  %5562 = vmatprep.mubr.msk.bf16.mxu0 %vm6513_vm0, %v6511_v0 }
0x1d7b   :  { %5572 = vmatprep.subr.bf16.mxu0 %v6511_v0 }
0x1deb   :  { %v4031_v17 = vpop.permute.xlu0 %4030 }
0x1dec   :  { %5563 = vmatmul.mubr.msk.bf16.vlgmr.msra.gmra.mrb[76].mxu0 %vm593_vm2, %v4031_v17 }
0x1ded   :  { %5580 = vmatprep.mubr.msk.bf16.mxu0 %vm6513_vm0, %v6511_v0  ;;  %5573 = vmatpush3.bf16.msra.mxu0 %v5940_v46  ;;  %v5979_v46 = vld [vmem:[#allocation28 + $0xa8] sm:$0xff]  }
0x1dee   :  { %5574 = vmatprep.subr.bf16.mxu0 %v6511_v0 }
0x1df1   :  { %5575 = vmatpush3.bf16.msra.mxu0 %v5941_v47  ;;  %v5980_v47 = vld [vmem:[#allocation28 + $0xf0] sm:$0xff]  }
0x1df2   :  { %5576 = vmatprep.subr.bf16.mxu0 %v6511_v0 }
0x1df5   :  { %5577 = vmatpush3.bf16.msra.mxu0 %v5942_v48 }
0x1df6   :  { %5578 = vmatprep.subr.bf16.mxu0 %v6511_v0 }
0x1df9   :  { %5579 = vmatpush3.bf16.msra.mxu0 %v5943_v61 }
0x1dfa   :  { %4387 = vmatprep.subr.bf16.mxu0 %v5946_v7 }
0x1e4c   :  { %v3963_v18 = vpop.f32.mrb[72].mxu0 }
0x1e4d   :  { %v5552_v19 = vpop.f32.mrb[73].mxu0  ;;  %v3969_v20 = vsel %vm2794_vm5, %v3963_v18, -inf }
0x1e4e   :  { %3970 = vmax.xlane.f32.xlu1 %v3969_v20  ;;  %v3966_v21 = vpop.f32.mrb[74].mxu0 }
0x1e4f   :  { %v5553_v22 = vpop.f32.mrb[75].mxu0 }
0x1e50   :  { %v5955_v22 = vld [vmem:[#allocation26 + $0xb4] ss:$8 sps:$4 sm:$0xff]  }
0x1ebf   :  { %v4075_v23 = vpop.f32.mrb[76].mxu0 }
0x1ec0   :  { %v5564_v40 = vpop.f32.mrb[77].mxu0  ;;  %v4081_v25 = vsel %vm2794_vm5, %v4075_v23, -inf }
0x1ec1   :  { %4082 = vmax.xlane.f32.xlu0 %v4081_v25  ;;  %v4078_v26 = vpop.f32.mrb[78].mxu0  ;;  %v5956_v40 = vld [vmem:[#allocation26 + $0xc0] ss:$8 sps:$4 sm:$0xff]   ;;  %v5958_v25 = vld [vmem:[#allocation26 + $0xc4] ss:$8 sps:$4 sm:$0xff]  }
0x1ec2   :  { %v5565_v27 = vpop.f32.mrb[79].mxu0  ;;  %v5961_v26 = vld [vmem:[#allocation26 + $0xd4] ss:$8 sps:$4 sm:$0xff]  }
0x1ec3   :  { %v5959_v27 = vld [vmem:[#allocation26 + $0xd0] ss:$8 sps:$4 sm:$0xff]  }
0x1edb   :  { %v3971_v28 = vpop.xlane.xlu1 %3970 }
0x1edc   :  { %v3972_v29 = vsub.f32 %v3963_v18, %v3971_v28  ;;  %v5962_v28 = vld [vmem:[#allocation26 + $0xe0] ss:$8 sps:$4 sm:$0xff]  }
0x1ede   :  { %v3973_v30 = vmul.f32 1.442695, %v3972_v29  ;;  %v5967_v29 = vld [vmem:[#allocation26 + $0xf4] ss:$8 sps:$4 sm:$0xff]  }
0x1ee0   :  { %6028 = vpow2.f32 %v3973_v30  ;;  %v5965_v30 = vld [vmem:[#allocation26 + $0xf0] ss:$8 sps:$4 sm:$0xff]  }
0x1eea   :  { %v6029_v31 = vpop.eup %6028 }
0x1eeb   :  { %v3975_v32 = vsel %vm2794_vm5, %v6029_v31, 0.0 }
0x1eec   :  { %3976 = vadd.xlane.f32.xlu1 %v3975_v32  ;;  %v5969_v32 = vld [vmem:[#allocation28 + $0x80] sm:$0xff]  }
0x1f4e   :  { %v4083_v34 = vpop.xlane.xlu0 %4082 }
0x1f4f   :  { %v4084_v35 = vsub.f32 %v4075_v23, %v4083_v34  ;;  %v5953_v23 = vld [vmem:[#allocation26 + $0xb0] ss:$8 sps:$4 sm:$0xff]   ;;  %v5970_v34 = vld [vmem:[#allocation28 + $0xc8] sm:$0xff]  }
0x1f51   :  { %v4085_v36 = vmul.f32 1.442695, %v4084_v35  ;;  %v5971_v35 = vld [vmem:[#allocation28 + $0x88] sm:$0xff]  }
0x1f53   :  { %6030 = vpow2.f32 %v4085_v36  ;;  %v5972_v36 = vld [vmem:[#allocation28 + $0xd0] sm:$0xff]  }
0x1f5d   :  { %v6031_v37 = vpop.eup %6030 }
0x1f5e   :  { %v4087_v38 = vsel %vm2794_vm5, %v6031_v37, 0.0 }
0x1f5f   :  { %4088 = vadd.xlane.f32.xlu1 %v4087_v38  ;;  %v5974_v38 = vld [vmem:[#allocation28 + $0xd8] sm:$0xff]  }
0x1f70   :  { %4094 = vrot.lane.b32.xlu1 %v3981_v63, %s6493_s23 }
0x1f79   :  { %v3977_v41 = vpop.xlane.xlu1 %3976 }
0x1f7a   :  { %6032 = vrcp.f32 %v3977_v41  ;;  %v5975_v41 = vld [vmem:[#allocation28 + $0x98] sm:$0xff]  }
0x1f84   :  { %v6033_v43 = vpop.eup %6032 }
0x1f85   :  { %v3979_v44 = vmul.f32 %v6033_v43, %v6029_v31  ;;  %v5968_v31 = vld [vmem:[#allocation28 + $0xc0] sm:$0xff]  }
0x1f86   :  { %v5976_v43 = vld [vmem:[#allocation28 + $0xe0] sm:$0xff]  }
0x1f87   :  { %v3980_v45 = vpack.c.bf16 %v3979_v44, %v3979_v44  ;;  %v5977_v44 = vld [vmem:[#allocation28 + $0xa0] sm:$0xff]  }
0x1f89   :  { %5557 = vmatmul.mubr.msk.bf16.vlgmr.msra.gmra.mrb[72].mxu1 %vm640_vm3, %v3980_v45  ;;  %v5978_v45 = vld [vmem:[#allocation28 + $0xe8] sm:$0xff]  }
0x1f8a   :  { %5568 = vmatprep.mubr.msk.bf16.mxu1 %vm6513_vm0, %v6511_v0 }
0x1fec   :  { %v4089_v39 = vpop.xlane.xlu1 %4088 }
0x1fed   :  { %6034 = vrcp.f32 %v4089_v39 }
0x1ff0   :  { %v4095_v50 = vpop.permute.xlu1 %4094 }
0x1ff1   :  { %v4100_v58 = vsel %vm657_vm1, %v4095_v50, 0 }
0x1ff2   :  { %5567 = vmatpush3.bf16.msra.mxu1 %v4100_v58 }
0x1ff3   :  { %5584 = vmatprep.subr.bf16.mxu1 %v6511_v0 }
0x1ff7   :  { %v6035_v51 = vpop.eup %6034 }
0x1ff8   :  { %v4091_v52 = vmul.f32 %v6035_v51, %v6031_v37  ;;  %v5973_v37 = vld [vmem:[#allocation28 + $0x90] sm:$0xff]   ;;  %v4279_v51 = vld [vmem:[#allocation25 + $0x1] sm:$0x1] }
0x1ffa   :  { %v4092_v54 = vpack.c.bf16 %v4091_v52, %v4091_v52 }
0x1ffc   :  { %5569 = vmatmul.mubr.msk.bf16.vlgmr.msra.gmra.mrb[76].mxu1 %vm640_vm3, %v4092_v54 }
0x1ffd   :  { %5585 = vmatpush3.bf16.msra.mxu1 %v5936_v53  ;;  %5592 = vmatprep.mubr.msk.bf16.mxu1 %vm6513_vm0, %v6511_v0 }
0x1ffe   :  { %5586 = vmatprep.subr.bf16.mxu1 %v6511_v0 }
0x2001   :  { %5587 = vmatpush3.bf16.msra.mxu1 %v5937_v55  ;;  %v5981_v55 = vld [vmem:[#allocation28 + $0xb0] sm:$0xff]  }
0x2002   :  { %5588 = vmatprep.subr.bf16.mxu1 %v6511_v0 }
0x2005   :  { %5589 = vmatpush3.bf16.msra.mxu1 %v5938_v56  ;;  %v5982_v56 = vld [vmem:[#allocation28 + $0xf8] sm:$0xff]  }
0x2006   :  { %5590 = vmatprep.subr.bf16.mxu1 %v6511_v0 }
0x2009   :  { %5591 = vmatpush3.bf16.msra.mxu1 %v5939_v57  ;;  %v5983_v57 = vld [vmem:[#allocation28 + $0xb8] sm:$0xff]  }
0x200a   :  { %5220 = vmatprep.subr.bf16.mxu1 %v5968_v31 }
0x205c   :  { %v4022_v60 = vpop.f32.mrb[72].mxu1 }
0x205d   :  { %v4028_v62 = vpack.c.bf16 %v4022_v60, %v4022_v60  ;;  %v5558_v63 = vpop.f32.mrb[73].mxu1 }
0x205e   :  { %v4025_v1 = vpop.f32.mrb[74].mxu1 }
0x205f   :  { %v5559_v2 = vpop.f32.mrb[75].mxu1  ;;  %5593 = vmatmul.mubr.msk.bf16.vlgmr.msra.gmra.mrb[80].mxu1 %vm593_vm2, %v4028_v62 }
0x2060   :  { %5221 = vmatpush3.bf16.msra.mxu1 %v5969_v32 }
0x2061   :  { %5222 = vmatprep.subr.bf16.mxu1 %v5970_v34 }
0x2064   :  { %5223 = vmatpush3.bf16.msra.mxu1 %v5971_v35 }
0x2065   :  { %5224 = vmatprep.subr.bf16.mxu1 %v5972_v36 }
0x2068   :  { %5225 = vmatpush3.bf16.msra.mxu1 %v5973_v37 }
0x2069   :  { %5226 = vmatprep.subr.bf16.mxu1 %v5974_v38 }
0x206c   :  { %5227 = vmatpush3.bf16.msra.mxu1 %v5975_v41 }
0x206d   :  { %5228 = vmatprep.subr.bf16.mxu1 %v5976_v43 }
0x2070   :  { %5229 = vmatpush3.bf16.msra.mxu1 %v5977_v44 }
0x2071   :  { %5230 = vmatprep.subr.bf16.mxu1 %v5978_v45 }
0x2074   :  { %5231 = vmatpush3.bf16.msra.mxu1 %v5979_v46 }
0x2075   :  { %5232 = vmatprep.subr.bf16.mxu1 %v5980_v47 }
0x2078   :  { %5233 = vmatpush3.bf16.msra.mxu1 %v5981_v55 }
0x2079   :  { %5234 = vmatprep.subr.bf16.mxu1 %v5982_v56 }
0x207c   :  { %5235 = vmatpush3.bf16.msra.mxu1 %v5983_v57 }
0x20cf   :  { %v4136_v3 = vpop.f32.mrb[76].mxu1 }
0x20d0   :  { %v4142_v4 = vpack.c.bf16 %v4136_v3, %v4136_v3  ;;  %v5570_v5 = vpop.f32.mrb[77].mxu1 }
0x20d1   :  { %v4139_v59 = vpop.f32.mrb[78].mxu1 }
0x20d2   :  { %v5571_v6 = vpop.f32.mrb[79].mxu1  ;;  %5581 = vmatmul.mubr.msk.bf16.vlgmr.msra.gmra.mrb[80].mxu0 %vm593_vm2, %v4142_v4 }
0x20d3   :  { %4419 = vmatprep.mubr.bf16.mxu0 %v6512_v24  ;;  %4388 = vmatpush1.bf16.msra.mxu0 %v5944_v33 }
0x20d4   :  { %4389 = vmatprep.subr.bf16.mxu0 %v5949_v8 }
0x20d7   :  { %4390 = vmatpush1.bf16.msra.mxu0 %v5947_v9 }
0x20d8   :  { %4391 = vmatprep.subr.bf16.mxu0 %v5952_v10  ;;  %v4612_v10 = vld [vmem:[%s7316_s16] sm:$0x1] }
0x20db   :  { %4392 = vmatpush1.bf16.msra.mxu0 %v5950_v42 }
0x20dc   :  { %4393 = vmatprep.subr.bf16.mxu0 %v5955_v22 }
0x20df   :  { %4394 = vmatpush1.bf16.msra.mxu0 %v5953_v23 }
0x20e0   :  { %4395 = vmatprep.subr.bf16.mxu0 %v5958_v25 }
0x20e3   :  { %4396 = vmatpush1.bf16.msra.mxu0 %v5956_v40 }
0x20e4   :  { %4397 = vmatprep.subr.bf16.mxu0 %v5961_v26 }
0x20e7   :  { %4398 = vmatpush1.bf16.msra.mxu0 %v5959_v27 }
0x2132   :  { %v4271_v11 = vpop.f32.mrb[80].mxu1 }
0x2133   :  { %v5594_v12 = vpop.f32.mrb[81].mxu1 }
0x2134   :  { %v4274_v13 = vpop.f32.mrb[82].mxu1 }
0x2135   :  { %v5595_v14 = vpop.f32.mrb[83].mxu1 }
0x2136   :  { %v4602_v14 = vld [vmem:[#allocation29] sm:$0x1] }
0x21a5   :  { %v4204_v15 = vpop.f32.mrb[80].mxu0 }
0x21a6   :  { %v4272_v16 = vadd.f32 %v4271_v11, %v4204_v15  ;;  %v5582_v17 = vpop.f32.mrb[81].mxu0 }
0x21a7   :  { %v4207_v24 = vpop.f32.mrb[82].mxu0 }
0x21a8   :  { %v7241_v18 = vadd.f32 %v4272_v16, %v7192_v49  ;;  %v5583_v19 = vpop.f32.mrb[83].mxu0  ;;  %v5964_v49 = vld [vmem:[#allocation26 + $0xe4] ss:$8 sps:$4 sm:$0xff]  }
0x21a9   :  { %4399 = vmatprep.subr.bf16.mxu0 %v5964_v49 }
0x21aa   :  { %v4280_v20 = vmul.f32 %v7241_v18, %v7241_v18  ;;  %4400 = vmatpush1.bf16.msra.mxu0 %v5962_v28 }
0x21ab   :  { %4401 = vmatprep.subr.bf16.mxu0 %v5967_v29 }
0x21ac   :  { %v4281_v21 = vsel %vm2257_vm4, %v4280_v20, 0.0 }
0x21ad   :  { %4282 = vadd.xlane.f32.xlu0 %v4281_v21 }
0x21ae   :  { %4402 = vmatpush1.bf16.msra.mxu0 %v5965_v30 }
0x21af   :  { %5596 = vmatprep.subr.bf16.mxu0 %v6511_v0 }
0x223a   :  { %v4283_v48 = vpop.xlane.xlu0 %4282 }
0x223b   :  { %v4284_v39 = vmul.f32 0.0078125, %v4283_v48 }
0x223d   :  { %v4285_v50 = vadd.f32 1e-06, %v4284_v39 }
0x223f   :  { %6036 = vrsqrt.f32 %v4285_v50 }
0x2249   :  { %v6037_v58 = vpop.eup %6036 }
0x224a   :  { %v4287_v52 = vmul.f32 %v6037_v58, %v7241_v18 }
0x224c   :  { %v4288_v53 = vmul.f32 %v4287_v52, %v4279_v51 }
0x224e   :  { %v4306_v54 = vpack.c.bf16 %v4288_v53, %v4288_v53 }
0x2250   :  { %4420 = vmatmul.mubr.bf16.vlgmr.msra.gmra.mrb[84].mxu0 %v4306_v54 }
0x2251   :  { %5598 = vmatprep.mubr.msk.bf16.mxu0 %vm6513_vm0, %v6511_v0  ;;  %5597 = vmatpush3.bf16.xpose.msra.mxu0 %v4612_v10 }
0x2323   :  { %v4421_v61 = vpop.f32.mrb[84].mxu0 }
0x2324   :  { %v4428_v60 = vmax.f32 %v4421_v61, 0.0  ;;  %v4423_v62 = vpop.f32.mrb[85].mxu0 }
0x2325   :  { %v4429_v63 = vmax.f32 %v4423_v62, 0.0  ;;  %v4425_v1 = vpop.f32.mrb[86].mxu0 }
0x2326   :  { %v4426_v2 = vpop.f32.mrb[87].mxu0  ;;  %v4463_v4 = vpack.c.bf16 %v4428_v60, %v4428_v60 }
0x2327   :  { %v4464_v3 = vpack.c.bf16 %v4429_v63, %v4429_v63 }
0x2329   :  { %4593 = vmatprep.mubr.bf16.mxu1 %v4464_v3 }
0x232a   :  { %4594 = vmatmul.mubr.bf16.vlgmr.msra.gmra.mrb[84].mxu1 %v4463_v4 }
0x23fd   :  { %v5236_v5 = vpop.f32.mrb[84].mxu1 }
0x23fe   :  { %v5237_v59 = vpop.f32.mrb[85].mxu1 }
0x23ff   :  { %v5238_v6 = vadd.f32 %v5237_v59, %v5236_v5  ;;  %v5239_v0 = vpop.f32.mrb[86].mxu1 }
0x2400   :  { %v5240_v33 = vpop.f32.mrb[87].mxu1 }
0x2401   :  { %v4601_v7 = vadd.f32 %v5238_v6, %v7241_v18 }
0x2403   :  { %v4603_v8 = vmul.f32 %v4601_v7, %v4601_v7 }
0x2405   :  { %v4604_v9 = vsel %vm2257_vm4, %v4603_v8, 0.0 }
0x2406   :  { %4605 = vadd.xlane.f32.xlu0 %v4604_v9 }
0x2493   :  { %v4606_v11 = vpop.xlane.xlu0 %4605 }
0x2494   :  { %v4607_v12 = vmul.f32 0.0078125, %v4606_v11 }
0x2496   :  { %v4608_v13 = vadd.f32 1e-06, %v4607_v12 }
0x2498   :  { %6038 = vrsqrt.f32 %v4608_v13 }
0x24a2   :  { %v6039_v42 = vpop.eup %6038 }
0x24a3   :  { %v4610_v15 = vmul.f32 %v6039_v42, %v4601_v7 }
0x24a5   :  { %v4611_v16 = vmul.f32 %v4610_v15, %v4602_v14 }
0x24a7   :  { %v4613_v17 = vpack.c.bf16 %v4611_v16, %v4611_v16 }
0x24a9   :  { %5599 = vmatmul.mubr.bf16.vlgmr.msra.gmra.mrb[88].mxu0 %v4613_v17 }
0x257c   :  { %v4648_v24 = vpop.f32.mrb[88].mxu0 }
0x257d   :  { %v4654_v18 = vmul.f32 0.088388346, %v4648_v24  ;;  %v5600_v19 = vpop.f32.mrb[89].mxu0 }
0x257e   :  { %v4651_v20 = vpop.f32.mrb[90].mxu0 }
0x257f   :  { %v5601_v21 = vpop.f32.mrb[91].mxu0  ;;  %v4656_v22 = vsel %vm4655_vm6, %v4654_v18, -inf }
0x2580   :  { %4657 = vmax.xlane.f32.xlu0 %v4656_v22 }
0x260d   :  { %v4658_v23 = vpop.xlane.xlu0 %4657 }
0x260e   :  { %v4659_v40 = vsub.f32 %v4654_v18, %v4658_v23 }
0x2610   :  { %v4660_v25 = vmul.f32 1.442695, %v4659_v40 }
0x2612   :  { %6040 = vpow2.f32 %v4660_v25 }
0x261c   :  { %v6041_v26 = vpop.eup %6040 }
0x261d   :  { %v4662_v27 = vsel %vm4655_vm6, %v6041_v26, 0.0 }
0x261e   :  { %4663 = vadd.xlane.f32.xlu1 %v4662_v27 }
0x26ab   :  { %v4664_v49 = vpop.xlane.xlu1 %4663 }
0x26ac   :  { %6042 = vrcp.f32 %v4664_v49 }
0x26b6   :  { %v6043_v28 = vpop.eup %6042 }
0x26b7   :  { %v4666_v29 = vmul.f32 %v6043_v28, %v6041_v26 }
0x26b9   :  { %4667 = vst.msk [vmem:[#allocation31] sm:$0x1] %vm4655_vm6, %v4666_v29 }
0x26ba   :  { %6452 = shalt.err (!%p6449_p8)
}
0x26bb   :  { %s7317_s21 = sld [smem:[#allocation51_spill]] }
0x26c1   :  { %s6453_s14 = scalar_lea.hbm %s7317_s21, 16 }
0x26c2   :  { %p6454_p9 = scmp.ne.s32.totalorder %s7317_s21, %s6453_s14  ;;  %p6457_p10 = scmp.lt.u32.totalorder %s6453_s14, %s7317_s21 }
0x26c4   :  { %p6459_p11 = pnand %p6457_p10, %p6454_p9 }
0x26c6   :  { %6462 = shalt.err (!%p6459_p11)
}
0x26c7   :  { %4677 = dma.vmem_to_hbm [thread:$0]  %s4675_s28, 16, %s7317_s21, [#allocation4]  }
0x26c8   :  { %6483 = dma.done.wait [#allocation4], 16  }
0x26c9   :  { %6484 = vsyncadd [#allocation4], 4294967280 }
0x26ca   :  { %4681 = vsyncpa [#allocation3], 1 }
0x26cb   :  { %4682 = vsyncpa [#allocation6], 1 }
0x26cc   :  { %4683 = vsyncpa [#allocation9], 1 }
0x26cd   :  { %4684 = vsyncpa [#allocation12], 1 }
0x26ce   :  { %4685 = vsyncpa [#allocation15], 1 }
0x26cf   :  { %4686 = vsyncpa [#allocation18], 1 }
0x26d0   :  { %4687 = vsyncpa [#allocation21], 1 }
0x26d1   :  { %4688 = vsyncpa [#allocation24], 1 }
0x26d2   :  { %4689 = vsyncpa [#allocation27], 1 }
0x26d3   :  { %4690 = vsyncpa [#allocation30], 1 }
0x26d4   :  { %4691 = vsyncpa [#allocation4], 1 }

</bundles_post_ra>
